<compile_context>
chip_gen: v6e
topology: v6e:2x2x1
jax: 0.10.0
libtpu: 0.0.40
codegen_flags: <defaults>
</compile_context>

<pallas_src>
import jax
import jax.numpy as jnp
from jax import lax
from jax.experimental import pallas as pl
from jax.experimental.pallas import tpu as pltpu

NUM_HEADS = 4
LN_EPS = 1e-5  # PyTorch nn.LayerNorm default eps


def _layernorm(x, w, b):
    mu = jnp.mean(x, axis=-1, keepdims=True)
    var = jnp.mean((x - mu) ** 2, axis=-1, keepdims=True)
    return (x - mu) * lax.rsqrt(var + LN_EPS) * w + b


def _gelu_exact(x):
    # nn.GELU() default: exact erf formulation (matches PyTorch).
    # TODO(synk): optional — switch to the tanh approximation (runs on the EUP
    # slot) if ~1e-3 deviation from PyTorch's exact GELU is acceptable.
    return 0.5 * x * (1.0 + lax.erf(x * 0.7071067811865476))


def _make_kernel(Bb, S, C, num_heads):
    """Kernel for one block of Bb batch elements, flattened to (Bb*S, C) rows."""
    dh = C // num_heads

    def kernel(x_ref,
               ln1w_ref, ln1b_ref,
               wqkv_ref, bqkv_ref,
               wout_ref, bout_ref,
               ln2w_ref, ln2b_ref,
               w1_ref, b1_ref, w2_ref, b2_ref,
               o_ref):
        x = x_ref[...].astype(jnp.float32)                         # (Bb*S, C)

        # --- LayerNorm (self.ln), f32 elementwise ---
        x_ln = _layernorm(x, ln1w_ref[...], ln1b_ref[...])
        x_ln_b = x_ln.astype(jnp.bfloat16)                         # bf16 MXU operand

        # --- fused q/k/v projection: one (rows, C) @ (C, 3C) matmul.
        # 1/sqrt(dh) is pre-folded into the q columns / bias by the wrapper.
        qkv = jnp.dot(x_ln_b, wqkv_ref[...],
                      preferred_element_type=jnp.float32) + bqkv_ref[...]
        qkv3 = qkv.reshape(Bb, S, 3 * C).astype(jnp.bfloat16)      # leading split only

        # --- split heads once: lane slices stacked along the leading axis ->
        # (num_heads*Bb, S, dh); all attention math is then head-batched.
        def split_heads(base):
            return jnp.concatenate(
                [qkv3[:, :, base + h * dh: base + (h + 1) * dh]
                 for h in range(num_heads)], axis=0)

        qh = split_heads(0)          # (H*Bb, S, dh)
        kh = split_heads(C)
        vh = split_heads(2 * C)

        # --- one head-batched softmax-attention ---
        s = jnp.einsum('bqd,bkd->bqk', qh, kh,
                       preferred_element_type=jnp.float32)         # (H*Bb, S, S)
        s = s - jnp.max(s, axis=-1, keepdims=True)
        p = jnp.exp(s)
        p = p * pl.reciprocal(jnp.sum(p, axis=-1, keepdims=True), approx=True)
        ctx = jnp.einsum('bqk,bkd->bqd', p.astype(jnp.bfloat16), vh,
                         preferred_element_type=jnp.float32)       # (H*Bb, S, dh)

        # --- merge heads back onto the lane axis, single K=32 out-projection ---
        ctx_m = jnp.concatenate(
            [ctx[h * Bb:(h + 1) * Bb] for h in range(num_heads)], axis=-1)
        ctx2 = ctx_m.reshape(Bb * S, C).astype(jnp.bfloat16)
        attn = jnp.dot(ctx2, wout_ref[...],
                       preferred_element_type=jnp.float32) + bout_ref[...]

        # --- residual 1 ---
        h1 = attn + x

        # --- ff_self: LayerNorm -> Linear -> GELU -> Linear, + residual 2 ---
        h_ln = _layernorm(h1, ln2w_ref[...], ln2b_ref[...]).astype(jnp.bfloat16)
        ff = jnp.dot(h_ln, w1_ref[...], preferred_element_type=jnp.float32) + b1_ref[...]
        ff = _gelu_exact(ff).astype(jnp.bfloat16)
        ff = jnp.dot(ff, w2_ref[...], preferred_element_type=jnp.float32) + b2_ref[...]

        o_ref[...] = (ff + h1).astype(o_ref.dtype)

    return kernel


def init_params(key, C):
    """Deterministic synthetic parameters in PyTorch shapes."""
    ks = jax.random.split(key, 8)
    s = 0.05
    params = dict(
        ln1_w=jnp.ones((C,), jnp.float32),
        ln1_b=jnp.zeros((C,), jnp.float32),
        in_proj_w=jax.random.normal(ks[0], (3 * C, C), jnp.float32) * s,
        in_proj_b=jax.random.normal(ks[1], (3 * C,), jnp.float32) * s,
        out_proj_w=jax.random.normal(ks[2], (C, C), jnp.float32) * s,
        out_proj_b=jax.random.normal(ks[3], (C,), jnp.float32) * s,
        ln2_w=jnp.ones((C,), jnp.float32),
        ln2_b=jnp.zeros((C,), jnp.float32),
        ff1_w=jax.random.normal(ks[4], (C, C), jnp.float32) * s,
        ff1_b=jax.random.normal(ks[5], (C,), jnp.float32) * s,
        ff2_w=jax.random.normal(ks[6], (C, C), jnp.float32) * s,
        ff2_b=jax.random.normal(ks[7], (C,), jnp.float32) * s,
    )
    return params


def _num_tensorcores():
    """Heuristic: 2 TensorCores on v7x / v4 / v5p, else 1 (v5e / v6e)."""
    try:
        kind = jax.devices()[0].device_kind.lower()
    except Exception:
        return 1
    return 2 if any(t in kind for t in ("v7", "v4", "v5p")) else 1


def _choose_b_per_blk(B, S, num_cores, target_rows=1024):
    """Largest valid block (rows <= target); prefer >=num_cores blocks on 2-TC parts."""
    divisors = [d for d in range(1, B + 1) if B % d == 0]
    # Valid tiling: single block (full-extent dims) or sublane dim multiple of 8.
    valid = [d for d in divisors if (B // d == 1) or (d * S) % 8 == 0]
    if not valid:
        return B
    if num_cores > 1:
        multi = [d for d in valid if B // d >= num_cores]
        if multi:
            under = [d for d in multi if d * S <= target_rows]
            return max(under) if under else min(multi)
    under = [d for d in valid if d * S <= target_rows]
    return max(under) if under else min(valid)


def self_attention(x_nchw, params):
    B, C, H, W = x_nchw.shape
    S = H * W
    assert C % NUM_HEADS == 0
    dh = C // NUM_HEADS
    scale = 1.0 / (dh ** 0.5)

    # NCHW -> (B*S, C)  (== x.view(-1, C, H*W).swapaxes(1, 2), flattened).
    # If this block is stacked per-layer, hoist these transposes out and keep
    # activations in (B*S, C) between layers.
    x2d = jnp.transpose(x_nchw.reshape(B, C, S), (0, 2, 1)).reshape(B * S, C)
    x2d = x2d.astype(jnp.float32)

    w_in, b_in = params["in_proj_w"], params["in_proj_b"]

    # Fused qkv weight (C, 3C) / bias (1, 3C); 1/sqrt(dh) folded into q part.
    wqkv = jnp.concatenate(
        [w_in[:C].T * scale, w_in[C:2 * C].T, w_in[2 * C:].T], axis=1)
    bqkv = jnp.concatenate([b_in[:C] * scale, b_in[C:2 * C], b_in[2 * C:]])

    kernel_params = [
        params["ln1_w"].reshape(1, C).astype(jnp.float32),
        params["ln1_b"].reshape(1, C).astype(jnp.float32),
        wqkv.astype(jnp.bfloat16),                              # (C, 3C)
        bqkv.reshape(1, 3 * C).astype(jnp.float32),             # (1, 3C)
        params["out_proj_w"].T.astype(jnp.bfloat16),
        params["out_proj_b"].reshape(1, C).astype(jnp.float32),
        params["ln2_w"].reshape(1, C).astype(jnp.float32),
        params["ln2_b"].reshape(1, C).astype(jnp.float32),
        params["ff1_w"].T.astype(jnp.bfloat16),
        params["ff1_b"].reshape(1, C).astype(jnp.float32),
        params["ff2_w"].T.astype(jnp.bfloat16),
        params["ff2_b"].reshape(1, C).astype(jnp.float32),
    ]

    b_per_blk = _choose_b_per_blk(B, S, _num_tensorcores())
    nblk = B // b_per_blk
    rows = b_per_blk * S

    weight_specs = [pl.BlockSpec(p.shape, lambda i: (0, 0)) for p in kernel_params]

    # Advisory cost estimate for XLA's scheduler.
    mm_flops = 2 * (B * S) * C * C * 6               # qkv(3) + out-proj(1) + ff(2)
    attn_flops = 4 * B * S * S * C                   # scores + context
    transcendentals = B * NUM_HEADS * S * S + B * S * C + 3 * B * S
    bytes_accessed = 2 * int(x2d.size) * 4 + sum(
        int(p.size) * p.dtype.itemsize for p in kernel_params)
    cost = pl.CostEstimate(flops=int(mm_flops + attn_flops),
                           transcendentals=int(transcendentals),
                           bytes_accessed=int(bytes_accessed))

    kernel = _make_kernel(b_per_blk, S, C, NUM_HEADS)

    out2d = pl.pallas_call(
        kernel,
        out_shape=jax.ShapeDtypeStruct((B * S, C), jnp.float32),
        grid_spec=pltpu.PrefetchScalarGridSpec(
            num_scalar_prefetch=0,
            grid=(nblk,),
            in_specs=[pl.BlockSpec((rows, C), lambda i: (i, 0))] + weight_specs,
            out_specs=pl.BlockSpec((rows, C), lambda i: (i, 0)),
        ),
        compiler_params=pltpu.CompilerParams(
            dimension_semantics=("parallel",)),
        cost_estimate=cost,
    )(x2d, *kernel_params)

    # (B*S, C) -> NCHW  (== .swapaxes(2, 1).view(-1, C, H, W))
    return jnp.transpose(out2d.reshape(B, S, C), (0, 2, 1)).reshape(B, C, H, W)


def _reference(x_nchw, params):
    """Pure-JAX f32 reference mirroring the PyTorch module."""
    B, C, H, W = x_nchw.shape
    S = H * W
    dh = C // NUM_HEADS
    x = jnp.transpose(x_nchw.reshape(B, C, S), (0, 2, 1)).astype(jnp.float32)

    def ln(t, w, b):
        mu = t.mean(-1, keepdims=True)
        var = ((t - mu) ** 2).mean(-1, keepdims=True)
        return (t - mu) / jnp.sqrt(var + LN_EPS) * w + b

    x_ln = ln(x, params["ln1_w"], params["ln1_b"])
    qkv = x_ln @ params["in_proj_w"].T + params["in_proj_b"]
    q, k, v = jnp.split(qkv, 3, axis=-1)
    q = q.reshape(B, S, NUM_HEADS, dh).transpose(0, 2, 1, 3)
    k = k.reshape(B, S, NUM_HEADS, dh).transpose(0, 2, 1, 3)
    v = v.reshape(B, S, NUM_HEADS, dh).transpose(0, 2, 1, 3)
    s = jnp.einsum('bhqd,bhkd->bhqk', q, k) / (dh ** 0.5)
    p = jax.nn.softmax(s, axis=-1)
    ctx = jnp.einsum('bhqk,bhkd->bhqd', p, v)
    ctx = ctx.transpose(0, 2, 1, 3).reshape(B, S, C)
    attn = ctx @ params["out_proj_w"].T + params["out_proj_b"]
    h1 = attn + x
    h_ln = ln(h1, params["ln2_w"], params["ln2_b"])
    ff = h_ln @ params["ff1_w"].T + params["ff1_b"]
    ff = _gelu_exact(ff)
    ff = ff @ params["ff2_w"].T + params["ff2_b"]
    out = ff + h1
    return jnp.transpose(out, (0, 2, 1)).reshape(B, C, H, W)


if __name__ == "__main__":
    B, C, H, W = 2, 32, 8, 8   # channels must be divisible by 4 heads
    key = jax.random.PRNGKey(0)
    k_x, k_p = jax.random.split(key)
    x = jax.random.normal(k_x, (B, C, H, W), jnp.float32)
    params = init_params(k_p, C)

    out = self_attention(x, params)
    jax.block_until_ready(out)
    assert out.shape == (B, C, H, W)

    ref = _reference(x, params)
    max_err = float(jnp.max(jnp.abs(out - ref)))
    assert max_err < 5e-2, f"numerical mismatch vs reference: {max_err}"
    print("KERNEL_OK")
</pallas_src>

<mosaic_0001>
module attributes {stable_mosaic.version = 11 : i64} {
  func.func @kernel(%arg0: i32, %arg1: memref<128x32xf32, #tpu.memory_space<vmem>>, %arg2: memref<1x32xf32, #tpu.memory_space<vmem>>, %arg3: memref<1x32xf32, #tpu.memory_space<vmem>>, %arg4: memref<32x96xbf16, #tpu.memory_space<vmem>>, %arg5: memref<1x96xf32, #tpu.memory_space<vmem>>, %arg6: memref<32x32xbf16, #tpu.memory_space<vmem>>, %arg7: memref<1x32xf32, #tpu.memory_space<vmem>>, %arg8: memref<1x32xf32, #tpu.memory_space<vmem>>, %arg9: memref<1x32xf32, #tpu.memory_space<vmem>>, %arg10: memref<32x32xbf16, #tpu.memory_space<vmem>>, %arg11: memref<1x32xf32, #tpu.memory_space<vmem>>, %arg12: memref<32x32xbf16, #tpu.memory_space<vmem>>, %arg13: memref<1x32xf32, #tpu.memory_space<vmem>>, %arg14: memref<128x32xf32, #tpu.memory_space<vmem>>) attributes {dimension_semantics = [#tpu.dimension_semantics<parallel>], iteration_bounds = array<i64: 1>, scalar_prefetch = 0 : i64, scratch_operands = 0 : i64, tpu.core_type = #tpu.core_type<tc>, window_params = [{transform_indices = @transform_0, window_bounds = array<i64: 128, 32>}, {pipeline_mode = #tpu.pipeline_mode<synchronous>, transform_indices = @transform_1, window_bounds = array<i64: 1, 32>}, {pipeline_mode = #tpu.pipeline_mode<synchronous>, transform_indices = @transform_2, window_bounds = array<i64: 1, 32>}, {pipeline_mode = #tpu.pipeline_mode<synchronous>, transform_indices = @transform_3, window_bounds = array<i64: 32, 96>}, {pipeline_mode = #tpu.pipeline_mode<synchronous>, transform_indices = @transform_4, window_bounds = array<i64: 1, 96>}, {pipeline_mode = #tpu.pipeline_mode<synchronous>, transform_indices = @transform_5, window_bounds = array<i64: 32, 32>}, {pipeline_mode = #tpu.pipeline_mode<synchronous>, transform_indices = @transform_6, window_bounds = array<i64: 1, 32>}, {pipeline_mode = #tpu.pipeline_mode<synchronous>, transform_indices = @transform_7, window_bounds = array<i64: 1, 32>}, {pipeline_mode = #tpu.pipeline_mode<synchronous>, transform_indices = @transform_8, window_bounds = array<i64: 1, 32>}, {pipeline_mode = #tpu.pipeline_mode<synchronous>, transform_indices = @transform_9, window_bounds = array<i64: 32, 32>}, {pipeline_mode = #tpu.pipeline_mode<synchronous>, transform_indices = @transform_10, window_bounds = array<i64: 1, 32>}, {pipeline_mode = #tpu.pipeline_mode<synchronous>, transform_indices = @transform_11, window_bounds = array<i64: 32, 32>}, {pipeline_mode = #tpu.pipeline_mode<synchronous>, transform_indices = @transform_12, window_bounds = array<i64: 1, 32>}, {transform_indices = @transform_13, window_bounds = array<i64: 128, 32>}]} {
    %c0 = arith.constant 0 : index
    %c0_0 = arith.constant 0 : index
    %0 = vector.load %arg1[%c0, %c0_0] : memref<128x32xf32, #tpu.memory_space<vmem>>, vector<128x32xf32>
    %c0_1 = arith.constant 0 : index
    %c0_2 = arith.constant 0 : index
    %1 = vector.load %arg2[%c0_1, %c0_2] : memref<1x32xf32, #tpu.memory_space<vmem>>, vector<1x32xf32>
    %c0_3 = arith.constant 0 : index
    %c0_4 = arith.constant 0 : index
    %2 = vector.load %arg3[%c0_3, %c0_4] : memref<1x32xf32, #tpu.memory_space<vmem>>, vector<1x32xf32>
    %cst = arith.constant dense<0.000000e+00> : vector<128xf32>
    %3 = vector.multi_reduction <add>, %0, %cst [1] : vector<128x32xf32> to vector<128xf32>
    %4 = vector.shape_cast %3 : vector<128xf32> to vector<128x1xf32>
    %cst_5 = arith.constant 3.200000e+01 : f32
    %5 = vector.broadcast %cst_5 : f32 to vector<128x1xf32>
    %6 = arith.divf %4, %5 : vector<128x1xf32>
    %7 = vector.broadcast %6 : vector<128x1xf32> to vector<128x32xf32>
    %8 = arith.subf %0, %7 : vector<128x32xf32>
    %9 = arith.mulf %8, %8 : vector<128x32xf32>
    %cst_6 = arith.constant dense<0.000000e+00> : vector<128xf32>
    %10 = vector.multi_reduction <add>, %9, %cst_6 [1] : vector<128x32xf32> to vector<128xf32>
    %11 = vector.shape_cast %10 : vector<128xf32> to vector<128x1xf32>
    %cst_7 = arith.constant 3.200000e+01 : f32
    %12 = vector.broadcast %cst_7 : f32 to vector<128x1xf32>
    %13 = arith.divf %11, %12 : vector<128x1xf32>
    %14 = vector.broadcast %6 : vector<128x1xf32> to vector<128x32xf32>
    %15 = arith.subf %0, %14 : vector<128x32xf32>
    %cst_8 = arith.constant 9.99999974E-6 : f32
    %16 = vector.broadcast %cst_8 : f32 to vector<128x1xf32>
    %17 = arith.addf %13, %16 : vector<128x1xf32>
    %18 = math.rsqrt %17 : vector<128x1xf32>
    %19 = vector.broadcast %18 : vector<128x1xf32> to vector<128x32xf32>
    %20 = arith.mulf %15, %19 : vector<128x32xf32>
    %21 = vector.broadcast %1 : vector<1x32xf32> to vector<128x32xf32>
    %22 = arith.mulf %20, %21 : vector<128x32xf32>
    %23 = vector.broadcast %2 : vector<1x32xf32> to vector<128x32xf32>
    %24 = arith.addf %22, %23 : vector<128x32xf32>
    %25 = arith.truncf %24 : vector<128x32xf32> to vector<128x32xbf16>
    %c0_9 = arith.constant 0 : index
    %c0_10 = arith.constant 0 : index
    %26 = vector.load %arg4[%c0_9, %c0_10] : memref<32x96xbf16, #tpu.memory_space<vmem>>, vector<32x96xbf16>
    %cst_11 = arith.constant dense<0.000000e+00> : vector<128x96xf32>
    %27 = tpu.matmul %25, %26, %cst_11 {dimension_numbers = #tpu.dot_dimension_numbers<[1], [0], [0], [1], [0, 0, 1, 1], [], []>} : vector<128x32xbf16>, vector<32x96xbf16>, vector<128x96xf32> -> vector<128x96xf32>
    %c0_12 = arith.constant 0 : index
    %c0_13 = arith.constant 0 : index
    %28 = vector.load %arg5[%c0_12, %c0_13] : memref<1x96xf32, #tpu.memory_space<vmem>>, vector<1x96xf32>
    %29 = vector.broadcast %28 : vector<1x96xf32> to vector<128x96xf32>
    %30 = arith.addf %27, %29 : vector<128x96xf32>
    %31 = vector.shape_cast %30 : vector<128x96xf32> to vector<2x64x96xf32>
    %32 = arith.truncf %31 : vector<2x64x96xf32> to vector<2x64x96xbf16>
    %33 = vector.extract_strided_slice %32 {offsets = [0, 0, 0], sizes = [2, 64, 8], strides = [1, 1, 1]} : vector<2x64x96xbf16> to vector<2x64x8xbf16>
    %34 = vector.extract_strided_slice %32 {offsets = [0, 0, 8], sizes = [2, 64, 8], strides = [1, 1, 1]} : vector<2x64x96xbf16> to vector<2x64x8xbf16>
    %35 = vector.extract_strided_slice %32 {offsets = [0, 0, 16], sizes = [2, 64, 8], strides = [1, 1, 1]} : vector<2x64x96xbf16> to vector<2x64x8xbf16>
    %36 = vector.extract_strided_slice %32 {offsets = [0, 0, 24], sizes = [2, 64, 8], strides = [1, 1, 1]} : vector<2x64x96xbf16> to vector<2x64x8xbf16>
    %37 = tpu.concatenate %33, %34, %35, %36 in 0 : vector<2x64x8xbf16>, vector<2x64x8xbf16>, vector<2x64x8xbf16>, vector<2x64x8xbf16> -> vector<8x64x8xbf16>
    %38 = vector.extract_strided_slice %32 {offsets = [0, 0, 32], sizes = [2, 64, 8], strides = [1, 1, 1]} : vector<2x64x96xbf16> to vector<2x64x8xbf16>
    %39 = vector.extract_strided_slice %32 {offsets = [0, 0, 40], sizes = [2, 64, 8], strides = [1, 1, 1]} : vector<2x64x96xbf16> to vector<2x64x8xbf16>
    %40 = vector.extract_strided_slice %32 {offsets = [0, 0, 48], sizes = [2, 64, 8], strides = [1, 1, 1]} : vector<2x64x96xbf16> to vector<2x64x8xbf16>
    %41 = vector.extract_strided_slice %32 {offsets = [0, 0, 56], sizes = [2, 64, 8], strides = [1, 1, 1]} : vector<2x64x96xbf16> to vector<2x64x8xbf16>
    %42 = tpu.concatenate %38, %39, %40, %41 in 0 : vector<2x64x8xbf16>, vector<2x64x8xbf16>, vector<2x64x8xbf16>, vector<2x64x8xbf16> -> vector<8x64x8xbf16>
    %43 = vector.extract_strided_slice %32 {offsets = [0, 0, 64], sizes = [2, 64, 8], strides = [1, 1, 1]} : vector<2x64x96xbf16> to vector<2x64x8xbf16>
    %44 = vector.extract_strided_slice %32 {offsets = [0, 0, 72], sizes = [2, 64, 8], strides = [1, 1, 1]} : vector<2x64x96xbf16> to vector<2x64x8xbf16>
    %45 = vector.extract_strided_slice %32 {offsets = [0, 0, 80], sizes = [2, 64, 8], strides = [1, 1, 1]} : vector<2x64x96xbf16> to vector<2x64x8xbf16>
    %46 = vector.extract_strided_slice %32 {offsets = [0, 0, 88], sizes = [2, 64, 8], strides = [1, 1, 1]} : vector<2x64x96xbf16> to vector<2x64x8xbf16>
    %47 = tpu.concatenate %43, %44, %45, %46 in 0 : vector<2x64x8xbf16>, vector<2x64x8xbf16>, vector<2x64x8xbf16>, vector<2x64x8xbf16> -> vector<8x64x8xbf16>
    "tpu.trace_start"() <{level = 10 : i32, message = "bqd,bkd->bqk"}> : () -> ()
    %cst_14 = arith.constant dense<0.000000e+00> : vector<8x64x64xf32>
    %48 = tpu.matmul %37, %42, %cst_14 {dimension_numbers = #tpu.dot_dimension_numbers<[2], [2], [1], [1], [0, 0, 0, 1, 1, 1], [0], [0]>} : vector<8x64x8xbf16>, vector<8x64x8xbf16>, vector<8x64x64xf32> -> vector<8x64x64xf32>
    "tpu.trace_stop"() : () -> ()
    %cst_15 = arith.constant dense<0xFF800000> : vector<8x64xf32>
    %49 = vector.multi_reduction <maximumf>, %48, %cst_15 [2] : vector<8x64x64xf32> to vector<8x64xf32>
    %50 = vector.shape_cast %49 : vector<8x64xf32> to vector<8x64x1xf32>
    %51 = vector.broadcast %50 : vector<8x64x1xf32> to vector<8x64x64xf32>
    %52 = arith.subf %48, %51 : vector<8x64x64xf32>
    %53 = math.exp %52 : vector<8x64x64xf32>
    %cst_16 = arith.constant dense<0.000000e+00> : vector<8x64xf32>
    %54 = vector.multi_reduction <add>, %53, %cst_16 [2] : vector<8x64x64xf32> to vector<8x64xf32>
    %55 = vector.shape_cast %54 : vector<8x64xf32> to vector<8x64x1xf32>
    %56 = tpu.reciprocal %55 {approx = true} : vector<8x64x1xf32> -> vector<8x64x1xf32>
    %57 = vector.broadcast %56 : vector<8x64x1xf32> to vector<8x64x64xf32>
    %58 = arith.mulf %53, %57 : vector<8x64x64xf32>
    %59 = arith.truncf %58 : vector<8x64x64xf32> to vector<8x64x64xbf16>
    "tpu.trace_start"() <{level = 10 : i32, message = "bqk,bkd->bqd"}> : () -> ()
    %cst_17 = arith.constant dense<0.000000e+00> : vector<8x64x8xf32>
    %60 = tpu.matmul %59, %47, %cst_17 {dimension_numbers = #tpu.dot_dimension_numbers<[2], [1], [1], [2], [0, 0, 0, 1, 1, 2], [0], [0]>} : vector<8x64x64xbf16>, vector<8x64x8xbf16>, vector<8x64x8xf32> -> vector<8x64x8xf32>
    "tpu.trace_stop"() : () -> ()
    %61 = vector.extract_strided_slice %60 {offsets = [0, 0, 0], sizes = [2, 64, 8], strides = [1, 1, 1]} : vector<8x64x8xf32> to vector<2x64x8xf32>
    %62 = vector.extract_strided_slice %60 {offsets = [2, 0, 0], sizes = [2, 64, 8], strides = [1, 1, 1]} : vector<8x64x8xf32> to vector<2x64x8xf32>
    %63 = vector.extract_strided_slice %60 {offsets = [4, 0, 0], sizes = [2, 64, 8], strides = [1, 1, 1]} : vector<8x64x8xf32> to vector<2x64x8xf32>
    %64 = vector.extract_strided_slice %60 {offsets = [6, 0, 0], sizes = [2, 64, 8], strides = [1, 1, 1]} : vector<8x64x8xf32> to vector<2x64x8xf32>
    %65 = tpu.concatenate %61, %62, %63, %64 in 2 : vector<2x64x8xf32>, vector<2x64x8xf32>, vector<2x64x8xf32>, vector<2x64x8xf32> -> vector<2x64x32xf32>
    %66 = vector.shape_cast %65 : vector<2x64x32xf32> to vector<128x32xf32>
    %67 = arith.truncf %66 : vector<128x32xf32> to vector<128x32xbf16>
    %c0_18 = arith.constant 0 : index
    %c0_19 = arith.constant 0 : index
    %68 = vector.load %arg6[%c0_18, %c0_19] : memref<32x32xbf16, #tpu.memory_space<vmem>>, vector<32x32xbf16>
    %cst_20 = arith.constant dense<0.000000e+00> : vector<128x32xf32>
    %69 = tpu.matmul %67, %68, %cst_20 {dimension_numbers = #tpu.dot_dimension_numbers<[1], [0], [0], [1], [0, 0, 1, 1], [], []>} : vector<128x32xbf16>, vector<32x32xbf16>, vector<128x32xf32> -> vector<128x32xf32>
    %c0_21 = arith.constant 0 : index
    %c0_22 = arith.constant 0 : index
    %70 = vector.load %arg7[%c0_21, %c0_22] : memref<1x32xf32, #tpu.memory_space<vmem>>, vector<1x32xf32>
    %71 = vector.broadcast %70 : vector<1x32xf32> to vector<128x32xf32>
    %72 = arith.addf %69, %71 : vector<128x32xf32>
    %73 = arith.addf %72, %0 : vector<128x32xf32>
    %c0_23 = arith.constant 0 : index
    %c0_24 = arith.constant 0 : index
    %74 = vector.load %arg8[%c0_23, %c0_24] : memref<1x32xf32, #tpu.memory_space<vmem>>, vector<1x32xf32>
    %c0_25 = arith.constant 0 : index
    %c0_26 = arith.constant 0 : index
    %75 = vector.load %arg9[%c0_25, %c0_26] : memref<1x32xf32, #tpu.memory_space<vmem>>, vector<1x32xf32>
    %cst_27 = arith.constant dense<0.000000e+00> : vector<128xf32>
    %76 = vector.multi_reduction <add>, %73, %cst_27 [1] : vector<128x32xf32> to vector<128xf32>
    %77 = vector.shape_cast %76 : vector<128xf32> to vector<128x1xf32>
    %cst_28 = arith.constant 3.200000e+01 : f32
    %78 = vector.broadcast %cst_28 : f32 to vector<128x1xf32>
    %79 = arith.divf %77, %78 : vector<128x1xf32>
    %80 = vector.broadcast %79 : vector<128x1xf32> to vector<128x32xf32>
    %81 = arith.subf %73, %80 : vector<128x32xf32>
    %82 = arith.mulf %81, %81 : vector<128x32xf32>
    %cst_29 = arith.constant dense<0.000000e+00> : vector<128xf32>
    %83 = vector.multi_reduction <add>, %82, %cst_29 [1] : vector<128x32xf32> to vector<128xf32>
    %84 = vector.shape_cast %83 : vector<128xf32> to vector<128x1xf32>
    %cst_30 = arith.constant 3.200000e+01 : f32
    %85 = vector.broadcast %cst_30 : f32 to vector<128x1xf32>
    %86 = arith.divf %84, %85 : vector<128x1xf32>
    %87 = vector.broadcast %79 : vector<128x1xf32> to vector<128x32xf32>
    %88 = arith.subf %73, %87 : vector<128x32xf32>
    %cst_31 = arith.constant 9.99999974E-6 : f32
    %89 = vector.broadcast %cst_31 : f32 to vector<128x1xf32>
    %90 = arith.addf %86, %89 : vector<128x1xf32>
    %91 = math.rsqrt %90 : vector<128x1xf32>
    %92 = vector.broadcast %91 : vector<128x1xf32> to vector<128x32xf32>
    %93 = arith.mulf %88, %92 : vector<128x32xf32>
    %94 = vector.broadcast %74 : vector<1x32xf32> to vector<128x32xf32>
    %95 = arith.mulf %93, %94 : vector<128x32xf32>
    %96 = vector.broadcast %75 : vector<1x32xf32> to vector<128x32xf32>
    %97 = arith.addf %95, %96 : vector<128x32xf32>
    %98 = arith.truncf %97 : vector<128x32xf32> to vector<128x32xbf16>
    %c0_32 = arith.constant 0 : index
    %c0_33 = arith.constant 0 : index
    %99 = vector.load %arg10[%c0_32, %c0_33] : memref<32x32xbf16, #tpu.memory_space<vmem>>, vector<32x32xbf16>
    %cst_34 = arith.constant dense<0.000000e+00> : vector<128x32xf32>
    %100 = tpu.matmul %98, %99, %cst_34 {dimension_numbers = #tpu.dot_dimension_numbers<[1], [0], [0], [1], [0, 0, 1, 1], [], []>} : vector<128x32xbf16>, vector<32x32xbf16>, vector<128x32xf32> -> vector<128x32xf32>
    %c0_35 = arith.constant 0 : index
    %c0_36 = arith.constant 0 : index
    %101 = vector.load %arg11[%c0_35, %c0_36] : memref<1x32xf32, #tpu.memory_space<vmem>>, vector<1x32xf32>
    %102 = vector.broadcast %101 : vector<1x32xf32> to vector<128x32xf32>
    %103 = arith.addf %100, %102 : vector<128x32xf32>
    %cst_37 = arith.constant 5.000000e-01 : f32
    %104 = vector.broadcast %cst_37 : f32 to vector<128x32xf32>
    %105 = arith.mulf %104, %103 : vector<128x32xf32>
    %cst_38 = arith.constant 0.707106769 : f32
    %106 = vector.broadcast %cst_38 : f32 to vector<128x32xf32>
    %107 = arith.mulf %103, %106 : vector<128x32xf32>
    %108 = math.erf %107 : vector<128x32xf32>
    %cst_39 = arith.constant 1.000000e+00 : f32
    %109 = vector.broadcast %cst_39 : f32 to vector<128x32xf32>
    %110 = arith.addf %109, %108 : vector<128x32xf32>
    %111 = arith.mulf %105, %110 : vector<128x32xf32>
    %112 = arith.truncf %111 : vector<128x32xf32> to vector<128x32xbf16>
    %c0_40 = arith.constant 0 : index
    %c0_41 = arith.constant 0 : index
    %113 = vector.load %arg12[%c0_40, %c0_41] : memref<32x32xbf16, #tpu.memory_space<vmem>>, vector<32x32xbf16>
    %cst_42 = arith.constant dense<0.000000e+00> : vector<128x32xf32>
    %114 = tpu.matmul %112, %113, %cst_42 {dimension_numbers = #tpu.dot_dimension_numbers<[1], [0], [0], [1], [0, 0, 1, 1], [], []>} : vector<128x32xbf16>, vector<32x32xbf16>, vector<128x32xf32> -> vector<128x32xf32>
    %c0_43 = arith.constant 0 : index
    %c0_44 = arith.constant 0 : index
    %115 = vector.load %arg13[%c0_43, %c0_44] : memref<1x32xf32, #tpu.memory_space<vmem>>, vector<1x32xf32>
    %116 = vector.broadcast %115 : vector<1x32xf32> to vector<128x32xf32>
    %117 = arith.addf %114, %116 : vector<128x32xf32>
    %118 = arith.addf %117, %73 : vector<128x32xf32>
    %c0_45 = arith.constant 0 : index
    %c0_46 = arith.constant 0 : index
    %119 = vector.load %arg14[%c0_45, %c0_46] : memref<128x32xf32, #tpu.memory_space<vmem>>, vector<128x32xf32>
    tpu.vector_store %arg14[%c0_45, %c0_46], %118 {strides = array<i32>} : memref<128x32xf32, #tpu.memory_space<vmem>>, vector<128x32xf32>,
    return
  }
  func.func @transform_0(%arg0: i32) -> (i32, i32) {
    %c0_i32 = arith.constant 0 : i32
    %c0_i32_0 = arith.constant 0 : i32
    return %arg0, %c0_i32 : i32, i32
  }
  func.func @transform_1(%arg0: i32) -> (i32, i32) {
    %c0_i32 = arith.constant 0 : i32
    %c0_i32_0 = arith.constant 0 : i32
    %c0_i32_1 = arith.constant 0 : i32
    return %c0_i32, %c0_i32_0 : i32, i32
  }
  func.func @transform_2(%arg0: i32) -> (i32, i32) {
    %c0_i32 = arith.constant 0 : i32
    %c0_i32_0 = arith.constant 0 : i32
    %c0_i32_1 = arith.constant 0 : i32
    return %c0_i32, %c0_i32_0 : i32, i32
  }
  func.func @transform_3(%arg0: i32) -> (i32, i32) {
    %c0_i32 = arith.constant 0 : i32
    %c0_i32_0 = arith.constant 0 : i32
    %c0_i32_1 = arith.constant 0 : i32
    return %c0_i32, %c0_i32_0 : i32, i32
  }
  func.func @transform_4(%arg0: i32) -> (i32, i32) {
    %c0_i32 = arith.constant 0 : i32
    %c0_i32_0 = arith.constant 0 : i32
    %c0_i32_1 = arith.constant 0 : i32
    return %c0_i32, %c0_i32_0 : i32, i32
  }
  func.func @transform_5(%arg0: i32) -> (i32, i32) {
    %c0_i32 = arith.constant 0 : i32
    %c0_i32_0 = arith.constant 0 : i32
    %c0_i32_1 = arith.constant 0 : i32
    return %c0_i32, %c0_i32_0 : i32, i32
  }
  func.func @transform_6(%arg0: i32) -> (i32, i32) {
    %c0_i32 = arith.constant 0 : i32
    %c0_i32_0 = arith.constant 0 : i32
    %c0_i32_1 = arith.constant 0 : i32
    return %c0_i32, %c0_i32_0 : i32, i32
  }
  func.func @transform_7(%arg0: i32) -> (i32, i32) {
    %c0_i32 = arith.constant 0 : i32
    %c0_i32_0 = arith.constant 0 : i32
    %c0_i32_1 = arith.constant 0 : i32
    return %c0_i32, %c0_i32_0 : i32, i32
  }
  func.func @transform_8(%arg0: i32) -> (i32, i32) {
    %c0_i32 = arith.constant 0 : i32
    %c0_i32_0 = arith.constant 0 : i32
    %c0_i32_1 = arith.constant 0 : i32
    return %c0_i32, %c0_i32_0 : i32, i32
  }
  func.func @transform_9(%arg0: i32) -> (i32, i32) {
    %c0_i32 = arith.constant 0 : i32
    %c0_i32_0 = arith.constant 0 : i32
    %c0_i32_1 = arith.constant 0 : i32
    return %c0_i32, %c0_i32_0 : i32, i32
  }
  func.func @transform_10(%arg0: i32) -> (i32, i32) {
    %c0_i32 = arith.constant 0 : i32
    %c0_i32_0 = arith.constant 0 : i32
    %c0_i32_1 = arith.constant 0 : i32
    return %c0_i32, %c0_i32_0 : i32, i32
  }
  func.func @transform_11(%arg0: i32) -> (i32, i32) {
    %c0_i32 = arith.constant 0 : i32
    %c0_i32_0 = arith.constant 0 : i32
    %c0_i32_1 = arith.constant 0 : i32
    return %c0_i32, %c0_i32_0 : i32, i32
  }
  func.func @transform_12(%arg0: i32) -> (i32, i32) {
    %c0_i32 = arith.constant 0 : i32
    %c0_i32_0 = arith.constant 0 : i32
    %c0_i32_1 = arith.constant 0 : i32
    return %c0_i32, %c0_i32_0 : i32, i32
  }
  func.func @transform_13(%arg0: i32) -> (i32, i32) {
    %c0_i32 = arith.constant 0 : i32
    %c0_i32_0 = arith.constant 0 : i32
    return %arg0, %c0_i32 : i32, i32
  }
}

</mosaic_0001>

<bundles_post_ra>
// kernel: tpu_custom_call.1
= control target key start
LH: loop header
LB: loop body
LE: loop exit
PB: predicated region body
PF: predicated region fallthrough
CT: control target
= control target key end

     0   :  { %vm63_vm0 = vcmask 261120   ;;  %vm541_vm1 = vcmask 64512   ;;  %s4996_s30 = smov 96   ;;  %s4997_s14 = smov 112   ;;  %vm1310_vm2 = vcmask 523264   ;;  %vm2967_vm3 = vcmask 130048   ;;  %s7059_s0 = inlined_call_operand.vmem [shape: f32[128,32], index: 0, kind: input, shape index: {}]   ;;  %s7060_s3 = inlined_call_operand.vmem [shape: bf16[32,96], index: 3, kind: input, shape index: {}]   ;;  %s7061_s1 = inlined_call_operand.vmem [shape: f32[1,32], index: 1, kind: input, shape index: {}]   ;;  %s7062_s2 = inlined_call_operand.vmem [shape: f32[1,32], index: 2, kind: input, shape index: {}]   ;;  %s7063_s4 = inlined_call_operand.vmem [shape: f32[1,96], index: 4, kind: input, shape index: {}]   ;;  %s7064_s5 = inlined_call_operand.vmem [shape: bf16[32,32], index: 5, kind: input, shape index: {}]   ;;  %s7065_s6 = inlined_call_operand.vmem [shape: f32[1,32], index: 6, kind: input, shape index: {}]   ;;  %s7066_s9 = inlined_call_operand.vmem [shape: bf16[32,32], index: 9, kind: input, shape index: {}]   ;;  %s7067_s7 = inlined_call_operand.vmem [shape: f32[1,32], index: 7, kind: input, shape index: {}]   ;;  %s7068_s8 = inlined_call_operand.vmem [shape: f32[1,32], index: 8, kind: input, shape index: {}]   ;;  %s7069_s11 = inlined_call_operand.vmem [shape: bf16[32,32], index: 11, kind: input, shape index: {}]   ;;  %s7070_s10 = inlined_call_operand.vmem [shape: f32[1,32], index: 10, kind: input, shape index: {}]   ;;  %s7071_s12 = inlined_call_operand.vmem [shape: f32[1,32], index: 12, kind: input, shape index: {}]   ;;  %s7072_s13 = inlined_call_operand.vmem [shape: f32[128,32], index: 13, kind: output, shape index: {}]  }
   0x1   :  { %v45_v0 = vld [vmem:[%s7059_s0] sm:$0xff]  ;;  %v47_v1 = vld [vmem:[%s7059_s0 + $0x10] sm:$0xff]  ;;  %v46_v2 = vld [vmem:[%s7059_s0 + $0x8] sm:$0xff]  ;;  %s4998_s15 = smov 104   ;;  %s4999_s16 = smov 64   ;;  %vm2984_vm4 = vcmask 195584  }
   0x2   :  { %v64_v3 = vsel %vm63_vm0, %v45_v0, 0.0  ;;  %v70_v4 = vsel %vm63_vm0, %v47_v1, 0.0  ;;  %v48_v5 = vld [vmem:[%s7059_s0 + $0x18] sm:$0xff]  ;;  %v67_v6 = vsel %vm63_vm0, %v46_v2, 0.0  ;;  %v49_v8 = vld [vmem:[%s7059_s0 + $0x20] sm:$0xff]  ;;  %v50_v9 = vld [vmem:[%s7059_s0 + $0x28] sm:$0xff] }
   0x3   :  { %65 = vadd.xlane.f32.xlu0 %v64_v3  ;;  %71 = vadd.xlane.f32.xlu1 %v70_v4  ;;  %v73_v7 = vsel %vm63_vm0, %v48_v5, 0.0  ;;  %v76_v10 = vsel %vm63_vm0, %v49_v8, 0.0  ;;  %v79_v11 = vsel %vm63_vm0, %v50_v9, 0.0  ;;  %v5100_v12 = vld [vmem:[%s7059_s0 + $0x30] sm:$0xff]  ;;  %v5105_v13 = vld [vmem:[%s7059_s0 + $0x38] sm:$0xff]  ;;  %v5114_v16 = vld [vmem:[%s7059_s0 + $0x40] sm:$0xff] }
   0x4   :  { %v82_v14 = vsel %vm63_vm0, %v5100_v12, 0.0  ;;  %v85_v15 = vsel %vm63_vm0, %v5105_v13, 0.0  ;;  %v5119_v17 = vld [vmem:[%s7059_s0 + $0x48] sm:$0xff]  ;;  %v88_v18 = vsel %vm63_vm0, %v5114_v16, 0.0  ;;  %v5128_v20 = vld [vmem:[%s7059_s0 + $0x50] sm:$0xff]  ;;  %v5133_v21 = vld [vmem:[%s7059_s0 + $0x58] sm:$0xff] }
   0x5   :  { %v91_v19 = vsel %vm63_vm0, %v5119_v17, 0.0  ;;  %v94_v22 = vsel %vm63_vm0, %v5128_v20, 0.0  ;;  %v97_v23 = vsel %vm63_vm0, %v5133_v21, 0.0  ;;  %v5142_v24 = vld [vmem:[%s7059_s0 + $0x60] sm:$0xff]  ;;  %v5147_v25 = vld [vmem:[%s7059_s0 + $0x68] sm:$0xff]  ;;  %v5156_v28 = vld [vmem:[%s7059_s0 + $0x70] sm:$0xff] }
   0x6   :  { %v100_v26 = vsel %vm63_vm0, %v5142_v24, 0.0  ;;  %v103_v27 = vsel %vm63_vm0, %v5147_v25, 0.0  ;;  %v5161_v29 = vld [vmem:[%s7059_s0 + $0x78] sm:$0xff]  ;;  %v106_v30 = vsel %vm63_vm0, %v5156_v28, 0.0  ;;  %s5000_s17 = smov 8   ;;  %s5001_s18 = smov 16  }
   0x7   :  { %68 = vadd.xlane.f32.xlu0 %v67_v6  ;;  %74 = vadd.xlane.f32.xlu1 %v73_v7  ;;  %v109_v31 = vsel %vm63_vm0, %v5161_v29, 0.0  ;;  %s5002_s23 = smov 24  }
   0xb   :  { %77 = vadd.xlane.f32.xlu0 %v76_v10  ;;  %80 = vadd.xlane.f32.xlu1 %v79_v11 }
   0xf   :  { %83 = vadd.xlane.f32.xlu0 %v82_v14  ;;  %86 = vadd.xlane.f32.xlu1 %v85_v15 }
  0x13   :  { %89 = vadd.xlane.f32.xlu0 %v88_v18  ;;  %92 = vadd.xlane.f32.xlu1 %v91_v19 }
  0x17   :  { %95 = vadd.xlane.f32.xlu0 %v94_v22  ;;  %98 = vadd.xlane.f32.xlu1 %v97_v23 }
  0x1b   :  { %101 = vadd.xlane.f32.xlu0 %v100_v26  ;;  %104 = vadd.xlane.f32.xlu1 %v103_v27 }
  0x1f   :  { %107 = vadd.xlane.f32.xlu0 %v106_v30  ;;  %110 = vadd.xlane.f32.xlu1 %v109_v31 }
  0x8c   :  { %v66_v32 = vpop.xlane.xlu0 %65  ;;  %v72_v33 = vpop.xlane.xlu1 %71 }
  0x8d   :  { %v113_v34 = vmul.f32 0.03125, %v66_v32  ;;  %v115_v35 = vmul.f32 0.03125, %v72_v33 }
  0x8f   :  { %v5167_v36 = vsub.f32 %v45_v0, %v113_v34  ;;  %v5169_v37 = vsub.f32 %v47_v1, %v115_v35 }
  0x90   :  { %v69_v38 = vpop.xlane.xlu0 %68  ;;  %v75_v39 = vpop.xlane.xlu1 %74 }
  0x91   :  { %v114_v40 = vmul.f32 0.03125, %v69_v38  ;;  %v116_v41 = vmul.f32 0.03125, %v75_v39  ;;  %v145_v42 = vmul.f32 %v5167_v36, %v5167_v36  ;;  %v147_v43 = vmul.f32 %v5169_v37, %v5169_v37 }
  0x93   :  { %v5175_v44 = vsub.f32 %v46_v2, %v114_v40  ;;  %v5177_v45 = vsub.f32 %v48_v5, %v116_v41  ;;  %v161_v46 = vsel %vm63_vm0, %v145_v42, 0.0  ;;  %v167_v49 = vsel %vm63_vm0, %v147_v43, 0.0 }
  0x94   :  { %162 = vadd.xlane.f32.xlu0 %v161_v46  ;;  %v78_v47 = vpop.xlane.xlu0 %77  ;;  %v81_v48 = vpop.xlane.xlu1 %80 }
  0x95   :  { %v117_v50 = vmul.f32 0.03125, %v78_v47  ;;  %v118_v51 = vmul.f32 0.03125, %v81_v48  ;;  %v146_v52 = vmul.f32 %v5175_v44, %v5175_v44  ;;  %v148_v53 = vmul.f32 %v5177_v45, %v5177_v45 }
  0x97   :  { %v5185_v54 = vsub.f32 %v49_v8, %v117_v50  ;;  %v5187_v55 = vsub.f32 %v50_v9, %v118_v51  ;;  %v164_v56 = vsel %vm63_vm0, %v146_v52, 0.0  ;;  %v170_v59 = vsel %vm63_vm0, %v148_v53, 0.0  ;;  %v4620_v53 = vld [vmem:[%s7060_s3] sm:$0xff]  }
  0x98   :  { %168 = vadd.xlane.f32.xlu0 %v167_v49  ;;  %165 = vadd.xlane.f32.xlu1 %v164_v56  ;;  %v84_v57 = vpop.xlane.xlu0 %83  ;;  %v87_v58 = vpop.xlane.xlu1 %86 }
  0x99   :  { %v119_v60 = vmul.f32 0.03125, %v84_v57  ;;  %v120_v61 = vmul.f32 0.03125, %v87_v58  ;;  %v149_v62 = vmul.f32 %v5185_v54, %v5185_v54  ;;  %v150_v63 = vmul.f32 %v5187_v55, %v5187_v55 }
  0x9b   :  { %v5196_v0 = vsub.f32 %v5100_v12, %v119_v60  ;;  %v5199_v1 = vsub.f32 %v5105_v13, %v120_v61  ;;  %v173_v2 = vsel %vm63_vm0, %v149_v62, 0.0  ;;  %v176_v5 = vsel %vm63_vm0, %v150_v63, 0.0 }
  0x9c   :  { %171 = vadd.xlane.f32.xlu1 %v170_v59  ;;  %174 = vadd.xlane.f32.xlu0 %v173_v2  ;;  %v90_v3 = vpop.xlane.xlu0 %89  ;;  %v93_v4 = vpop.xlane.xlu1 %92 }
  0x9d   :  { %v121_v6 = vmul.f32 0.03125, %v90_v3  ;;  %v122_v7 = vmul.f32 0.03125, %v93_v4  ;;  %v151_v8 = vmul.f32 %v5196_v0, %v5196_v0  ;;  %v152_v9 = vmul.f32 %v5199_v1, %v5199_v1 }
  0x9f   :  { %v5208_v10 = vsub.f32 %v5114_v16, %v121_v6  ;;  %v5211_v11 = vsub.f32 %v5119_v17, %v122_v7  ;;  %v179_v12 = vsel %vm63_vm0, %v151_v8, 0.0  ;;  %v182_v15 = vsel %vm63_vm0, %v152_v9, 0.0 }
  0xa0   :  { %177 = vadd.xlane.f32.xlu1 %v176_v5  ;;  %180 = vadd.xlane.f32.xlu0 %v179_v12  ;;  %v96_v13 = vpop.xlane.xlu0 %95  ;;  %v99_v14 = vpop.xlane.xlu1 %98 }
  0xa1   :  { %v123_v18 = vmul.f32 0.03125, %v96_v13  ;;  %v124_v19 = vmul.f32 0.03125, %v99_v14  ;;  %v153_v22 = vmul.f32 %v5208_v10, %v5208_v10  ;;  %v154_v16 = vmul.f32 %v5211_v11, %v5211_v11 }
  0xa3   :  { %v5220_v23 = vsub.f32 %v5128_v20, %v123_v18  ;;  %v5223_v17 = vsub.f32 %v5133_v21, %v124_v19  ;;  %v185_v26 = vsel %vm63_vm0, %v153_v22, 0.0  ;;  %v188_v31 = vsel %vm63_vm0, %v154_v16, 0.0 }
  0xa4   :  { %183 = vadd.xlane.f32.xlu1 %v182_v15  ;;  %186 = vadd.xlane.f32.xlu0 %v185_v26  ;;  %v102_v27 = vpop.xlane.xlu0 %101  ;;  %v105_v30 = vpop.xlane.xlu1 %104 }
  0xa5   :  { %v125_v32 = vmul.f32 0.03125, %v102_v27  ;;  %v126_v33 = vmul.f32 0.03125, %v105_v30  ;;  %v155_v34 = vmul.f32 %v5220_v23, %v5220_v23  ;;  %v156_v20 = vmul.f32 %v5223_v17, %v5223_v17 }
  0xa7   :  { %v5232_v35 = vsub.f32 %v5142_v24, %v125_v32  ;;  %v5235_v21 = vsub.f32 %v5147_v25, %v126_v33  ;;  %v191_v38 = vsel %vm63_vm0, %v155_v34, 0.0  ;;  %v194_v41 = vsel %vm63_vm0, %v156_v20, 0.0  ;;  %v5266_v32 = vld [vmem:[%s7061_s1] ss:$0 sm:$0xff] }
  0xa8   :  { %189 = vadd.xlane.f32.xlu1 %v188_v31  ;;  %192 = vadd.xlane.f32.xlu0 %v191_v38  ;;  %v108_v39 = vpop.xlane.xlu0 %107  ;;  %v111_v40 = vpop.xlane.xlu1 %110 }
  0xa9   :  { %v127_v42 = vmul.f32 0.03125, %v108_v39  ;;  %v128_v43 = vmul.f32 0.03125, %v111_v40  ;;  %v157_v46 = vmul.f32 %v5232_v35, %v5232_v35  ;;  %v158_v24 = vmul.f32 %v5235_v21, %v5235_v21 }
  0xab   :  { %v5244_v47 = vsub.f32 %v5156_v28, %v127_v42  ;;  %v5247_v25 = vsub.f32 %v5161_v29, %v128_v43  ;;  %v197_v48 = vsel %vm63_vm0, %v157_v46, 0.0  ;;  %v200_v49 = vsel %vm63_vm0, %v158_v24, 0.0  ;;  %v4619_v29 = vld [vmem:[%s7060_s3 + $0x8] sm:$0xff]   ;;  %v5273_v24 = vld [vmem:[%s7062_s2] ss:$0 sm:$0xff] }
  0xac   :  { %195 = vadd.xlane.f32.xlu1 %v194_v41  ;;  %198 = vadd.xlane.f32.xlu0 %v197_v48 }
  0xad   :  { %v159_v50 = vmul.f32 %v5244_v47, %v5244_v47  ;;  %v160_v51 = vmul.f32 %v5247_v25, %v5247_v25  ;;  %4123 = vmatprep.subr.bf16.mxu0 %v4619_v29 }
  0xae   :  { %4124 = vmatpush3.bf16.msra.mxu0 %v4619_v29 }
  0xaf   :  { %v203_v52 = vsel %vm63_vm0, %v159_v50, 0.0  ;;  %v206_v28 = vsel %vm63_vm0, %v160_v51, 0.0  ;;  %4125 = vmatprep.subr.bf16.mxu0 %v4620_v53 }
  0xb0   :  { %201 = vadd.xlane.f32.xlu1 %v200_v49  ;;  %204 = vadd.xlane.f32.xlu0 %v203_v52 }
  0xb2   :  { %4126 = vmatpush3.bf16.msra.mxu0 %v4620_v53 }
  0xb4   :  { %207 = vadd.xlane.f32.xlu1 %v206_v28 }
 0x11d   :  { %v163_v56 = vpop.xlane.xlu0 %162 }
 0x11e   :  { %v209_v57 = vmul.f32 0.03125, %v163_v56 }
 0x120   :  { %v225_v58 = vadd.f32 1e-05, %v209_v57 }
 0x121   :  { %v166_v59 = vpop.xlane.xlu1 %165  ;;  %v169_v60 = vpop.xlane.xlu0 %168 }
 0x122   :  { %4627 = vrsqrt.f32 %v225_v58  ;;  %v210_v61 = vmul.f32 0.03125, %v166_v59  ;;  %v211_v62 = vmul.f32 0.03125, %v169_v60 }
 0x124   :  { %v226_v63 = vadd.f32 1e-05, %v210_v61  ;;  %v227_v2 = vadd.f32 1e-05, %v211_v62 }
 0x125   :  { %v172_v3 = vpop.xlane.xlu1 %171  ;;  %v175_v4 = vpop.xlane.xlu0 %174 }
 0x126   :  { %4629 = vrsqrt.f32 %v226_v63  ;;  %v212_v5 = vmul.f32 0.03125, %v172_v3  ;;  %v213_v6 = vmul.f32 0.03125, %v175_v4 }
 0x127   :  { %4631 = vrsqrt.f32 %v227_v2 }
 0x128   :  { %v228_v7 = vadd.f32 1e-05, %v212_v5  ;;  %v229_v8 = vadd.f32 1e-05, %v213_v6 }
 0x129   :  { %v178_v9 = vpop.xlane.xlu1 %177  ;;  %v181_v12 = vpop.xlane.xlu0 %180 }
 0x12a   :  { %4633 = vrsqrt.f32 %v228_v7  ;;  %v214_v13 = vmul.f32 0.03125, %v178_v9  ;;  %v215_v14 = vmul.f32 0.03125, %v181_v12 }
 0x12b   :  { %4635 = vrsqrt.f32 %v229_v8 }
 0x12c   :  { %v230_v15 = vadd.f32 1e-05, %v214_v13  ;;  %v231_v18 = vadd.f32 1e-05, %v215_v14 }
 0x12d   :  { %v184_v19 = vpop.xlane.xlu1 %183  ;;  %v187_v22 = vpop.xlane.xlu0 %186 }
 0x12e   :  { %4637 = vrsqrt.f32 %v230_v15  ;;  %v216_v16 = vmul.f32 0.03125, %v184_v19  ;;  %v217_v26 = vmul.f32 0.03125, %v187_v22 }
 0x12f   :  { %v4628_v27 = vpop.eup %4627  ;;  %4639 = vrsqrt.f32 %v231_v18 }
 0x130   :  { %v232_v30 = vadd.f32 1e-05, %v216_v16  ;;  %v233_v31 = vadd.f32 1e-05, %v217_v26  ;;  %v257_v33 = vmul.f32 %v4628_v27, %v5167_v36 }
 0x131   :  { %v190_v34 = vpop.xlane.xlu1 %189  ;;  %v193_v20 = vpop.xlane.xlu0 %192 }
 0x132   :  { %4641 = vrsqrt.f32 %v232_v30  ;;  %v218_v38 = vmul.f32 0.03125, %v190_v34  ;;  %v219_v39 = vmul.f32 0.03125, %v193_v20  ;;  %v279_v41 = vmul.f32 %v5266_v32, %v257_v33 }
 0x133   :  { %v4630_v40 = vpop.eup %4629  ;;  %4643 = vrsqrt.f32 %v233_v31 }
 0x134   :  { %v4632_v42 = vpop.eup %4631  ;;  %v234_v43 = vadd.f32 1e-05, %v218_v38  ;;  %v235_v46 = vadd.f32 1e-05, %v219_v39  ;;  %v258_v48 = vmul.f32 %v4630_v40, %v5175_v44  ;;  %v301_v53 = vadd.f32 %v5273_v24, %v279_v41 }
 0x135   :  { %v196_v36 = vpop.xlane.xlu1 %195  ;;  %v199_v49 = vpop.xlane.xlu0 %198  ;;  %v259_v50 = vmul.f32 %v4632_v42, %v5169_v37 }
 0x136   :  { %4645 = vrsqrt.f32 %v234_v43  ;;  %v220_v51 = vmul.f32 0.03125, %v196_v36  ;;  %v221_v52 = vmul.f32 0.03125, %v199_v49  ;;  %v280_v28 = vmul.f32 %v5266_v32, %v258_v48 }
 0x137   :  { %v4634_v29 = vpop.eup %4633  ;;  %4647 = vrsqrt.f32 %v235_v46  ;;  %v281_v37 = vmul.f32 %v5266_v32, %v259_v50 }
 0x138   :  { %v4636_v56 = vpop.eup %4635  ;;  %v236_v57 = vadd.f32 1e-05, %v220_v51  ;;  %v237_v58 = vadd.f32 1e-05, %v221_v52  ;;  %v302_v59 = vadd.f32 %v5273_v24, %v280_v28  ;;  %v260_v44 = vmul.f32 %v4634_v29, %v5177_v45 }
 0x139   :  { %v202_v60 = vpop.xlane.xlu1 %201  ;;  %v205_v61 = vpop.xlane.xlu0 %204  ;;  %v261_v62 = vmul.f32 %v4636_v56, %v5185_v54  ;;  %v303_v54 = vadd.f32 %v5273_v24, %v281_v37 }
 0x13a   :  { %4649 = vrsqrt.f32 %v236_v57  ;;  %v222_v63 = vmul.f32 0.03125, %v202_v60  ;;  %v223_v2 = vmul.f32 0.03125, %v205_v61  ;;  %v317_v3 = vpack.c.bf16 %v302_v59, %v301_v53 }
 0x13b   :  { %v4638_v4 = vpop.eup %4637  ;;  %4651 = vrsqrt.f32 %v237_v58  ;;  %v282_v5 = vmul.f32 %v5266_v32, %v260_v44  ;;  %v283_v6 = vmul.f32 %v5266_v32, %v261_v62 }
 0x13c   :  { %v4640_v7 = vpop.eup %4639  ;;  %v238_v8 = vadd.f32 1e-05, %v222_v63  ;;  %v239_v9 = vadd.f32 1e-05, %v223_v2  ;;  %4127 = vmatprep.mubr.msk.bf16.mxu0 %vm63_vm0, %v317_v3  ;;  %v262_v45 = vmul.f32 %v4638_v4, %v5187_v55 }
 0x13d   :  { %v208_v12 = vpop.xlane.xlu1 %207  ;;  %v304_v13 = vadd.f32 %v5273_v24, %v282_v5  ;;  %v263_v14 = vmul.f32 %v4640_v7, %v5196_v0  ;;  %v305_v16 = vadd.f32 %v5273_v24, %v283_v6 }
 0x13e   :  { %4653 = vrsqrt.f32 %v238_v8  ;;  %v224_v15 = vmul.f32 0.03125, %v208_v12  ;;  %v284_v18 = vmul.f32 %v5266_v32, %v262_v45 }
 0x13f   :  { %v4642_v19 = vpop.eup %4641  ;;  %4655 = vrsqrt.f32 %v239_v9  ;;  %v318_v22 = vpack.c.bf16 %v304_v13, %v303_v54  ;;  %v285_v31 = vmul.f32 %v5266_v32, %v263_v14 }
 0x140   :  { %v4644_v26 = vpop.eup %4643  ;;  %v240_v27 = vadd.f32 1e-05, %v224_v15  ;;  %v306_v55 = vadd.f32 %v5273_v24, %v284_v18  ;;  %v264_v30 = vmul.f32 %v4642_v19, %v5199_v1 }
 0x141   :  { %4128 = vmatmul.mubr.msk.bf16.vlgmr.msra.gmra.mxu0 %vm63_vm0, %v318_v22  ;;  %v265_v0 = vmul.f32 %v4644_v26, %v5208_v10  ;;  %v307_v39 = vadd.f32 %v5273_v24, %v285_v31 }
 0x142   :  { %4657 = vrsqrt.f32 %v240_v27  ;;  %v319_v33 = vpack.c.bf16 %v306_v55, %v305_v16  ;;  %v286_v34 = vmul.f32 %v5266_v32, %v264_v30 }
 0x143   :  { %v4646_v20 = vpop.eup %4645  ;;  %v287_v41 = vmul.f32 %v5266_v32, %v265_v0 }
 0x144   :  { %v4648_v38 = vpop.eup %4647  ;;  %4131 = vmatprep.mubr.msk.bf16.mxu0 %vm63_vm0, %v319_v33  ;;  %v308_v40 = vadd.f32 %v5273_v24, %v286_v34  ;;  %v266_v1 = vmul.f32 %v4646_v20, %v5211_v11 }
 0x145   :  { %v267_v42 = vmul.f32 %v4648_v38, %v5220_v23  ;;  %v309_v36 = vadd.f32 %v5273_v24, %v287_v41 }
 0x146   :  { %v320_v43 = vpack.c.bf16 %v308_v40, %v307_v39  ;;  %v288_v10 = vmul.f32 %v5266_v32, %v266_v1 }
 0x147   :  { %v4650_v46 = vpop.eup %4649  ;;  %v289_v51 = vmul.f32 %v5266_v32, %v267_v42 }
 0x148   :  { %v4652_v48 = vpop.eup %4651  ;;  %v310_v49 = vadd.f32 %v5273_v24, %v288_v10  ;;  %v268_v50 = vmul.f32 %v4650_v46, %v5223_v17 }
 0x149   :  { %4132 = vmatmul.mubr.msk.bf16.gmra.mxu0 %vm63_vm0, %v320_v43  ;;  %v269_v11 = vmul.f32 %v4652_v48, %v5232_v35  ;;  %v311_v53 = vadd.f32 %v5273_v24, %v289_v51 }
 0x14a   :  { %v321_v52 = vpack.c.bf16 %v310_v49, %v309_v36  ;;  %v290_v23 = vmul.f32 %v5266_v32, %v268_v50 }
 0x14b   :  { %v4654_v28 = vpop.eup %4653  ;;  %v291_v17 = vmul.f32 %v5266_v32, %v269_v11 }
 0x14c   :  { %v4656_v29 = vpop.eup %4655  ;;  %4135 = vmatprep.mubr.msk.bf16.mxu0 %vm63_vm0, %v321_v52  ;;  %v312_v56 = vadd.f32 %v5273_v24, %v290_v23  ;;  %v270_v57 = vmul.f32 %v4654_v28, %v5235_v21 }
 0x14d   :  { %v271_v58 = vmul.f32 %v4656_v29, %v5244_v47  ;;  %v313_v60 = vadd.f32 %v5273_v24, %v291_v17 }
 0x14e   :  { %v322_v59 = vpack.c.bf16 %v312_v56, %v311_v53  ;;  %v292_v35 = vmul.f32 %v5266_v32, %v270_v57 }
 0x14f   :  { %v4658_v44 = vpop.eup %4657  ;;  %v293_v62 = vmul.f32 %v5266_v32, %v271_v58 }
 0x150   :  { %v314_v61 = vadd.f32 %v5273_v24, %v292_v35  ;;  %v272_v37 = vmul.f32 %v4658_v44, %v5247_v25  ;;  %v3845_v25 = vld [vmem:[%s7063_s4] ss:$0 sm:$0xff]  ;;  %s4995_s4 = smov 120  }
 0x151   :  { %4136 = vmatmul.mubr.msk.bf16.gmra.mxu0 %vm63_vm0, %v322_v59  ;;  %v315_v47 = vadd.f32 %v5273_v24, %v293_v62 }
 0x152   :  { %v323_v63 = vpack.c.bf16 %v314_v61, %v313_v60  ;;  %v294_v21 = vmul.f32 %v5266_v32, %v272_v37 }
 0x154   :  { %4139 = vmatprep.mubr.msk.bf16.mxu0 %vm63_vm0, %v323_v63  ;;  %v316_v2 = vadd.f32 %v5273_v24, %v294_v21 }
 0x156   :  { %v324_v3 = vpack.c.bf16 %v316_v2, %v315_v47 }
 0x159   :  { %4140 = vmatmul.mubr.msk.bf16.gmra.mxu0 %vm63_vm0, %v324_v3 }
 0x201   :  { %v4129_v4 = vpop.f32.mrf.mxu0 }
 0x202   :  { %v415_v55 = vadd.f32 %v4129_v4, %v3845_v25 }
 0x203   :  { %v406_v5 = vpop.f32.mrf.mxu0 }
 0x204   :  { %v407_v8 = vadd.f32 %v3845_v25, %v406_v5 }
 0x205   :  { %v4130_v6 = vpop.f32.mrf.mxu0 }
 0x206   :  { %v418_v16 = vadd.f32 %v4130_v6, %v3845_v25 }
 0x207   :  { %v409_v7 = vpop.f32.mrf.mxu0 }
 0x208   :  { %v410_v9 = vadd.f32 %v3845_v25, %v409_v7  ;;  %v5344_v31 = vpack.c.bf16 %v418_v16, %v415_v55 }
 0x209   :  { %v4133_v32 = vpop.f32.mrf.mxu0 }
 0x20a   :  { %v5332_v45 = vpack.c.bf16 %v410_v9, %v407_v8  ;;  %v431_v54 = vadd.f32 %v4133_v32, %v3845_v25 }
 0x20b   :  { %v422_v12 = vpop.f32.mrf.mxu0 }
 0x20c   :  { %4151 = vmatprep.mubr.msk.bf16.mxu1 %vm541_vm1, %v5332_v45  ;;  %v423_v15 = vadd.f32 %v3845_v25, %v422_v12 }
 0x20d   :  { %v4134_v24 = vpop.f32.mrf.mxu0 }
 0x20e   :  { %v434_v13 = vadd.f32 %v4134_v24, %v3845_v25 }
 0x20f   :  { %v425_v14 = vpop.f32.mrf.mxu0 }
 0x210   :  { %v5336_v18 = vpack.c.bf16 %v434_v13, %v431_v54  ;;  %v426_v19 = vadd.f32 %v3845_v25, %v425_v14 }
 0x211   :  { %v4137_v22 = vpop.f32.mrf.mxu0 }
 0x212   :  { %v5338_v26 = vpack.c.bf16 %v426_v19, %v423_v15  ;;  %491 = vrot.lane.b32.xlu0 %v5336_v18, %s4995_s4  ;;  %v447_v49 = vadd.f32 %v4137_v22, %v3845_v25 }
 0x213   :  { %v438_v27 = vpop.f32.mrf.mxu0 }
 0x214   :  { %489 = vrot.lane.b32.xlu1 %v5338_v26, %s4995_s4  ;;  %v439_v33 = vadd.f32 %v3845_v25, %v438_v27 }
 0x215   :  { %v4138_v30 = vpop.f32.mrf.mxu0 }
 0x216   :  { %485 = vrot.lane.b32.xlu0 %v5332_v45, %s4995_s4  ;;  %v450_v48 = vadd.f32 %v4138_v30, %v3845_v25 }
 0x217   :  { %v441_v0 = vpop.f32.mrf.mxu0 }
 0x218   :  { %v442_v34 = vadd.f32 %v3845_v25, %v441_v0  ;;  %487 = vrot.lane.b32.xlu1 %v5344_v31, %s4995_s4  ;;  %v5369_v50 = vpack.c.bf16 %v450_v48, %v447_v49 }
 0x219   :  { %v4141_v20 = vpop.f32.mrf.mxu0 }
 0x21a   :  { %v5350_v38 = vpack.c.bf16 %v442_v34, %v439_v33  ;;  %539 = vrot.lane.b32.xlu0 %v5336_v18, %s4996_s30  ;;  %v463_v1 = vadd.f32 %v4141_v20, %v3845_v25 }
 0x21b   :  { %v454_v39 = vpop.f32.mrf.mxu0 }
 0x21c   :  { %4167 = vmatprep.mubr.msk.bf16.mxu0 %vm541_vm1, %v5350_v38  ;;  %v455_v46 = vadd.f32 %v3845_v25, %v454_v39 }
 0x21d   :  { %v4142_v40 = vpop.f32.mrf.mxu0 }
 0x21e   :  { %v466_v41 = vadd.f32 %v4142_v40, %v3845_v25  ;;  %507 = vrot.lane.b32.xlu0 %v5336_v18, %s4997_s14 }
 0x21f   :  { %v457_v42 = vpop.f32.mrf.mxu0 }
 0x220   :  { %v5357_v43 = vpack.c.bf16 %v466_v41, %v463_v1  ;;  %v458_v10 = vadd.f32 %v3845_v25, %v457_v42 }
 0x222   :  { %493 = vrot.lane.b32.xlu0 %v5350_v38, %s4995_s4  ;;  %499 = vrot.lane.b32.xlu1 %v5357_v43, %s4995_s4  ;;  %v5363_v36 = vpack.c.bf16 %v458_v10, %v455_v46 }
 0x226   :  { %535 = vrot.lane.b32.xlu0 %v5344_v31, %s4996_s30  ;;  %497 = vrot.lane.b32.xlu1 %v5363_v36, %s4995_s4 }
 0x22a   :  { %503 = vrot.lane.b32.xlu0 %v5344_v31, %s4997_s14  ;;  %495 = vrot.lane.b32.xlu1 %v5369_v50, %s4995_s4 }
 0x22e   :  { %533 = vrot.lane.b32.xlu0 %v5332_v45, %s4996_s30  ;;  %537 = vrot.lane.b32.xlu1 %v5338_v26, %s4996_s30 }
 0x232   :  { %501 = vrot.lane.b32.xlu0 %v5332_v45, %s4997_s14  ;;  %505 = vrot.lane.b32.xlu1 %v5338_v26, %s4997_s14 }
 0x236   :  { %633 = vrot.lane.b32.xlu0 %v5369_v50, %s4996_s30  ;;  %637 = vrot.lane.b32.xlu1 %v5357_v43, %s4996_s30 }
 0x23a   :  { %511 = vrot.lane.b32.xlu0 %v5369_v50, %s4997_s14  ;;  %515 = vrot.lane.b32.xlu1 %v5357_v43, %s4997_s14 }
 0x23e   :  { %631 = vrot.lane.b32.xlu0 %v5350_v38, %s4996_s30  ;;  %635 = vrot.lane.b32.xlu1 %v5363_v36, %s4996_s30 }
 0x242   :  { %509 = vrot.lane.b32.xlu0 %v5350_v38, %s4997_s14  ;;  %513 = vrot.lane.b32.xlu1 %v5363_v36, %s4997_s14 }
 0x284   :  { %v5392_v51 = vpop.permute.xlu0 %491 }
 0x285   :  { %734 = vrot.lane.b32.xlu1 %v5392_v51, %s4996_s30 }
 0x286   :  { %v5396_v11 = vpop.permute.xlu1 %489 }
 0x288   :  { %v5398_v52 = vpop.permute.xlu0 %485 }
 0x289   :  { %523 = vrot.lane.b32.xlu1 %v5336_v18, %s4998_s15 }
 0x28a   :  { %v5402_v23 = vpop.permute.xlu1 %487 }
 0x28b   :  { %730 = vrot.lane.b32.xlu0 %v5402_v23, %s4996_s30 }
 0x28c   :  { %v540_v28 = vpop.permute.xlu0 %539 }
 0x28d   :  { %732 = vrot.lane.b32.xlu1 %v5396_v11, %s4996_s30  ;;  %4459 = vmatprep.subr.msk.bf16.mxu1 %vm541_vm1, %v540_v28  ;;  %v564_v29 = vsel %vm541_vm1, %v540_v28, 0 }
 0x28e   :  { %4144 = vmatpush3.bf16.xpose.msra.mxu1 %v564_v29 }
 0x28f   :  { %519 = vrot.lane.b32.xlu0 %v5344_v31, %s4998_s15 }
 0x290   :  { %v5412_v53 = vpop.permute.xlu0 %507 }
 0x291   :  { %521 = vrot.lane.b32.xlu1 %v5338_v26, %s4998_s15 }
 0x293   :  { %728 = vrot.lane.b32.xlu0 %v5398_v52, %s4996_s30 }
 0x294   :  { %v5418_v56 = vpop.permute.xlu1 %499  ;;  %v5420_v57 = vpop.permute.xlu0 %493 }
 0x295   :  { %831 = vrot.lane.b32.xlu1 %v5418_v56, %s4996_s30 }
 0x297   :  { %517 = vrot.lane.b32.xlu0 %v5332_v45, %s4998_s15 }
 0x298   :  { %v5426_v17 = vpop.permute.xlu1 %497  ;;  %v536_v58 = vpop.permute.xlu0 %535 }
 0x299   :  { %531 = vrot.lane.b32.xlu1 %v5357_v43, %s4998_s15  ;;  %v558_v2 = vsel %vm541_vm1, %v536_v58, 0 }
 0x29c   :  { %v5430_v59 = vpop.permute.xlu1 %495  ;;  %v5432_v35 = vpop.permute.xlu0 %503 }
 0x29d   :  { %829 = vrot.lane.b32.xlu1 %v5426_v17, %s4996_s30  ;;  %827 = vrot.lane.b32.xlu0 %v5430_v59, %s4996_s30 }
 0x2a0   :  { %v538_v44 = vpop.permute.xlu1 %537  ;;  %v534_v60 = vpop.permute.xlu0 %533 }
 0x2a1   :  { %529 = vrot.lane.b32.xlu1 %v5363_v36, %s4998_s15  ;;  %527 = vrot.lane.b32.xlu0 %v5369_v50, %s4998_s15  ;;  %v561_v61 = vsel %vm541_vm1, %v538_v44, 0  ;;  %v555_v7 = vsel %vm541_vm1, %v534_v60, 0 }
 0x2a2   :  { %4460 = vmatprep.subr.msk.bf16.mxu1 %vm541_vm1, %v538_v44 }
 0x2a3   :  { %4146 = vmatpush3.bf16.xpose.msra.mxu1 %v561_v61 }
 0x2a4   :  { %4461 = vmatprep.subr.msk.bf16.mxu1 %vm541_vm1, %v536_v58  ;;  %v5445_v37 = vpop.permute.xlu1 %505  ;;  %v5447_v62 = vpop.permute.xlu0 %501 }
 0x2a5   :  { %926 = vrot.lane.b32.xlu0 %v5445_v37, %s4996_s30  ;;  %928 = vrot.lane.b32.xlu1 %v5412_v53, %s4996_s30 }
 0x2a8   :  { %v638_v63 = vpop.permute.xlu1 %637  ;;  %v634_v21 = vpop.permute.xlu0 %633 }
 0x2a9   :  { %4463 = vmatprep.subr.msk.bf16.mxu0 %vm541_vm1, %v638_v63  ;;  %825 = vrot.lane.b32.xlu1 %v5420_v57, %s4996_s30  ;;  %v661_v47 = vsel %vm541_vm1, %v638_v63, 0  ;;  %v655_v32 = vsel %vm541_vm1, %v634_v21, 0 }
 0x2aa   :  { %924 = vrot.lane.b32.xlu0 %v5432_v35, %s4996_s30  ;;  %4160 = vmatpush3.bf16.xpose.msra.mxu0 %v661_v47 }
 0x2ab   :  { %4148 = vmatpush3.bf16.xpose.msra.mxu1 %v558_v2 }
 0x2ac   :  { %4462 = vmatprep.subr.msk.bf16.mxu1 %vm541_vm1, %v534_v60  ;;  %v5461_v3 = vpop.permute.xlu1 %515  ;;  %v5463_v4 = vpop.permute.xlu0 %511 }
 0x2ad   :  { %525 = vrot.lane.b32.xlu1 %v5350_v38, %s4998_s15 }
 0x2ae   :  { %922 = vrot.lane.b32.xlu0 %v5447_v62, %s4996_s30 }
 0x2b0   :  { %v636_v5 = vpop.permute.xlu1 %635  ;;  %v632_v6 = vpop.permute.xlu0 %631 }
 0x2b1   :  { %4464 = vmatprep.subr.msk.bf16.mxu0 %vm541_vm1, %v636_v5  ;;  %1025 = vrot.lane.b32.xlu1 %v5461_v3, %s4996_s30  ;;  %v658_v25 = vsel %vm541_vm1, %v636_v5, 0  ;;  %v652_v12 = vsel %vm541_vm1, %v632_v6, 0 }
 0x2b2   :  { %1021 = vrot.lane.b32.xlu0 %v5463_v4, %s4996_s30  ;;  %4162 = vmatpush3.bf16.xpose.msra.mxu0 %v658_v25 }
 0x2b3   :  { %4150 = vmatpush3.bf16.xpose.msra.mxu1 %v555_v7  ;;  %4465 = vmatprep.subr.msk.bf16.mxu0 %vm541_vm1, %v634_v21 }
 0x2b4   :  { %v5477_v8 = vpop.permute.xlu1 %513  ;;  %v5479_v9 = vpop.permute.xlu0 %509 }
 0x2b5   :  { %1023 = vrot.lane.b32.xlu1 %v5477_v8, %s4996_s30 }
 0x2b6   :  { %1019 = vrot.lane.b32.xlu0 %v5479_v9, %s4996_s30 }
 0x2ba   :  { %4152 = vmatmul.mubr.msk.bf16.vlgmr.msra.gmra.mxu1 %vm541_vm1, %v5344_v31  ;;  %4164 = vmatpush3.bf16.xpose.msra.mxu0 %v655_v32 }
 0x2bb   :  { %4155 = vmatprep.mubr.msk.bf16.mxu1 %vm541_vm1, %v5338_v26  ;;  %4466 = vmatprep.subr.msk.bf16.mxu0 %vm541_vm1, %v632_v6 }
 0x2c2   :  { %4156 = vmatmul.mubr.msk.bf16.gmra.mxu1 %vm541_vm1, %v5336_v18  ;;  %4166 = vmatpush3.bf16.xpose.msra.mxu0 %v652_v12 }
 0x2c3   :  { %4183 = vmatprep.mubr.msk.bf16.mxu1 %vm541_vm1, %v5398_v52 }
 0x2c9   :  { %4168 = vmatmul.mubr.msk.bf16.vlgmr.msra.gmra.mxu0 %vm541_vm1, %v5369_v50 }
 0x2ca   :  { %4171 = vmatprep.mubr.msk.bf16.mxu0 %vm541_vm1, %v5363_v36 }
 0x2d1   :  { %4172 = vmatmul.mubr.msk.bf16.gmra.mxu0 %vm541_vm1, %v5357_v43 }
 0x2d2   :  { %4199 = vmatprep.mubr.msk.bf16.mxu0 %vm541_vm1, %v5420_v57 }
 0x2f7   :  { %v735_v24 = vpop.permute.xlu1 %734 }
 0x2f8   :  { %4467 = vmatprep.subr.msk.bf16.mxu1 %vm541_vm1, %v735_v24  ;;  %v758_v54 = vsel %vm541_vm1, %v735_v24, 0 }
 0x2f9   :  { %4176 = vmatpush3.bf16.xpose.msra.mxu1 %v758_v54 }
 0x2fb   :  { %v5506_v13 = vpop.permute.xlu1 %523 }
 0x2fc   :  { %1122 = vrot.lane.b32.xlu1 %v5506_v13, %s4996_s30 }
 0x2fd   :  { %v731_v14 = vpop.permute.xlu0 %730 }
 0x2fe   :  { %v752_v30 = vsel %vm541_vm1, %v731_v14, 0 }
 0x2ff   :  { %v733_v15 = vpop.permute.xlu1 %732 }
 0x300   :  { %4468 = vmatprep.subr.msk.bf16.mxu1 %vm541_vm1, %v733_v15  ;;  %v755_v19 = vsel %vm541_vm1, %v733_v15, 0 }
 0x301   :  { %4178 = vmatpush3.bf16.xpose.msra.mxu1 %v755_v19  ;;  %v5512_v22 = vpop.permute.xlu0 %519 }
 0x302   :  { %4469 = vmatprep.subr.msk.bf16.mxu1 %vm541_vm1, %v731_v14  ;;  %1118 = vrot.lane.b32.xlu0 %v5512_v22, %s4996_s30 }
 0x303   :  { %v5517_v16 = vpop.permute.xlu1 %521 }
 0x304   :  { %1120 = vrot.lane.b32.xlu1 %v5517_v16, %s4996_s30 }
 0x305   :  { %v729_v27 = vpop.permute.xlu0 %728 }
 0x306   :  { %v749_v40 = vsel %vm541_vm1, %v729_v27, 0 }
 0x307   :  { %v832_v55 = vpop.permute.xlu1 %831 }
 0x308   :  { %4471 = vmatprep.subr.msk.bf16.mxu0 %vm541_vm1, %v832_v55  ;;  %v855_v0 = vsel %vm541_vm1, %v832_v55, 0 }
 0x309   :  { %4180 = vmatpush3.bf16.xpose.msra.mxu1 %v752_v30  ;;  %4192 = vmatpush3.bf16.xpose.msra.mxu0 %v855_v0  ;;  %v5524_v33 = vpop.permute.xlu0 %517 }
 0x30a   :  { %4470 = vmatprep.subr.msk.bf16.mxu1 %vm541_vm1, %v729_v27  ;;  %1116 = vrot.lane.b32.xlu0 %v5524_v33, %s4996_s30 }
 0x30b   :  { %v5529_v34 = vpop.permute.xlu1 %531 }
 0x30c   :  { %1219 = vrot.lane.b32.xlu1 %v5529_v34, %s4996_s30 }
 0x30f   :  { %v830_v20 = vpop.permute.xlu1 %829  ;;  %v828_v39 = vpop.permute.xlu0 %827 }
 0x310   :  { %4472 = vmatprep.subr.msk.bf16.mxu0 %vm541_vm1, %v830_v20  ;;  %v852_v1 = vsel %vm541_vm1, %v830_v20, 0  ;;  %v849_v48 = vsel %vm541_vm1, %v828_v39, 0 }
 0x311   :  { %4182 = vmatpush3.bf16.xpose.msra.mxu1 %v749_v40  ;;  %4194 = vmatpush3.bf16.xpose.msra.mxu0 %v852_v1 }
 0x312   :  { %4473 = vmatprep.subr.msk.bf16.mxu0 %vm541_vm1, %v828_v39 }
 0x313   :  { %v5537_v41 = vpop.permute.xlu1 %529  ;;  %v5539_v42 = vpop.permute.xlu0 %527 }
 0x314   :  { %7122 = vst [vmem:[#allocation2_spill] sm:$0xff] %v5539_v42  ;;  %1215 = vrot.lane.b32.xlu0 %v5539_v42, %s4996_s30 }
 0x317   :  { %v929_v10 = vpop.permute.xlu1 %928  ;;  %v927_v49 = vpop.permute.xlu0 %926 }
 0x318   :  { %4184 = vmatmul.mubr.msk.bf16.vlgmr.msra.gmra.mxu1 %vm541_vm1, %v5402_v23  ;;  %4475 = vmatprep.subr.msk.bf16.mxu1 %vm541_vm1, %v929_v10  ;;  %v952_v46 = vsel %vm541_vm1, %v929_v10, 0  ;;  %v949_v58 = vsel %vm541_vm1, %v927_v49, 0 }
 0x319   :  { %2053 = vrot.lane.b32.xlu0 %v5336_v18, %s4999_s16  ;;  %4187 = vmatprep.mubr.msk.bf16.mxu1 %vm541_vm1, %v5396_v11 }
 0x31a   :  { %4196 = vmatpush3.bf16.xpose.msra.mxu0 %v849_v48  ;;  %4208 = vmatpush3.bf16.xpose.msra.mxu1 %v952_v46 }
 0x31b   :  { %4476 = vmatprep.subr.msk.bf16.mxu1 %vm541_vm1, %v927_v49  ;;  %v826_v28 = vpop.permute.xlu1 %825 }
 0x31c   :  { %4474 = vmatprep.subr.msk.bf16.mxu0 %vm541_vm1, %v826_v28  ;;  %v846_v18 = vsel %vm541_vm1, %v826_v28, 0  ;;  %v925_v44 = vpop.permute.xlu0 %924 }
 0x31d   :  { %2047 = vrot.lane.b32.xlu0 %v5332_v45, %s4999_s16 }
 0x31f   :  { %v5556_v29 = vpop.permute.xlu1 %525 }
 0x320   :  { %7123 = vst [vmem:[#allocation3_spill] sm:$0xff] %v5556_v29  ;;  %1213 = vrot.lane.b32.xlu1 %v5556_v29, %s4996_s30  ;;  %4188 = vmatmul.mubr.msk.bf16.gmra.mxu1 %vm541_vm1, %v5392_v51  ;;  %v923_v60 = vpop.permute.xlu0 %922 }
 0x321   :  { %2140 = vrot.lane.b32.xlu0 %v5363_v36, %s4999_s16  ;;  %4215 = vmatprep.mubr.msk.bf16.mxu1 %vm541_vm1, %v5447_v62  ;;  %v946_v36 = vsel %vm541_vm1, %v925_v44, 0 }
 0x322   :  { %4198 = vmatpush3.bf16.xpose.msra.mxu0 %v846_v18  ;;  %4210 = vmatpush3.bf16.xpose.msra.mxu1 %v949_v58 }
 0x323   :  { %4477 = vmatprep.subr.msk.bf16.mxu1 %vm541_vm1, %v925_v44  ;;  %v1026_v45 = vpop.permute.xlu1 %1025 }
 0x324   :  { %2051 = vrot.lane.b32.xlu1 %v5338_v26, %s4999_s16  ;;  %4479 = vmatprep.subr.msk.bf16.mxu0 %vm541_vm1, %v1026_v45  ;;  %v1049_v26 = vsel %vm541_vm1, %v1026_v45, 0 }
 0x325   :  { %2136 = vrot.lane.b32.xlu0 %v5350_v38, %s4999_s16 }
 0x327   :  { %v1024_v61 = vpop.permute.xlu1 %1023 }
 0x328   :  { %2049 = vrot.lane.b32.xlu1 %v5344_v31, %s4999_s16  ;;  %v943_v31 = vsel %vm541_vm1, %v923_v60, 0  ;;  %v1046_v38 = vsel %vm541_vm1, %v1024_v61, 0 }
 0x329   :  { %4200 = vmatmul.mubr.msk.bf16.vlgmr.msra.gmra.mxu0 %vm541_vm1, %v5430_v59  ;;  %2314 = vrot.lane.b32.xlu0 %v5420_v57, %s4999_s16 }
 0x32a   :  { %4203 = vmatprep.mubr.msk.bf16.mxu0 %vm541_vm1, %v5426_v17  ;;  %4212 = vmatpush3.bf16.xpose.msra.mxu1 %v946_v36 }
 0x32b   :  { %4224 = vmatpush3.bf16.xpose.msra.mxu0 %v1049_v26  ;;  %4478 = vmatprep.subr.msk.bf16.mxu1 %vm541_vm1, %v923_v60 }
 0x32c   :  { %4480 = vmatprep.subr.msk.bf16.mxu0 %vm541_vm1, %v1024_v61  ;;  %2142 = vrot.lane.b32.xlu1 %v5357_v43, %s4999_s16  ;;  %v1022_v43 = vpop.permute.xlu0 %1021 }
 0x32d   :  { %2492 = vrot.lane.b32.xlu0 %v5479_v9, %s4999_s16  ;;  %v1043_v57 = vsel %vm541_vm1, %v1022_v43, 0 }
 0x330   :  { %1217 = vrot.lane.b32.xlu1 %v5537_v41, %s4996_s30 }
 0x331   :  { %4204 = vmatmul.mubr.msk.bf16.gmra.mxu0 %vm541_vm1, %v5418_v56  ;;  %2318 = vrot.lane.b32.xlu0 %v5426_v17, %s4999_s16  ;;  %v1020_v17 = vpop.permute.xlu0 %1019 }
 0x332   :  { %4214 = vmatpush3.bf16.xpose.msra.mxu1 %v943_v31  ;;  %4231 = vmatprep.mubr.msk.bf16.mxu0 %vm541_vm1, %v5479_v9 }
 0x333   :  { %4226 = vmatpush3.bf16.xpose.msra.mxu0 %v1046_v38 }
 0x334   :  { %4481 = vmatprep.subr.msk.bf16.mxu0 %vm541_vm1, %v1022_v43  ;;  %2231 = vrot.lane.b32.xlu1 %v5392_v51, %s4999_s16  ;;  %v1040_v51 = vsel %vm541_vm1, %v1020_v17, 0 }
 0x335   :  { %2496 = vrot.lane.b32.xlu0 %v5477_v8, %s4999_s16 }
 0x338   :  { %2229 = vrot.lane.b32.xlu1 %v5396_v11, %s4999_s16 }
 0x339   :  { %4216 = vmatmul.mubr.msk.bf16.vlgmr.msra.gmra.mxu1 %vm541_vm1, %v5432_v35 }
 0x33a   :  { %4219 = vmatprep.mubr.msk.bf16.mxu1 %vm541_vm1, %v5445_v37 }
 0x33b   :  { %4228 = vmatpush3.bf16.xpose.msra.mxu0 %v1043_v57 }
 0x33c   :  { %4482 = vmatprep.subr.msk.bf16.mxu0 %vm541_vm1, %v1020_v17  ;;  %2138 = vrot.lane.b32.xlu1 %v5369_v50, %s4999_s16 }
 0x340   :  { %2227 = vrot.lane.b32.xlu1 %v5402_v23, %s4999_s16 }
 0x341   :  { %4220 = vmatmul.mubr.msk.bf16.gmra.mxu1 %vm541_vm1, %v5412_v53 }
 0x342   :  { %4247 = vmatprep.mubr.msk.bf16.mxu1 %vm541_vm1, %v5524_v33 }
 0x343   :  { %4230 = vmatpush3.bf16.xpose.msra.mxu0 %v1040_v51 }
 0x344   :  { %2225 = vrot.lane.b32.xlu1 %v5398_v52, %s4999_s16 }
 0x348   :  { %2320 = vrot.lane.b32.xlu1 %v5418_v56, %s4999_s16 }
 0x34a   :  { %4232 = vmatmul.mubr.msk.bf16.vlgmr.msra.gmra.mxu0 %vm541_vm1, %v5463_v4 }
 0x34b   :  { %4235 = vmatprep.mubr.msk.bf16.mxu0 %vm541_vm1, %v5477_v8 }
 0x34c   :  { %2409 = vrot.lane.b32.xlu1 %v5412_v53, %s4999_s16 }
 0x350   :  { %2407 = vrot.lane.b32.xlu1 %v5445_v37, %s4999_s16 }
 0x352   :  { %4236 = vmatmul.mubr.msk.bf16.gmra.mxu0 %vm541_vm1, %v5461_v3 }
 0x353   :  { %4263 = vmatprep.mubr.msk.bf16.mxu0 %vm541_vm1, %v5556_v29 }
 0x354   :  { %2316 = vrot.lane.b32.xlu1 %v5430_v59, %s4999_s16 }
 0x358   :  { %2405 = vrot.lane.b32.xlu1 %v5432_v35, %s4999_s16 }
 0x35c   :  { %2403 = vrot.lane.b32.xlu1 %v5447_v62, %s4999_s16 }
 0x360   :  { %2498 = vrot.lane.b32.xlu1 %v5461_v3, %s4999_s16 }
 0x364   :  { %2587 = vrot.lane.b32.xlu1 %v5506_v13, %s4999_s16 }
 0x368   :  { %2585 = vrot.lane.b32.xlu1 %v5517_v16, %s4999_s16 }
 0x36c   :  { %2494 = vrot.lane.b32.xlu1 %v5463_v4, %s4999_s16 }
 0x36e   :  { %v1123_v50 = vpop.permute.xlu1 %1122 }
 0x36f   :  { %4483 = vmatprep.subr.msk.bf16.mxu1 %vm541_vm1, %v1123_v50  ;;  %v1146_v11 = vsel %vm541_vm1, %v1123_v50, 0 }
 0x370   :  { %2583 = vrot.lane.b32.xlu1 %v5512_v22, %s4999_s16  ;;  %4240 = vmatpush3.bf16.xpose.msra.mxu1 %v1146_v11 }
 0x374   :  { %2581 = vrot.lane.b32.xlu1 %v5524_v33, %s4999_s16  ;;  %v1119_v53 = vpop.permute.xlu0 %1118 }
 0x375   :  { %v1140_v21 = vsel %vm541_vm1, %v1119_v53, 0 }
 0x376   :  { %v1121_v52 = vpop.permute.xlu1 %1120 }
 0x377   :  { %4484 = vmatprep.subr.msk.bf16.mxu1 %vm541_vm1, %v1121_v52  ;;  %v1143_v23 = vsel %vm541_vm1, %v1121_v52, 0 }
 0x378   :  { %2676 = vrot.lane.b32.xlu1 %v5529_v34, %s4999_s16  ;;  %4242 = vmatpush3.bf16.xpose.msra.mxu1 %v1143_v23 }
 0x379   :  { %4485 = vmatprep.subr.msk.bf16.mxu1 %vm541_vm1, %v1119_v53 }
 0x37a   :  { %v5663_v56 = vpop.f32.mrf.mxu1 }
 0x37b   :  { %v1317_v59 = vsel %vm1310_vm2, %v5663_v56, -inf }
 0x37c   :  { %v5667_v35 = vpop.f32.mrf.mxu1  ;;  %1318 = vmax.xlane.f32.xlu0 %v1317_v59  ;;  %v1117_v2 = vpop.permute.xlu0 %1116 }
 0x37d   :  { %v1311_v63 = vsel %vm1310_vm2, %v5667_v35, -inf  ;;  %v1137_v25 = vsel %vm541_vm1, %v1117_v2, 0 }
 0x37e   :  { %v5669_v37 = vpop.f32.mrf.mxu1  ;;  %v1220_v62 = vpop.permute.xlu1 %1219 }
 0x37f   :  { %4487 = vmatprep.subr.msk.bf16.mxu0 %vm541_vm1, %v1220_v62  ;;  %v1243_v47 = vsel %vm541_vm1, %v1220_v62, 0  ;;  %v1320_v4 = vsel %vm1310_vm2, %v5669_v37, -inf }
 0x380   :  { %v5676_v3 = vpop.f32.mrf.mxu1  ;;  %1312 = vmax.xlane.f32.xlu0 %v1311_v63  ;;  %4244 = vmatpush3.bf16.xpose.msra.mxu1 %v1140_v21 }
 0x381   :  { %4256 = vmatpush3.bf16.xpose.msra.mxu0 %v1243_v47  ;;  %4486 = vmatprep.subr.msk.bf16.mxu1 %vm541_vm1, %v1117_v2  ;;  %v1314_v0 = vsel %vm1310_vm2, %v5676_v3, -inf }
 0x382   :  { %v5681_v5 = vpop.f32.mrf.mxu1 }
 0x383   :  { %v1329_v6 = vsel %vm1310_vm2, %v5681_v5, -inf }
 0x384   :  { %1321 = vmax.xlane.f32.xlu0 %v1320_v4  ;;  %v5686_v7 = vpop.f32.mrf.mxu1 }
 0x385   :  { %v1323_v32 = vsel %vm1310_vm2, %v5686_v7, -inf }
 0x386   :  { %v5718_v33 = vpop.f32.mrf.mxu1  ;;  %v1216_v46 = vpop.permute.xlu0 %1215 }
 0x387   :  { %v1332_v39 = vsel %vm1310_vm2, %v5718_v33, -inf  ;;  %v1237_v58 = vsel %vm541_vm1, %v1216_v46, 0 }
 0x388   :  { %1330 = vmax.xlane.f32.xlu0 %v1329_v6  ;;  %4246 = vmatpush3.bf16.xpose.msra.mxu1 %v1137_v25 }
 0x389   :  { %v5688_v8 = vpop.f32.mrf.mxu0 }
 0x38a   :  { %v1341_v24 = vsel %vm1310_vm2, %v5688_v8, -inf }
 0x38b   :  { %v5690_v9 = vpop.f32.mrf.mxu0  ;;  %v2054_v38 = vpop.permute.xlu0 %2053 }
 0x38c   :  { %1324 = vmax.xlane.f32.xlu0 %v1323_v32  ;;  %v1335_v15 = vsel %vm1310_vm2, %v5690_v9, -inf }
 0x38d   :  { %v5694_v12 = vpop.f32.mrf.mxu0 }
 0x38e   :  { %v1344_v49 = vsel %vm1310_vm2, %v5694_v12, -inf }
 0x38f   :  { %4248 = vmatmul.mubr.msk.bf16.vlgmr.msra.gmra.mxu1 %vm541_vm1, %v5512_v22  ;;  %v5700_v54 = vpop.f32.mrf.mxu0  ;;  %v2048_v51 = vpop.permute.xlu0 %2047 }
 0x390   :  { %1342 = vmax.xlane.f32.xlu0 %v1341_v24  ;;  %4251 = vmatprep.mubr.msk.bf16.mxu1 %vm541_vm1, %v5517_v16  ;;  %v1338_v18 = vsel %vm1310_vm2, %v5700_v54, -inf }
 0x391   :  { %v5706_v19 = vpop.f32.mrf.mxu0 }
 0x392   :  { %v1214_v14 = vpop.permute.xlu1 %1213  ;;  %v1353_v55 = vsel %vm1310_vm2, %v5706_v19, -inf }
 0x393   :  { %v5712_v22 = vpop.f32.mrf.mxu0  ;;  %v1234_v31 = vsel %vm541_vm1, %v1214_v14, 0  ;;  %v5782_v2 = vpop.permute.xlu0 %2140 }
 0x394   :  { %1336 = vmax.xlane.f32.xlu0 %v1335_v15  ;;  %v1347_v16 = vsel %vm1310_vm2, %v5712_v22, -inf }
 0x395   :  { %v5736_v44 = vpop.f32.mrf.mxu0 }
 0x396   :  { %v2052_v27 = vpop.permute.xlu1 %2051  ;;  %v1356_v36 = vsel %vm1310_vm2, %v5736_v44, -inf }
 0x397   :  { %4252 = vmatmul.mubr.msk.bf16.gmra.mxu1 %vm541_vm1, %v5506_v13  ;;  %v5724_v13 = vpop.f32.mrf.mxu1  ;;  %v5743_v60 = vpop.f32.mrf.mxu0 }
 0x398   :  { %1354 = vmax.xlane.f32.xlu0 %v1353_v55  ;;  %v1326_v1 = vsel %vm1310_vm2, %v5724_v13, -inf  ;;  %v1350_v61 = vsel %vm1310_vm2, %v5743_v60, -inf }
 0x39a   :  { %v2050_v30 = vpop.permute.xlu1 %2049 }
 0x39c   :  { %1348 = vmax.xlane.f32.xlu0 %v1347_v16  ;;  %1315 = vmax.xlane.f32.xlu1 %v1314_v0 }
 0x39e   :  { %v5720_v20 = vpop.permute.xlu1 %2142 }
 0x3a0   :  { %1333 = vmax.xlane.f32.xlu1 %v1332_v39 }
 0x3a2   :  { %v1218_v40 = vpop.permute.xlu1 %1217 }
 0x3a3   :  { %4488 = vmatprep.subr.msk.bf16.mxu0 %vm541_vm1, %v1218_v40  ;;  %v1240_v10 = vsel %vm541_vm1, %v1218_v40, 0 }
 0x3a4   :  { %1327 = vmax.xlane.f32.xlu1 %v1326_v1  ;;  %4258 = vmatpush3.bf16.xpose.msra.mxu0 %v1240_v10 }
 0x3a5   :  { %4489 = vmatprep.subr.msk.bf16.mxu0 %vm541_vm1, %v1216_v46 }
 0x3a6   :  { %v2232_v48 = vpop.permute.xlu1 %2231 }
 0x3a7   :  { %4303 = vmatprep.subr.bf16.mxu1 %v2232_v48 }
 0x3a8   :  { %1345 = vmax.xlane.f32.xlu1 %v1344_v49  ;;  %4304 = vmatpush3.bf16.msra.mxu1 %v2232_v48 }
 0x3aa   :  { %v2230_v28 = vpop.permute.xlu1 %2229 }
 0x3ab   :  { %4305 = vmatprep.subr.bf16.mxu1 %v2230_v28 }
 0x3ac   :  { %1339 = vmax.xlane.f32.xlu1 %v1338_v18  ;;  %4260 = vmatpush3.bf16.xpose.msra.mxu0 %v1237_v58 }
 0x3ad   :  { %4306 = vmatpush3.bf16.msra.mxu1 %v2230_v28  ;;  %4490 = vmatprep.subr.msk.bf16.mxu0 %vm541_vm1, %v1214_v14  ;;  %v5794_v14 = vpop.permute.xlu0 %2136 }
 0x3ae   :  { %v5739_v45 = vpop.permute.xlu1 %2138 }
 0x3b0   :  { %1357 = vmax.xlane.f32.xlu1 %v1356_v36 }
 0x3b1   :  { %v5812_v1 = vpop.permute.xlu0 %2314 }
 0x3b2   :  { %v2228_v26 = vpop.permute.xlu1 %2227  ;;  %7128 = vst [vmem:[#allocation8_spill] sm:$0xff] %v5812_v1 }
 0x3b3   :  { %4307 = vmatprep.subr.bf16.mxu1 %v2228_v26 }
 0x3b4   :  { %1351 = vmax.xlane.f32.xlu1 %v1350_v61  ;;  %4262 = vmatpush3.bf16.xpose.msra.mxu0 %v1234_v31 }
 0x3b5   :  { %4308 = vmatpush3.bf16.msra.mxu1 %v2228_v26  ;;  %4271 = vmatprep.subr.bf16.mxu0 %v2054_v38  ;;  %v5826_v58 = vpop.permute.xlu0 %2492 }
 0x3b6   :  { %v2226_v43 = vpop.permute.xlu1 %2225  ;;  %7130 = vst [vmem:[#allocation10_spill] sm:$0xff] %v5826_v58 }
 0x3b7   :  { %4309 = vmatprep.subr.bf16.mxu1 %v2226_v43 }
 0x3b9   :  { %4310 = vmatpush3.bf16.msra.mxu1 %v2226_v43 }
 0x3ba   :  { %v5748_v57 = vpop.permute.xlu1 %2320 }
 0x3bb   :  { %7124 = vst [vmem:[#allocation4_spill] sm:$0xff] %v5748_v57  ;;  %4264 = vmatmul.mubr.msk.bf16.vlgmr.msra.gmra.mxu0 %vm541_vm1, %v5539_v42 }
 0x3bc   :  { %4267 = vmatprep.mubr.msk.bf16.mxu0 %vm541_vm1, %v5537_v41  ;;  %4272 = vmatpush3.bf16.msra.mxu0 %v2054_v38 }
 0x3bd   :  { %4273 = vmatprep.subr.bf16.mxu0 %v2052_v27 }
 0x3be   :  { %v5754_v17 = vpop.permute.xlu1 %2409 }
 0x3bf   :  { %7125 = vst [vmem:[#allocation5_spill] sm:$0xff] %v5754_v17  ;;  %4335 = vmatprep.subr.bf16.mxu1 %v5754_v17 }
 0x3c0   :  { %4274 = vmatpush3.bf16.msra.mxu0 %v2052_v27 }
 0x3c1   :  { %4275 = vmatprep.subr.bf16.mxu0 %v2050_v30 }
 0x3c2   :  { %v5786_v6 = vpop.permute.xlu1 %2407 }
 0x3c3   :  { %4268 = vmatmul.mubr.msk.bf16.gmra.mxu0 %vm541_vm1, %v5529_v34  ;;  %7126 = vst [vmem:[#allocation6_spill] sm:$0xff] %v5786_v6 }
 0x3c4   :  { %4276 = vmatpush3.bf16.msra.mxu0 %v2050_v30 }
 0x3c5   :  { %4277 = vmatprep.subr.bf16.mxu0 %v2048_v51 }
 0x3c6   :  { %v5802_v30 = vpop.permute.xlu1 %2316 }
 0x3c7   :  { %7127 = vst [vmem:[#allocation7_spill] sm:$0xff] %v5802_v30 }
 0x3c8   :  { %4278 = vmatpush3.bf16.msra.mxu0 %v2048_v51 }
 0x3c9   :  { %4287 = vmatprep.subr.bf16.mxu0 %v5720_v20 }
 0x3ca   :  { %v5816_v46 = vpop.permute.xlu1 %2405 }
 0x3cb   :  { %7129 = vst [vmem:[#allocation9_spill] sm:$0xff] %v5816_v46 }
 0x3ce   :  { %v5834_v31 = vpop.permute.xlu1 %2403 }
 0x3cf   :  { %7131 = vst [vmem:[#allocation11_spill] sm:$0xff] %v5834_v31 }
 0x3d8   :  { %v5760_v50 = vpop.f32.mrf.mxu1 }
 0x3d9   :  { %v1365_v11 = vsel %vm1310_vm2, %v5760_v50, -inf }
 0x3da   :  { %v5764_v52 = vpop.f32.mrf.mxu1  ;;  %1366 = vmax.xlane.f32.xlu0 %v1365_v11 }
 0x3db   :  { %v1359_v34 = vsel %vm1310_vm2, %v5764_v52, -inf }
 0x3dc   :  { %v5766_v23 = vpop.f32.mrf.mxu1 }
 0x3dd   :  { %v1368_v53 = vsel %vm1310_vm2, %v5766_v23, -inf }
 0x3de   :  { %v5772_v59 = vpop.f32.mrf.mxu1  ;;  %1369 = vmax.xlane.f32.xlu1 %v1368_v53  ;;  %1360 = vmax.xlane.f32.xlu0 %v1359_v34  ;;  %v5844_v53 = vpop.permute.xlu0 %2318 }
 0x3df   :  { %v1362_v63 = vsel %vm1310_vm2, %v5772_v59, -inf  ;;  %7132 = vst [vmem:[#allocation12_spill] sm:$0xff] %v5844_v53 }
 0x3e0   :  { %v5774_v62 = vpop.f32.mrf.mxu1 }
 0x3e1   :  { %v1377_v21 = vsel %vm1310_vm2, %v5774_v62, -inf }
 0x3e2   :  { %v5780_v47 = vpop.f32.mrf.mxu1  ;;  %1363 = vmax.xlane.f32.xlu1 %v1362_v63  ;;  %1378 = vmax.xlane.f32.xlu0 %v1377_v21  ;;  %v5848_v63 = vpop.permute.xlu1 %2498 }
 0x3e3   :  { %v1371_v32 = vsel %vm1310_vm2, %v5780_v47, -inf  ;;  %7133 = vst [vmem:[#allocation13_spill] sm:$0xff] %v5848_v63 }
 0x3e4   :  { %v5784_v4 = vpop.f32.mrf.mxu1 }
 0x3e5   :  { %v1380_v25 = vsel %vm1310_vm2, %v5784_v4, -inf }
 0x3e6   :  { %v5792_v24 = vpop.f32.mrf.mxu1  ;;  %1381 = vmax.xlane.f32.xlu1 %v1380_v25  ;;  %1372 = vmax.xlane.f32.xlu0 %v1371_v32 }
 0x3e7   :  { %v1374_v27 = vsel %vm1310_vm2, %v5792_v24, -inf }
 0x3e9   :  { %v5796_v15 = vpop.f32.mrf.mxu0 }
 0x3ea   :  { %1375 = vmax.xlane.f32.xlu1 %v1374_v27  ;;  %v1389_v55 = vsel %vm1310_vm2, %v5796_v15, -inf }
 0x3eb   :  { %v5804_v16 = vpop.f32.mrf.mxu0  ;;  %1390 = vmax.xlane.f32.xlu0 %v1389_v55  ;;  %v5858_v55 = vpop.permute.xlu0 %2496 }
 0x3ec   :  { %v1383_v40 = vsel %vm1310_vm2, %v5804_v16, -inf  ;;  %7134 = vst [vmem:[#allocation14_spill] sm:$0xff] %v5858_v55 }
 0x3ed   :  { %v5806_v0 = vpop.f32.mrf.mxu0 }
 0x3ee   :  { %v1392_v39 = vsel %vm1310_vm2, %v5806_v0, -inf }
 0x3ef   :  { %1393 = vmax.xlane.f32.xlu1 %v1392_v39  ;;  %v5814_v10 = vpop.f32.mrf.mxu0  ;;  %1384 = vmax.xlane.f32.xlu0 %v1383_v40 }
 0x3f0   :  { %v1386_v49 = vsel %vm1310_vm2, %v5814_v10, -inf }
 0x3f1   :  { %v5818_v48 = vpop.f32.mrf.mxu0 }
 0x3f2   :  { %v1401_v28 = vsel %vm1310_vm2, %v5818_v48, -inf }
 0x3f3   :  { %1387 = vmax.xlane.f32.xlu1 %v1386_v49  ;;  %v5824_v18 = vpop.f32.mrf.mxu0  ;;  %1402 = vmax.xlane.f32.xlu0 %v1401_v28  ;;  %v5866_v28 = vpop.permute.xlu1 %2587 }
 0x3f4   :  { %v1395_v61 = vsel %vm1310_vm2, %v5824_v18, -inf  ;;  %7135 = vst [vmem:[#allocation15_spill] sm:$0xff] %v5866_v28 }
 0x3f5   :  { %v5828_v36 = vpop.f32.mrf.mxu0 }
 0x3f6   :  { %v1404_v26 = vsel %vm1310_vm2, %v5828_v36, -inf }
 0x3f7   :  { %1405 = vmax.xlane.f32.xlu1 %v1404_v26  ;;  %v5836_v38 = vpop.f32.mrf.mxu0  ;;  %1396 = vmax.xlane.f32.xlu0 %v1395_v61 }
 0x3f8   :  { %v1398_v51 = vsel %vm1310_vm2, %v5836_v38, -inf }
 0x3f9   :  { %v5838_v43 = vpop.f32.mrf.mxu1 }
 0x3fa   :  { %v1413_v11 = vsel %vm1310_vm2, %v5838_v43, -inf }
 0x3fb   :  { %1399 = vmax.xlane.f32.xlu1 %v1398_v51  ;;  %1414 = vmax.xlane.f32.xlu0 %v1413_v11  ;;  %v5846_v34 = vpop.f32.mrf.mxu1 }
 0x3fc   :  { %v1407_v25 = vsel %vm1310_vm2, %v5846_v34, -inf }
 0x3fd   :  { %v5850_v21 = vpop.f32.mrf.mxu1 }
 0x3fe   :  { %v1416_v32 = vsel %vm1310_vm2, %v5850_v21, -inf }
 0x3ff   :  { %1408 = vmax.xlane.f32.xlu0 %v1407_v25  ;;  %1417 = vmax.xlane.f32.xlu1 %v1416_v32  ;;  %v5856_v27 = vpop.f32.mrf.mxu1 }
 0x400   :  { %v1410_v40 = vsel %vm1310_vm2, %v5856_v27, -inf }
 0x401   :  { %v5860_v39 = vpop.f32.mrf.mxu1 }
 0x402   :  { %v1425_v49 = vsel %vm1310_vm2, %v5860_v39, -inf }
 0x403   :  { %1411 = vmax.xlane.f32.xlu1 %v1410_v40  ;;  %1426 = vmax.xlane.f32.xlu0 %v1425_v49  ;;  %v5868_v26 = vpop.f32.mrf.mxu1  ;;  %v5879_v40 = vpop.permute.xlu1 %2585 }
 0x404   :  { %v1419_v25 = vsel %vm1310_vm2, %v5868_v26, -inf  ;;  %7136 = vst [vmem:[#allocation16_spill] sm:$0xff] %v5879_v40 }
 0x405   :  { %v5870_v61 = vpop.f32.mrf.mxu1  ;;  %v1319_v51 = vpop.xlane.xlu0 %1318 }
 0x406   :  { %v1505_v11 = vsub.f32 %v5663_v56, %v1319_v51  ;;  %v1428_v32 = vsel %vm1310_vm2, %v5870_v61, -inf }
 0x407   :  { %1420 = vmax.xlane.f32.xlu0 %v1419_v25  ;;  %1429 = vmax.xlane.f32.xlu1 %v1428_v32  ;;  %v5877_v58 = vpop.f32.mrf.mxu1  ;;  %v5885_v25 = vpop.permute.xlu1 %2494 }
 0x408   :  { %v1571_v28 = vmul.f32 1.442695, %v1505_v11  ;;  %v1422_v56 = vsel %vm1310_vm2, %v5877_v58, -inf  ;;  %7137 = vst [vmem:[#allocation17_spill] sm:$0xff] %v5885_v25 }
 0x409   :  { %v1313_v49 = vpop.xlane.xlu0 %1312 }
 0x40a   :  { %4659 = vpow2.f32 %v1571_v28  ;;  %v1503_v55 = vsub.f32 %v5667_v35, %v1313_v49 }
 0x40b   :  { %1423 = vmax.xlane.f32.xlu1 %v1422_v56  ;;  %v5888_v28 = vpop.permute.xlu1 %2583 }
 0x40c   :  { %v1567_v51 = vmul.f32 1.442695, %v1503_v55  ;;  %7138 = vst [vmem:[#allocation18_spill] sm:$0xff] %v5888_v28 }
 0x40d   :  { %v1322_v31 = vpop.xlane.xlu0 %1321 }
 0x40e   :  { %4661 = vpow2.f32 %v1567_v51  ;;  %v1506_v46 = vsub.f32 %v5669_v37, %v1322_v31 }
 0x410   :  { %v1573_v32 = vmul.f32 1.442695, %v1506_v46  ;;  %v5897_v46 = vpop.permute.xlu1 %2581 }
 0x411   :  { %v1331_v6 = vpop.xlane.xlu0 %1330  ;;  %7139 = vst [vmem:[#allocation19_spill] sm:$0xff] %v5897_v46 }
 0x412   :  { %4663 = vpow2.f32 %v1573_v32  ;;  %v1509_v11 = vsub.f32 %v5681_v5, %v1331_v6  ;;  %v5901_v6 = vpop.f32.mrf.mxu0 }
 0x414   :  { %v1579_v40 = vmul.f32 1.442695, %v1509_v11  ;;  %v5909_v51 = vpop.permute.xlu1 %2676  ;;  %v5911_v32 = vpop.f32.mrf.mxu0 }
 0x415   :  { %v1325_v35 = vpop.xlane.xlu0 %1324  ;;  %7140 = vst [vmem:[#allocation20_spill] sm:$0xff] %v5909_v51  ;;  %v1431_v11 = vsel %vm1310_vm2, %v5911_v32, -inf }
 0x416   :  { %v1507_v49 = vsub.f32 %v5686_v7, %v1325_v35  ;;  %4665 = vpow2.f32 %v1579_v40  ;;  %v1437_v40 = vsel %vm1310_vm2, %v5901_v6, -inf }
 0x417   :  { %v5891_v17 = vpop.eup %4659 }
 0x418   :  { %v1575_v55 = vmul.f32 1.442695, %v1507_v49  ;;  %v1701_v37 = vsel %vm1310_vm2, %v5891_v17, 0.0  ;;  %v5917_v49 = vpop.f32.mrf.mxu0 }
 0x419   :  { %1702 = vadd.xlane.f32.xlu0 %v1701_v37  ;;  %v1343_v42 = vpop.xlane.xlu0 %1342 }
 0x41a   :  { %4667 = vpow2.f32 %v1575_v55  ;;  %v5924_v51 = vpop.f32.mrf.mxu0  ;;  %v1513_v63 = vsub.f32 %v5688_v8, %v1343_v42  ;;  %v1440_v42 = vsel %vm1310_vm2, %v5917_v49, -inf }
 0x41b   :  { %v5895_v31 = vpop.eup %4661 }
 0x41c   :  { %v1695_v5 = vsel %vm1310_vm2, %v5895_v31, 0.0  ;;  %v5928_v25 = vpop.f32.mrf.mxu0  ;;  %v1587_v30 = vmul.f32 1.442695, %v1513_v63 }
 0x41d   :  { %1696 = vadd.xlane.f32.xlu0 %v1695_v5 }
 0x41f   :  { %v5903_v7 = vpop.eup %4663 }
 0x420   :  { %v1704_v56 = vsel %vm1310_vm2, %v5903_v7, 0.0 }
 0x421   :  { %1438 = vmax.xlane.f32.xlu0 %v1437_v40  ;;  %1705 = vadd.xlane.f32.xlu1 %v1704_v56 }
 0x423   :  { %v5915_v35 = vpop.eup %4665 }
 0x424   :  { %7141 = vst [vmem:[#allocation21_spill] sm:$0xff] %v5915_v35  ;;  %v1713_v46 = vsel %vm1310_vm2, %v5915_v35, 0.0 }
 0x425   :  { %1432 = vmax.xlane.f32.xlu0 %v1431_v11  ;;  %v1316_v55 = vpop.xlane.xlu1 %1315 }
 0x426   :  { %v1504_v37 = vsub.f32 %v5676_v3, %v1316_v55  ;;  %v1449_v55 = vsel %vm1310_vm2, %v5928_v25, -inf }
 0x427   :  { %v5922_v28 = vpop.eup %4667 }
 0x428   :  { %v1569_v5 = vmul.f32 1.442695, %v1504_v37  ;;  %v1707_v56 = vsel %vm1310_vm2, %v5922_v28, 0.0  ;;  %v5933_v37 = vpop.f32.mrf.mxu0 }
 0x429   :  { %1714 = vadd.xlane.f32.xlu0 %v1713_v46  ;;  %v1334_v40 = vpop.xlane.xlu1 %1333 }
 0x42a   :  { %4669 = vpow2.f32 %v1569_v5  ;;  %v1510_v11 = vsub.f32 %v5718_v33, %v1334_v40  ;;  %v1443_v5 = vsel %vm1310_vm2, %v5933_v37, -inf  ;;  %v1337_v40 = vpop.xlane.xlu0 %1336 }
 0x42c   :  { %v1581_v29 = vmul.f32 1.442695, %v1510_v11 }
 0x42d   :  { %1708 = vadd.xlane.f32.xlu0 %v1707_v56  ;;  %v1328_v3 = vpop.xlane.xlu1 %1327 }
 0x42e   :  { %v1508_v46 = vsub.f32 %v5724_v13, %v1328_v3  ;;  %4671 = vpow2.f32 %v1581_v29  ;;  %v1511_v3 = vsub.f32 %v5690_v9, %v1337_v40 }
 0x430   :  { %v1577_v1 = vmul.f32 1.442695, %v1508_v46  ;;  %v1583_v8 = vmul.f32 1.442695, %v1511_v3 }
 0x431   :  { %1450 = vmax.xlane.f32.xlu0 %v1449_v55  ;;  %v1346_v33 = vpop.xlane.xlu1 %1345  ;;  %v1355_v55 = vpop.xlane.xlu0 %1354 }
 0x432   :  { %4673 = vpow2.f32 %v1577_v1  ;;  %v1517_v29 = vsub.f32 %v5706_v19, %v1355_v55  ;;  %v1434_v1 = vsel %vm1310_vm2, %v5924_v51, -inf  ;;  %v1514_v9 = vsub.f32 %v5694_v12, %v1346_v33 }
 0x433   :  { %4675 = vpow2.f32 %v1587_v30 }
 0x434   :  { %4677 = vpow2.f32 %v1583_v8  ;;  %v1589_v3 = vmul.f32 1.442695, %v1514_v9  ;;  %v5965_v8 = vpop.f32.mrf.mxu0 }
 0x435   :  { %1444 = vmax.xlane.f32.xlu0 %v1443_v5  ;;  %v1340_v13 = vpop.xlane.xlu1 %1339  ;;  %v1595_v5 = vmul.f32 1.442695, %v1517_v29 }
 0x436   :  { %v1512_v55 = vsub.f32 %v5700_v54, %v1340_v13 }
 0x437   :  { %v5939_v56 = vpop.eup %4669  ;;  %4679 = vpow2.f32 %v1595_v5 }
 0x438   :  { %v1698_v11 = vsel %vm1310_vm2, %v5939_v56, 0.0 }
 0x439   :  { %1699 = vadd.xlane.f32.xlu1 %v1698_v11  ;;  %v1358_v46 = vpop.xlane.xlu1 %1357 }
 0x43a   :  { %v1518_v30 = vsub.f32 %v5736_v44, %v1358_v46  ;;  %v1585_v44 = vmul.f32 1.442695, %v1512_v55  ;;  %v1349_v46 = vpop.xlane.xlu0 %1348 }
 0x43b   :  { %v5949_v63 = vpop.eup %4671 }
 0x43c   :  { %v1716_v40 = vsel %vm1310_vm2, %v5949_v63, 0.0  ;;  %v1597_v19 = vmul.f32 1.442695, %v1518_v30  ;;  %v1515_v30 = vsub.f32 %v5712_v22, %v1349_v46 }
 0x43d   :  { %1441 = vmax.xlane.f32.xlu1 %v1440_v42  ;;  %v1352_v42 = vpop.xlane.xlu1 %1351 }
 0x43e   :  { %4681 = vpow2.f32 %v1597_v19  ;;  %v1516_v12 = vsub.f32 %v5743_v60, %v1352_v42  ;;  %v1452_v60 = vsel %vm1310_vm2, %v5965_v8, -inf  ;;  %v1591_v55 = vmul.f32 1.442695, %v1515_v30 }
 0x43f   :  { %v5955_v11 = vpop.eup %4673  ;;  %4683 = vpow2.f32 %v1589_v3 }
 0x440   :  { %v1710_v29 = vsel %vm1310_vm2, %v5955_v11, 0.0  ;;  %v1593_v13 = vmul.f32 1.442695, %v1516_v12  ;;  %4685 = vpow2.f32 %v1585_v44 }
 0x441   :  { %1435 = vmax.xlane.f32.xlu1 %v1434_v1  ;;  %v5960_v1 = vpop.eup %4675 }
 0x442   :  { %7142 = vst [vmem:[#allocation22_spill] sm:$0xff] %v5960_v1  ;;  %v1725_v33 = vsel %vm1310_vm2, %v5960_v1, 0.0  ;;  %4687 = vpow2.f32 %v1593_v13 }
 0x443   :  { %4689 = vpow2.f32 %v1591_v55 }
 0x445   :  { %1717 = vadd.xlane.f32.xlu1 %v1716_v40  ;;  %v5976_v40 = vpop.eup %4677 }
 0x446   :  { %7143 = vst [vmem:[#allocation23_spill] sm:$0xff] %v5976_v40  ;;  %v5980_v3 = vpop.eup %4679  ;;  %v1719_v22 = vsel %vm1310_vm2, %v5976_v40, 0.0 }
 0x447   :  { %7144 = vst [vmem:[#allocation24_spill] sm:$0xff] %v5980_v3  ;;  %v1737_v12 = vsel %vm1310_vm2, %v5980_v3, 0.0 }
 0x449   :  { %1711 = vadd.xlane.f32.xlu1 %v1710_v29  ;;  %v5986_v29 = vpop.f32.mrf.mxu0 }
 0x44a   :  { %7146 = vst [vmem:[#allocation26_spill] sm:$0xff] %v5986_v29  ;;  %v1446_v46 = vsel %vm1310_vm2, %v5986_v29, -inf }
 0x44b   :  { %v5990_v44 = vpop.eup %4681 }
 0x44c   :  { %7147 = vst [vmem:[#allocation27_spill] sm:$0xff] %v5990_v44  ;;  %v5996_v13 = vpop.eup %4683 }
 0x44d   :  { %1726 = vadd.xlane.f32.xlu1 %v1725_v33  ;;  %7149 = vst [vmem:[#allocation29_spill] sm:$0xff] %v5996_v13 }
 0x44f   :  { %v5967_v54 = vpop.f32.mrf.mxu1 }
 0x450   :  { %v1461_v5 = vsel %vm1310_vm2, %v5967_v54, -inf }
 0x451   :  { %v5972_v9 = vpop.f32.mrf.mxu1  ;;  %1462 = vmax.xlane.f32.xlu0 %v1461_v5  ;;  %1453 = vmax.xlane.f32.xlu1 %v1452_v60  ;;  %v1740_v5 = vsel %vm1310_vm2, %v5990_v44, 0.0  ;;  %v1728_v60 = vsel %vm1310_vm2, %v5996_v13, 0.0 }
 0x452   :  { %v1455_v19 = vsel %vm1310_vm2, %v5972_v9, -inf }
 0x453   :  { %v5982_v42 = vpop.f32.mrf.mxu1 }
 0x454   :  { %7145 = vst [vmem:[#allocation25_spill] sm:$0xff] %v5982_v42 }
 0x455   :  { %1456 = vmax.xlane.f32.xlu0 %v1455_v19  ;;  %1720 = vadd.xlane.f32.xlu1 %v1719_v22  ;;  %v5992_v33 = vpop.f32.mrf.mxu1  ;;  %v6004_v19 = vpop.eup %4685 }
 0x456   :  { %7148 = vst [vmem:[#allocation28_spill] sm:$0xff] %v5992_v33  ;;  %7151 = vst [vmem:[#allocation31_spill] sm:$0xff] %v6004_v19  ;;  %v6008_v22 = vpop.eup %4687 }
 0x457   :  { %v6000_v30 = vpop.f32.mrf.mxu1  ;;  %7152 = vst [vmem:[#allocation32_spill] sm:$0xff] %v6008_v22  ;;  %v1734_v3 = vsel %vm1310_vm2, %v6008_v22, 0.0 }
 0x458   :  { %7150 = vst [vmem:[#allocation30_spill] sm:$0xff] %v6000_v30  ;;  %v1473_v55 = vsel %vm1310_vm2, %v6000_v30, -inf }
 0x459   :  { %1738 = vadd.xlane.f32.xlu0 %v1737_v12  ;;  %1447 = vmax.xlane.f32.xlu1 %v1446_v46  ;;  %v1722_v12 = vsel %vm1310_vm2, %v6004_v19, 0.0  ;;  %v6014_v44 = vpop.f32.mrf.mxu1 }
 0x45a   :  { %7153 = vst [vmem:[#allocation33_spill] sm:$0xff] %v6014_v44 }
 0x45b   :  { %v6032_v40 = vpop.f32.mrf.mxu1 }
 0x45c   :  { %7155 = vst [vmem:[#allocation35_spill] sm:$0xff] %v6032_v40  ;;  %v1476_v13 = vsel %vm1310_vm2, %v6032_v40, -inf }
 0x45d   :  { %1741 = vadd.xlane.f32.xlu0 %v1740_v5  ;;  %1729 = vadd.xlane.f32.xlu1 %v1728_v60  ;;  %v1464_v5 = vsel %vm1310_vm2, %v5982_v42, -inf  ;;  %v6018_v60 = vpop.eup %4689  ;;  %v6036_v30 = vpop.f32.mrf.mxu1 }
 0x45e   :  { %7154 = vst [vmem:[#allocation34_spill] sm:$0xff] %v6018_v60 }
 0x461   :  { %1474 = vmax.xlane.f32.xlu0 %v1473_v55  ;;  %1723 = vadd.xlane.f32.xlu1 %v1722_v12  ;;  %v1467_v55 = vsel %vm1310_vm2, %v6014_v44, -inf  ;;  %v1731_v12 = vsel %vm1310_vm2, %v6018_v60, 0.0  ;;  %v1470_v44 = vsel %vm1310_vm2, %v6036_v30, -inf }
 0x463   :  { %v1367_v46 = vpop.xlane.xlu0 %1366 }
 0x465   :  { %1735 = vadd.xlane.f32.xlu0 %v1734_v3  ;;  %1465 = vmax.xlane.f32.xlu1 %v1464_v5  ;;  %v1458_v3 = vsel %vm1310_vm2, %v5992_v33, -inf }
 0x467   :  { %v6020_v53 = vpop.xlane.xlu1 %1369  ;;  %v6022_v1 = vpop.xlane.xlu0 %1360 }
 0x469   :  { %1468 = vmax.xlane.f32.xlu0 %v1467_v55  ;;  %1732 = vadd.xlane.f32.xlu1 %v1731_v12  ;;  %v1521_v55 = vsub.f32 %v5760_v50, %v1367_v46 }
 0x46b   :  { %v1379_v22 = vpop.xlane.xlu0 %1378  ;;  %v6028_v19 = vpop.xlane.xlu1 %1363  ;;  %v1603_v42 = vmul.f32 1.442695, %v1521_v55 }
 0x46c   :  { %v1525_v33 = vsub.f32 %v5774_v62, %v1379_v22 }
 0x46d   :  { %1459 = vmax.xlane.f32.xlu1 %v1458_v3  ;;  %4691 = vpow2.f32 %v1603_v42 }
 0x46e   :  { %v1611_v40 = vmul.f32 1.442695, %v1525_v33 }
 0x46f   :  { %v1373_v5 = vpop.xlane.xlu0 %1372  ;;  %v1382_v60 = vpop.xlane.xlu1 %1381 }
 0x470   :  { %v1523_v35 = vsub.f32 %v5780_v47, %v1373_v5  ;;  %v1526_v46 = vsub.f32 %v5784_v4, %v1382_v60  ;;  %4693 = vpow2.f32 %v1611_v40 }
 0x471   :  { %1477 = vmax.xlane.f32.xlu1 %v1476_v13 }
 0x472   :  { %v1607_v62 = vmul.f32 1.442695, %v1523_v35  ;;  %v1613_v5 = vmul.f32 1.442695, %v1526_v46 }
 0x473   :  { %v1376_v57 = vpop.xlane.xlu1 %1375 }
 0x474   :  { %v1391_v12 = vpop.xlane.xlu0 %1390  ;;  %4695 = vpow2.f32 %v1607_v62  ;;  %v1524_v4 = vsub.f32 %v5792_v24, %v1376_v57 }
 0x475   :  { %1471 = vmax.xlane.f32.xlu1 %v1470_v44  ;;  %4697 = vpow2.f32 %v1613_v5  ;;  %v1529_v57 = vsub.f32 %v5796_v15, %v1391_v12 }
 0x476   :  { %v1609_v62 = vmul.f32 1.442695, %v1524_v4 }
 0x478   :  { %v1385_v3 = vpop.xlane.xlu0 %1384  ;;  %v6050_v44 = vpop.xlane.xlu1 %1393  ;;  %4699 = vpow2.f32 %v1609_v62 }
 0x479   :  { %v1527_v4 = vsub.f32 %v5804_v16, %v1385_v3 }
 0x47b   :  { %v6042_v29 = vpop.f32.mrf.mxu0 }
 0x47c   :  { %v1485_v50 = vsel %vm1310_vm2, %v6042_v29, -inf  ;;  %v1403_v42 = vpop.xlane.xlu0 %1402  ;;  %v6067_v60 = vpop.xlane.xlu1 %1387 }
 0x47d   :  { %v6047_v13 = vpop.f32.mrf.mxu0  ;;  %1486 = vmax.xlane.f32.xlu0 %v1485_v50 }
 0x47e   :  { %7156 = vst [vmem:[#allocation36_spill] sm:$0xff] %v6047_v13  ;;  %v1479_v33 = vsel %vm1310_vm2, %v6047_v13, -inf }
 0x47f   :  { %v6052_v55 = vpop.f32.mrf.mxu0 }
 0x480   :  { %v1488_v47 = vsel %vm1310_vm2, %v6052_v55, -inf }
 0x481   :  { %v6058_v22 = vpop.f32.mrf.mxu0  ;;  %1480 = vmax.xlane.f32.xlu0 %v1479_v33  ;;  %1489 = vmax.xlane.f32.xlu1 %v1488_v47  ;;  %v1397_v33 = vpop.xlane.xlu0 %1396 }
 0x482   :  { %7157 = vst [vmem:[#allocation37_spill] sm:$0xff] %v6058_v22  ;;  %v1482_v40 = vsel %vm1310_vm2, %v6058_v22, -inf  ;;  %v6073_v47 = vpop.eup %4691 }
 0x483   :  { %v6060_v50 = vpop.f32.mrf.mxu0  ;;  %7161 = vst [vmem:[#allocation41_spill] sm:$0xff] %v6073_v47  ;;  %v1749_v5 = vsel %vm1310_vm2, %v6073_v47, 0.0 }
 0x484   :  { %7158 = vst [vmem:[#allocation38_spill] sm:$0xff] %v6060_v50  ;;  %v1497_v35 = vsel %vm1310_vm2, %v6060_v50, -inf }
 0x485   :  { %v6069_v13 = vpop.f32.mrf.mxu0  ;;  %1498 = vmax.xlane.f32.xlu0 %v1497_v35  ;;  %1483 = vmax.xlane.f32.xlu1 %v1482_v40  ;;  %v6082_v35 = vpop.xlane.xlu1 %1405  ;;  %v1619_v40 = vmul.f32 1.442695, %v1529_v57 }
 0x486   :  { %7159 = vst [vmem:[#allocation39_spill] sm:$0xff] %v6069_v13  ;;  %v1491_v24 = vsel %vm1310_vm2, %v6069_v13, -inf  ;;  %v1415_v15 = vpop.xlane.xlu0 %1414  ;;  %v6089_v13 = vpop.eup %4693 }
 0x487   :  { %v6071_v46 = vpop.f32.mrf.mxu0  ;;  %7162 = vst [vmem:[#allocation42_spill] sm:$0xff] %v6089_v13  ;;  %4701 = vpow2.f32 %v1619_v40  ;;  %v6094_v47 = vpop.eup %4695  ;;  %v1537_v40 = vsub.f32 %v5838_v43, %v1415_v15 }
 0x488   :  { %7160 = vst [vmem:[#allocation40_spill] sm:$0xff] %v6071_v46  ;;  %v1500_v50 = vsel %vm1310_vm2, %v6071_v46, -inf  ;;  %v1761_v46 = vsel %vm1310_vm2, %v6089_v13, 0.0  ;;  %v6098_v3 = vpop.eup %4697 }
 0x489   :  { %v6080_v22 = vpop.f32.mrf.mxu0  ;;  %1492 = vmax.xlane.f32.xlu0 %v1491_v24  ;;  %1501 = vmax.xlane.f32.xlu1 %v1500_v50  ;;  %v1615_v24 = vmul.f32 1.442695, %v1527_v4  ;;  %v1533_v50 = vsub.f32 %v5818_v48, %v1403_v42  ;;  %v6096_v62 = vpop.xlane.xlu1 %1399 }
 0x48a   :  { %v1494_v12 = vsel %vm1310_vm2, %v6080_v22, -inf  ;;  %v1409_v16 = vpop.xlane.xlu0 %1408  ;;  %v6108_v13 = vpop.eup %4699 }
 0x48b   :  { %4703 = vpow2.f32 %v1615_v24  ;;  %v1627_v57 = vmul.f32 1.442695, %v1533_v50  ;;  %v1635_v24 = vmul.f32 1.442695, %v1537_v40 }
 0x48d   :  { %1495 = vmax.xlane.f32.xlu1 %v1494_v12  ;;  %1750 = vadd.xlane.f32.xlu0 %v1749_v5  ;;  %v1531_v12 = vsub.f32 %v5824_v18, %v1397_v33  ;;  %v1755_v5 = vsel %vm1310_vm2, %v6094_v47, 0.0  ;;  %v6103_v48 = vpop.xlane.xlu1 %1417  ;;  %4705 = vpow2.f32 %v1627_v57  ;;  %v1535_v18 = vsub.f32 %v5846_v34, %v1409_v16 }
 0x48e   :  { %v1427_v4 = vpop.xlane.xlu0 %1426  ;;  %v1758_v33 = vsel %vm1310_vm2, %v6108_v13, 0.0 }
 0x48f   :  { %v1623_v42 = vmul.f32 1.442695, %v1531_v12  ;;  %v1631_v43 = vmul.f32 1.442695, %v1535_v18  ;;  %v1519_v18 = vsub.f32 %v5764_v52, %v6022_v1 }
 0x491   :  { %1762 = vadd.xlane.f32.xlu0 %v1761_v46  ;;  %v1764_v46 = vsel %vm1310_vm2, %v6098_v3, 0.0  ;;  %4707 = vpow2.f32 %v1623_v42  ;;  %v1412_v57 = vpop.xlane.xlu1 %1411 }
 0x492   :  { %v1421_v12 = vpop.xlane.xlu0 %1420  ;;  %4709 = vpow2.f32 %v1635_v24  ;;  %v1536_v15 = vsub.f32 %v5856_v27, %v1412_v57 }
 0x493   :  { %4711 = vpow2.f32 %v1631_v43  ;;  %v1539_v57 = vsub.f32 %v5868_v26, %v1421_v12  ;;  %v1522_v26 = vsub.f32 %v5766_v23, %v6020_v53 }
 0x494   :  { %v6113_v50 = vpop.eup %4701  ;;  %v1633_v40 = vmul.f32 1.442695, %v1536_v15 }
 0x495   :  { %1756 = vadd.xlane.f32.xlu0 %v1755_v5  ;;  %7163 = vst [vmem:[#allocation43_spill] sm:$0xff] %v6113_v50  ;;  %v1773_v5 = vsel %vm1310_vm2, %v6113_v50, 0.0  ;;  %v6124_v16 = vpop.xlane.xlu1 %1429 }
 0x496   :  { %4713 = vpow2.f32 %v1633_v40 }
 0x498   :  { %v6120_v42 = vpop.eup %4703 }
 0x499   :  { %1765 = vadd.xlane.f32.xlu0 %v1764_v46  ;;  %v1541_v46 = vsub.f32 %v5860_v39, %v1427_v4  ;;  %v1424_v39 = vpop.xlane.xlu1 %1423 }
 0x49a   :  { %v6129_v24 = vpop.eup %4705  ;;  %v1540_v50 = vsub.f32 %v5877_v58, %v1424_v39  ;;  %v1605_v58 = vmul.f32 1.442695, %v1522_v26 }
 0x49b   :  { %v1785_v43 = vsel %vm1310_vm2, %v6129_v24, 0.0 }
 0x49c   :  { %v1641_v40 = vmul.f32 1.442695, %v1540_v50 }
 0x49d   :  { %1759 = vadd.xlane.f32.xlu0 %v1758_v33  ;;  %v1643_v33 = vmul.f32 1.442695, %v1541_v46 }
 0x49e   :  { %2674 = vrot.lane.b32.xlu1 %v5537_v41, %s4999_s16  ;;  %v1767_v41 = vsel %vm1310_vm2, %v6120_v42, 0.0  ;;  %v6138_v15 = vpop.eup %4707 }
 0x49f   :  { %4715 = vpow2.f32 %v1643_v33  ;;  %v1779_v52 = vsel %vm1310_vm2, %v6138_v15, 0.0  ;;  %v6143_v1 = vpop.eup %4709 }
 0x4a0   :  { %v6150_v33 = vpop.eup %4711 }
 0x4a1   :  { %1774 = vadd.xlane.f32.xlu0 %v1773_v5  ;;  %v1599_v5 = vmul.f32 1.442695, %v1519_v18  ;;  %v1797_v18 = vsel %vm1310_vm2, %v6143_v1, 0.0  ;;  %v1791_v50 = vsel %vm1310_vm2, %v6150_v33, 0.0 }
 0x4a2   :  { %v6122_v34 = vpop.xlane.xlu0 %1702 }
 0x4a3   :  { %4717 = vpow2.f32 %v1599_v5 }
 0x4a5   :  { %1768 = vadd.xlane.f32.xlu0 %v1767_v41  ;;  %v1639_v41 = vmul.f32 1.442695, %v1539_v57  ;;  %v1520_v57 = vsub.f32 %v5772_v59, %v6028_v19  ;;  %v1528_v59 = vsub.f32 %v5814_v10, %v6067_v60 }
 0x4a6   :  { %v6131_v27 = vpop.xlane.xlu0 %1696 }
 0x4a7   :  { %4719 = vpow2.f32 %v1639_v41  ;;  %v1601_v39 = vmul.f32 1.442695, %v1520_v57  ;;  %v1617_v26 = vmul.f32 1.442695, %v1528_v59 }
 0x4a8   :  { %4721 = vpow2.f32 %v1641_v40  ;;  %v1534_v40 = vsub.f32 %v5828_v36, %v6082_v35  ;;  %v1532_v36 = vsub.f32 %v5836_v38, %v6096_v62  ;;  %v1538_v38 = vsub.f32 %v5850_v21, %v6103_v48 }
 0x4a9   :  { %1786 = vadd.xlane.f32.xlu0 %v1785_v43  ;;  %4723 = vpow2.f32 %v1605_v58 }
 0x4aa   :  { %v1439_v4 = vpop.xlane.xlu0 %1438  ;;  %v1625_v59 = vmul.f32 1.442695, %v1532_v36 }
 0x4ab   :  { %v1545_v46 = vsub.f32 %v5901_v6, %v1439_v4  ;;  %v6159_v6 = vpop.eup %4713  ;;  %v1530_v4 = vsub.f32 %v5806_v0, %v6050_v44 }
 0x4ac   :  { %v6169_v41 = vpop.eup %4715 }
 0x4ad   :  { %1780 = vadd.xlane.f32.xlu0 %v1779_v52  ;;  %v1651_v23 = vmul.f32 1.442695, %v1545_v46  ;;  %v1621_v52 = vmul.f32 1.442695, %v1530_v4  ;;  %v1809_v10 = vsel %vm1310_vm2, %v6169_v41, 0.0 }
 0x4ae   :  { %v1433_v12 = vpop.xlane.xlu0 %1432 }
 0x4af   :  { %v1543_v53 = vsub.f32 %v5911_v32, %v1433_v12  ;;  %4725 = vpow2.f32 %v1651_v23  ;;  %v1794_v32 = vsel %vm1310_vm2, %v6159_v6, 0.0 }
 0x4b0   :  { %4727 = vpow2.f32 %v1601_v39  ;;  %v6172_v44 = vpop.eup %4717 }
 0x4b1   :  { %1798 = vadd.xlane.f32.xlu0 %v1797_v18  ;;  %v1647_v5 = vmul.f32 1.442695, %v1543_v53  ;;  %v1706_v18 = vpop.xlane.xlu1 %1705  ;;  %v1743_v23 = vsel %vm1310_vm2, %v6172_v44, 0.0 }
 0x4b2   :  { %v6154_v43 = vpop.xlane.xlu0 %1714 }
 0x4b3   :  { %4729 = vpow2.f32 %v1647_v5 }
 0x4b4   :  { %v6176_v60 = vpop.eup %4719  ;;  %4731 = vpow2.f32 %v1621_v52 }
 0x4b5   :  { %1792 = vadd.xlane.f32.xlu0 %v1791_v50  ;;  %4733 = vpow2.f32 %v1617_v26  ;;  %v1803_v57 = vsel %vm1310_vm2, %v6176_v60, 0.0  ;;  %v6186_v53 = vpop.eup %4721  ;;  %v1629_v50 = vmul.f32 1.442695, %v1534_v40 }
 0x4b6   :  { %v6165_v19 = vpop.xlane.xlu0 %1708  ;;  %4735 = vrcp.f32 %v6122_v34  ;;  %v6190_v39 = vpop.eup %4723  ;;  %v1806_v34 = vsel %vm1310_vm2, %v6186_v53, 0.0 }
 0x4b7   :  { %v1752_v62 = vsel %vm1310_vm2, %v6190_v39, 0.0 }
 0x4b9   :  { %1795 = vadd.xlane.f32.xlu0 %v1794_v32  ;;  %v1542_v32 = vsub.f32 %v5870_v61, %v6124_v16 }
 0x4ba   :  { %v1451_v12 = vpop.xlane.xlu0 %1450 }
 0x4bb   :  { %v1549_v0 = vsub.f32 %v5928_v25, %v1451_v12  ;;  %v1637_v12 = vmul.f32 1.442695, %v1538_v38 }
 0x4bc   :  { %v6195_v4 = vpop.eup %4725 }
 0x4bd   :  { %v1659_v46 = vmul.f32 1.442695, %v1549_v0  ;;  %1810 = vadd.xlane.f32.xlu0 %v1809_v10  ;;  %v6201_v5 = vpop.eup %4727  ;;  %v1821_v52 = vsel %vm1310_vm2, %v6195_v4, 0.0 }
 0x4be   :  { %v1445_v58 = vpop.xlane.xlu0 %1444  ;;  %v1746_v21 = vsel %vm1310_vm2, %v6201_v5, 0.0 }
 0x4bf   :  { %v1547_v25 = vsub.f32 %v5933_v37, %v1445_v58  ;;  %4737 = vpow2.f32 %v1659_v46  ;;  %v1645_v46 = vmul.f32 1.442695, %v1542_v32 }
 0x4c0   :  { %4739 = vrcp.f32 %v1706_v18  ;;  %v6207_v26 = vpop.eup %4729 }
 0x4c1   :  { %v1655_v35 = vmul.f32 1.442695, %v1547_v25  ;;  %1804 = vadd.xlane.f32.xlu0 %v1803_v57  ;;  %4741 = vrcp.f32 %v6131_v27  ;;  %v6211_v48 = vpop.eup %4731  ;;  %v1815_v61 = vsel %vm1310_vm2, %v6207_v26, 0.0 }
 0x4c2   :  { %1744 = vadd.xlane.f32.xlu1 %v1743_v23  ;;  %v1700_v37 = vpop.xlane.xlu1 %1699  ;;  %v6213_v0 = vpop.eup %4733  ;;  %v1776_v58 = vsel %vm1310_vm2, %v6211_v48, 0.0 }
 0x4c3   :  { %4743 = vpow2.f32 %v1655_v35  ;;  %v4736_v40 = vpop.eup %4735  ;;  %v1770_v35 = vsel %vm1310_vm2, %v6213_v0, 0.0 }
 0x4c4   :  { %4745 = vrcp.f32 %v1700_v37  ;;  %v1953_v32 = vmul.f32 %v4736_v40, %v5891_v17 }
 0x4c5   :  { %4747 = vpow2.f32 %v1629_v50  ;;  %1807 = vadd.xlane.f32.xlu0 %v1806_v34 }
 0x4c6   :  { %1753 = vadd.xlane.f32.xlu1 %v1752_v62  ;;  %v1442_v27 = vpop.xlane.xlu1 %1441  ;;  %4749 = vpow2.f32 %v1625_v59 }
 0x4c7   :  { %4751 = vpow2.f32 %v1637_v12  ;;  %v1546_v18 = vsub.f32 %v5917_v49, %v1442_v27 }
 0x4c8   :  { %4753 = vpow2.f32 %v1645_v46 }
 0x4c9   :  { %1822 = vadd.xlane.f32.xlu0 %v1821_v52  ;;  %v1653_v34 = vmul.f32 1.442695, %v1546_v18 }
 0x4ca   :  { %1747 = vadd.xlane.f32.xlu1 %v1746_v21  ;;  %v1436_v10 = vpop.xlane.xlu1 %1435 }
 0x4cb   :  { %v1544_v59 = vsub.f32 %v5924_v51, %v1436_v10 }
 0x4cc   :  { %v6217_v16 = vpop.eup %4737 }
 0x4cd   :  { %1816 = vadd.xlane.f32.xlu0 %v1815_v61  ;;  %v4740_v25 = vpop.eup %4739  ;;  %v1833_v36 = vsel %vm1310_vm2, %v6217_v16, 0.0  ;;  %v1649_v12 = vmul.f32 1.442695, %v1544_v59 }
 0x4ce   :  { %1777 = vadd.xlane.f32.xlu1 %v1776_v58  ;;  %v4742_v57 = vpop.eup %4741  ;;  %v1718_v23 = vpop.xlane.xlu1 %1717  ;;  %v1954_v49 = vmul.f32 %v4740_v25, %v5903_v7 }
 0x4cf   :  { %4755 = vrcp.f32 %v1718_v23  ;;  %v1951_v62 = vmul.f32 %v4742_v57, %v5895_v31 }
 0x4d0   :  { %v6222_v50 = vpop.eup %4743  ;;  %4757 = vrcp.f32 %v6165_v19  ;;  %v2016_v21 = vpack.c.bf16 %v1954_v49, %v1953_v32 }
 0x4d1   :  { %v4746_v37 = vpop.eup %4745  ;;  %1834 = vadd.xlane.f32.xlu0 %v1833_v36  ;;  %4759 = vrcp.f32 %v6154_v43  ;;  %v1827_v51 = vsel %vm1310_vm2, %v6222_v50, 0.0 }
 0x4d2   :  { %v6230_v38 = vpop.eup %4747  ;;  %1771 = vadd.xlane.f32.xlu1 %v1770_v35  ;;  %v1952_v27 = vmul.f32 %v4746_v37, %v5939_v56  ;;  %v1712_v52 = vpop.xlane.xlu1 %1711 }
 0x4d3   :  { %4761 = vrcp.f32 %v1712_v52  ;;  %v1788_v19 = vsel %vm1310_vm2, %v6230_v38, 0.0  ;;  %v6241_v31 = vpop.eup %4749 }
 0x4d4   :  { %v2015_v7 = vpack.c.bf16 %v1952_v27, %v1951_v62  ;;  %4763 = vpow2.f32 %v1653_v34  ;;  %v1782_v56 = vsel %vm1310_vm2, %v6241_v31, 0.0  ;;  %v6249_v43 = vpop.eup %4751 }
 0x4d5   :  { %1828 = vadd.xlane.f32.xlu0 %v1827_v51  ;;  %4765 = vpow2.f32 %v1649_v12  ;;  %v6254_v18 = vpop.eup %4753  ;;  %v1800_v58 = vsel %vm1310_vm2, %v6249_v43, 0.0 }
 0x4d6   :  { %4279 = vmatprep.mubr.msk.bf16.mxu0 %vm1310_vm2, %v2015_v7  ;;  %1789 = vadd.xlane.f32.xlu1 %v1788_v19  ;;  %v1727_v17 = vpop.xlane.xlu1 %1726  ;;  %v1812_v49 = vsel %vm1310_vm2, %v6254_v18, 0.0  ;;  %v7165_v7 = vld [vmem:[#allocation26_spill] sm:$0xff]  ;;  %v7166_v19 = vld [vmem:[#allocation4_spill] sm:$0xff] }
 0x4d7   :  { %4280 = vmatmul.mubr.msk.bf16.vlgmr.msra.gmra.mxu0 %vm1310_vm2, %v2016_v21 }
 0x4d8   :  { %4288 = vmatpush3.bf16.msra.mxu0 %v5720_v20 }
 0x4d9   :  { %4289 = vmatprep.subr.bf16.mxu0 %v5782_v2 }
 0x4da   :  { %1783 = vadd.xlane.f32.xlu1 %v1782_v56  ;;  %v1463_v10 = vpop.xlane.xlu0 %1462  ;;  %v1454_v40 = vpop.xlane.xlu1 %1453 }
 0x4db   :  { %v1553_v46 = vsub.f32 %v5967_v54, %v1463_v10  ;;  %v1550_v61 = vsub.f32 %v5965_v8, %v1454_v40 }
 0x4dc   :  { %4290 = vmatpush3.bf16.msra.mxu0 %v5782_v2  ;;  %v4756_v25 = vpop.eup %4755 }
 0x4dd   :  { %v1667_v20 = vmul.f32 1.442695, %v1553_v46  ;;  %4291 = vmatprep.subr.bf16.mxu0 %v5739_v45  ;;  %v1661_v57 = vmul.f32 1.442695, %v1550_v61  ;;  %v4758_v36 = vpop.eup %4757  ;;  %v1958_v34 = vmul.f32 %v4756_v25, %v5949_v63 }
 0x4de   :  { %1801 = vadd.xlane.f32.xlu1 %v1800_v58  ;;  %v1457_v23 = vpop.xlane.xlu0 %1456  ;;  %v1721_v35 = vpop.xlane.xlu1 %1720  ;;  %v1955_v27 = vmul.f32 %v4758_v36, %v5922_v28  ;;  %v7167_v36 = vld [vmem:[#allocation25_spill] sm:$0xff] }
 0x4df   :  { %4767 = vpow2.f32 %v1667_v20  ;;  %v1551_v54 = vsub.f32 %v5972_v9, %v1457_v23  ;;  %v4760_v8 = vpop.eup %4759 }
 0x4e0   :  { %4769 = vpow2.f32 %v1661_v57  ;;  %4292 = vmatpush3.bf16.msra.mxu0 %v5739_v45  ;;  %v4762_v2 = vpop.eup %4761  ;;  %v7164_v45 = vld [vmem:[#allocation21_spill] sm:$0xff] }
 0x4e1   :  { %v1663_v37 = vmul.f32 1.442695, %v1551_v54  ;;  %4293 = vmatprep.subr.bf16.mxu0 %v5794_v14  ;;  %v6265_v59 = vpop.eup %4763  ;;  %v1956_v9 = vmul.f32 %v4762_v2, %v5955_v11  ;;  %v1957_v52 = vmul.f32 %v4760_v8, %v7164_v45 }
 0x4e2   :  { %1813 = vadd.xlane.f32.xlu1 %v1812_v49  ;;  %v1739_v62 = vpop.xlane.xlu0 %1738  ;;  %v1448_v32 = vpop.xlane.xlu1 %1447  ;;  %v1824_v63 = vsel %vm1310_vm2, %v6265_v59, 0.0  ;;  %v7168_v49 = vld [vmem:[#allocation30_spill] sm:$0xff] }
 0x4e3   :  { %4771 = vpow2.f32 %v1663_v37  ;;  %v1548_v51 = vsub.f32 %v7165_v7, %v1448_v32  ;;  %v2017_v12 = vpack.c.bf16 %v1956_v9, %v1955_v27  ;;  %v2018_v21 = vpack.c.bf16 %v1958_v34, %v1957_v52  ;;  %v6275_v56 = vpop.eup %4765  ;;  %v7169_v7 = vld [vmem:[#allocation28_spill] sm:$0xff] }
 0x4e4   :  { %4294 = vmatpush3.bf16.msra.mxu0 %v5794_v14  ;;  %v1818_v14 = vsel %vm1310_vm2, %v6275_v56, 0.0 }
 0x4e5   :  { %4319 = vmatprep.subr.bf16.mxu0 %v7166_v19  ;;  %v1657_v28 = vmul.f32 1.442695, %v1548_v51  ;;  %4283 = vmatprep.mubr.msk.bf16.mxu0 %vm1310_vm2, %v2017_v12 }
 0x4e6   :  { %1825 = vadd.xlane.f32.xlu1 %v1824_v63  ;;  %v1742_v11 = vpop.xlane.xlu0 %1741  ;;  %v1730_v10 = vpop.xlane.xlu1 %1729  ;;  %4284 = vmatmul.mubr.msk.bf16.gmra.mxu0 %vm1310_vm2, %v2018_v21  ;;  %v7170_v63 = vld [vmem:[#allocation29_spill] sm:$0xff] }
 0x4e7   :  { %4773 = vpow2.f32 %v1657_v28 }
 0x4e8   :  { %4775 = vrcp.f32 %v1730_v10 }
 0x4e9   :  { %4777 = vrcp.f32 %v1721_v35 }
 0x4ea   :  { %1819 = vadd.xlane.f32.xlu1 %v1818_v14  ;;  %v1475_v40 = vpop.xlane.xlu0 %1474  ;;  %4779 = vrcp.f32 %v1727_v17  ;;  %v1724_v46 = vpop.xlane.xlu1 %1723 }
 0x4eb   :  { %4781 = vrcp.f32 %v1724_v46  ;;  %v1557_v34 = vsub.f32 %v7168_v49, %v1475_v40  ;;  %v7172_v40 = vld [vmem:[#allocation23_spill] sm:$0xff] }
 0x4ec   :  { %v6281_v61 = vpop.eup %4767  ;;  %4783 = vrcp.f32 %v1739_v62 }
 0x4ed   :  { %v6283_v20 = vpop.eup %4769  ;;  %v1845_v58 = vsel %vm1310_vm2, %v6281_v61, 0.0  ;;  %4785 = vrcp.f32 %v1742_v11  ;;  %v1675_v28 = vmul.f32 1.442695, %v1557_v34  ;;  %v7171_v11 = vld [vmem:[#allocation33_spill] sm:$0xff] }
 0x4ee   :  { %v1836_v25 = vsel %vm1310_vm2, %v6283_v20, 0.0  ;;  %1846 = vadd.xlane.f32.xlu0 %v1845_v58  ;;  %v1466_v57 = vpop.xlane.xlu1 %1465  ;;  %v1736_v17 = vpop.xlane.xlu0 %1735  ;;  %v7173_v58 = vld [vmem:[#allocation31_spill] sm:$0xff] }
 0x4ef   :  { %1837 = vadd.xlane.f32.xlu1 %v1836_v25  ;;  %v1554_v35 = vsub.f32 %v7167_v36, %v1466_v57  ;;  %4787 = vrcp.f32 %v1736_v17  ;;  %v7174_v57 = vld [vmem:[#allocation22_spill] sm:$0xff]  ;;  %v7175_v17 = vld [vmem:[#allocation35_spill] sm:$0xff] }
 0x4f0   :  { %v6289_v23 = vpop.eup %4771 }
 0x4f1   :  { %v1839_v54 = vsel %vm1310_vm2, %v6289_v23, 0.0  ;;  %v1669_v8 = vmul.f32 1.442695, %v1554_v35 }
 0x4f2   :  { %1840 = vadd.xlane.f32.xlu0 %v1839_v54  ;;  %v1733_v2 = vpop.xlane.xlu1 %1732  ;;  %v1469_v62 = vpop.xlane.xlu0 %1468 }
 0x4f3   :  { %4789 = vpow2.f32 %v1669_v8  ;;  %v1555_v10 = vsub.f32 %v7171_v11, %v1469_v62  ;;  %v7178_v11 = vld [vmem:[#allocation34_spill] sm:$0xff] }
 0x4f4   :  { %v6294_v37 = vpop.eup %4773  ;;  %4791 = vrcp.f32 %v1733_v2 }
 0x4f5   :  { %v4776_v27 = vpop.eup %4775  ;;  %v1830_v9 = vsel %vm1310_vm2, %v6294_v37, 0.0 }
 0x4f6   :  { %v4778_v32 = vpop.eup %4777  ;;  %v1460_v45 = vpop.xlane.xlu1 %1459  ;;  %1831 = vadd.xlane.f32.xlu1 %v1830_v9  ;;  %v1962_v21 = vmul.f32 %v4776_v27, %v7170_v63  ;;  %v1671_v9 = vmul.f32 1.442695, %v1555_v10 }
 0x4f7   :  { %v4780_v52 = vpop.eup %4779  ;;  %v1552_v51 = vsub.f32 %v7169_v7, %v1460_v45  ;;  %v1959_v46 = vmul.f32 %v4778_v32, %v7172_v40  ;;  %v7176_v7 = vld [vmem:[#allocation12_spill] sm:$0xff] }
 0x4f8   :  { %v4782_v12 = vpop.eup %4781  ;;  %v1961_v36 = vmul.f32 %v4780_v52, %v7174_v57 }
 0x4f9   :  { %v1665_v14 = vmul.f32 1.442695, %v1552_v51  ;;  %v1960_v25 = vmul.f32 %v4782_v12, %v7173_v58  ;;  %v4784_v49 = vpop.eup %4783 }
 0x4fa   :  { %v1478_v35 = vpop.xlane.xlu1 %1477  ;;  %v2020_v2 = vpack.c.bf16 %v1962_v21, %v1961_v36  ;;  %v4786_v34 = vpop.eup %4785  ;;  %v7177_v21 = vld [vmem:[#allocation27_spill] sm:$0xff] }
 0x4fb   :  { %4793 = vpow2.f32 %v1665_v14  ;;  %v1558_v54 = vsub.f32 %v7175_v17, %v1478_v35  ;;  %v2019_v8 = vpack.c.bf16 %v1960_v25, %v1959_v46  ;;  %v7179_v14 = vld [vmem:[#allocation32_spill] sm:$0xff]  ;;  %v7181_v46 = vld [vmem:[#allocation7_spill] sm:$0xff] }
 0x4fc   :  { %4795 = vpow2.f32 %v1675_v28  ;;  %v4788_v32 = vpop.eup %4787  ;;  %v1966_v28 = vmul.f32 %v4786_v34, %v7177_v21 }
 0x4fd   :  { %v1677_v27 = vmul.f32 1.442695, %v1558_v54  ;;  %4295 = vmatprep.mubr.msk.bf16.mxu0 %vm1310_vm2, %v2019_v8  ;;  %v1964_v40 = vmul.f32 %v4788_v32, %v7179_v14  ;;  %v7182_v54 = vld [vmem:[#allocation8_spill] sm:$0xff] }
 0x4fe   :  { %v1472_v62 = vpop.xlane.xlu1 %1471  ;;  %4296 = vmatmul.mubr.msk.bf16.vlgmr.msra.gmra.mxu0 %vm1310_vm2, %v2020_v2 }
 0x4ff   :  { %4797 = vpow2.f32 %v1677_v27  ;;  %v1556_v45 = vsub.f32 %v6036_v30, %v1472_v62  ;;  %4320 = vmatpush3.bf16.msra.mxu0 %v7166_v19  ;;  %v7180_v30 = vld [vmem:[#allocation24_spill] sm:$0xff] }
 0x500   :  { %v6310_v52 = vpop.eup %4789  ;;  %4321 = vmatprep.subr.bf16.mxu0 %v7176_v7  ;;  %4799 = vpow2.f32 %v1671_v9  ;;  %v1965_v19 = vmul.f32 %v4784_v49, %v7180_v30 }
 0x501   :  { %v4792_v51 = vpop.eup %4791  ;;  %v1673_v12 = vmul.f32 1.442695, %v1556_v45  ;;  %v1848_v63 = vsel %vm1310_vm2, %v6310_v52, 0.0 }
 0x502   :  { %1849 = vadd.xlane.f32.xlu1 %v1848_v63  ;;  %v1963_v10 = vmul.f32 %v4792_v51, %v7178_v11  ;;  %v2022_v25 = vpack.c.bf16 %v1966_v28, %v1965_v19  ;;  %v7185_v28 = vld [vmem:[#allocation37_spill] sm:$0xff] }
 0x503   :  { %4322 = vmatpush3.bf16.msra.mxu0 %v7176_v7  ;;  %4801 = vpow2.f32 %v1673_v12  ;;  %v7184_v7 = vld [vmem:[#allocation13_spill] sm:$0xff] }
 0x504   :  { %4323 = vmatprep.subr.bf16.mxu0 %v7181_v46  ;;  %v2021_v58 = vpack.c.bf16 %v1964_v40, %v1963_v10  ;;  %v7186_v10 = vld [vmem:[#allocation38_spill] sm:$0xff] }
 0x506   :  { %v1487_v57 = vpop.xlane.xlu0 %1486  ;;  %4299 = vmatprep.mubr.msk.bf16.mxu0 %vm1310_vm2, %v2021_v58 }
 0x507   :  { %v1561_v36 = vsub.f32 %v6042_v29, %v1487_v57  ;;  %4300 = vmatmul.mubr.msk.bf16.gmra.mxu0 %vm1310_vm2, %v2022_v25  ;;  %v7183_v29 = vld [vmem:[#allocation36_spill] sm:$0xff]  ;;  %v7187_v57 = vld [vmem:[#allocation39_spill] sm:$0xff] }
 0x508   :  { %v6324_v35 = vpop.eup %4793  ;;  %4324 = vmatpush3.bf16.msra.mxu0 %v7181_v46 }
 0x509   :  { %v1683_v17 = vmul.f32 1.442695, %v1561_v36  ;;  %4325 = vmatprep.subr.bf16.mxu0 %v7182_v54  ;;  %v1842_v2 = vsel %vm1310_vm2, %v6324_v35, 0.0  ;;  %v6330_v9 = vpop.eup %4795 }
 0x50a   :  { %v1490_v8 = vpop.xlane.xlu1 %1489  ;;  %v1481_v49 = vpop.xlane.xlu0 %1480  ;;  %1843 = vadd.xlane.f32.xlu0 %v1842_v2  ;;  %v1857_v63 = vsel %vm1310_vm2, %v6330_v9, 0.0 }
 0x50b   :  { %4803 = vpow2.f32 %v1683_v17  ;;  %v1562_v27 = vsub.f32 %v6052_v55, %v1490_v8  ;;  %v1559_v34 = vsub.f32 %v7183_v29, %v1481_v49  ;;  %v7188_v17 = vld [vmem:[#allocation40_spill] sm:$0xff] }
 0x50c   :  { %v6334_v62 = vpop.eup %4797  ;;  %4326 = vmatpush3.bf16.msra.mxu0 %v7182_v54 }
 0x50d   :  { %v1679_v32 = vmul.f32 1.442695, %v1559_v34  ;;  %v1685_v45 = vmul.f32 1.442695, %v1562_v27  ;;  %4351 = vmatprep.subr.bf16.mxu0 %v7184_v7  ;;  %v1860_v12 = vsel %vm1310_vm2, %v6334_v62, 0.0  ;;  %v6342_v55 = vpop.eup %4799 }
 0x50e   :  { %v1484_v51 = vpop.xlane.xlu1 %1483  ;;  %v1499_v21 = vpop.xlane.xlu0 %1498  ;;  %1861 = vadd.xlane.f32.xlu1 %v1860_v12  ;;  %1858 = vadd.xlane.f32.xlu0 %v1857_v63  ;;  %v1851_v46 = vsel %vm1310_vm2, %v6342_v55, 0.0 }
 0x50f   :  { %v1560_v11 = vsub.f32 %v7185_v28, %v1484_v51  ;;  %v1565_v14 = vsub.f32 %v7186_v10, %v1499_v21  ;;  %4805 = vpow2.f32 %v1679_v32 }
 0x510   :  { %4807 = vpow2.f32 %v1685_v45  ;;  %v6348_v25 = vpop.eup %4801 }
 0x511   :  { %v1681_v40 = vmul.f32 1.442695, %v1560_v11  ;;  %v1691_v30 = vmul.f32 1.442695, %v1565_v14  ;;  %v1854_v49 = vsel %vm1310_vm2, %v6348_v25, 0.0 }
 0x512   :  { %v1502_v19 = vpop.xlane.xlu1 %1501  ;;  %v1493_v58 = vpop.xlane.xlu0 %1492  ;;  %1852 = vadd.xlane.f32.xlu0 %v1851_v46 }
 0x513   :  { %4809 = vpow2.f32 %v1681_v40  ;;  %v1563_v36 = vsub.f32 %v7187_v57, %v1493_v58  ;;  %v1566_v54 = vsub.f32 %v7188_v17, %v1502_v19 }
 0x514   :  { %4811 = vpow2.f32 %v1691_v30 }
 0x515   :  { %v1687_v8 = vmul.f32 1.442695, %v1563_v36  ;;  %v1693_v51 = vmul.f32 1.442695, %v1566_v54 }
 0x516   :  { %v1496_v2 = vpop.xlane.xlu1 %1495  ;;  %v1751_v27 = vpop.xlane.xlu0 %1750  ;;  %1855 = vadd.xlane.f32.xlu0 %v1854_v49 }
 0x517   :  { %v1564_v29 = vsub.f32 %v6080_v22, %v1496_v2  ;;  %4813 = vpow2.f32 %v1687_v8 }
 0x518   :  { %v6355_v34 = vpop.eup %4803 }
 0x519   :  { %7189 = vst [vmem:[#allocation21_spill] sm:$0xff] %v6355_v34  ;;  %v1689_v32 = vmul.f32 1.442695, %v1564_v29  ;;  %v1869_v45 = vsel %vm1310_vm2, %v6355_v34, 0.0 }
 0x51a   :  { %v1763_v12 = vpop.xlane.xlu0 %1762  ;;  %1870 = vadd.xlane.f32.xlu0 %v1869_v45 }
 0x51b   :  { %4815 = vpow2.f32 %v1689_v32  ;;  %v7196_v32 = vld [vmem:[#allocation3_spill] sm:$0xff] }
 0x51c   :  { %v6359_v63 = vpop.eup %4805  ;;  %4817 = vpow2.f32 %v1693_v51 }
 0x51d   :  { %v1863_v21 = vsel %vm1310_vm2, %v6359_v63, 0.0  ;;  %v6363_v22 = vpop.eup %4807  ;;  %4819 = vrcp.f32 %v1751_v27 }
 0x51e   :  { %v1757_v28 = vpop.xlane.xlu0 %1756  ;;  %7190 = vst [vmem:[#allocation26_spill] sm:$0xff] %v6363_v22  ;;  %1864 = vadd.xlane.f32.xlu0 %v1863_v21  ;;  %v1872_v14 = vsel %vm1310_vm2, %v6363_v22, 0.0  ;;  %v7197_v21 = vld [vmem:[#allocation2_spill] sm:$0xff] }
 0x520   :  { %v6365_v11 = vpop.eup %4809 }
 0x521   :  { %7191 = vst [vmem:[#allocation4_spill] sm:$0xff] %v6365_v11  ;;  %v1866_v10 = vsel %vm1310_vm2, %v6365_v11, 0.0  ;;  %v6371_v30 = vpop.eup %4811 }
 0x522   :  { %1867 = vadd.xlane.f32.xlu1 %v1866_v10  ;;  %v1766_v40 = vpop.xlane.xlu0 %1765  ;;  %7192 = vst [vmem:[#allocation25_spill] sm:$0xff] %v6371_v30  ;;  %1873 = vadd.xlane.f32.xlu0 %v1872_v14  ;;  %v1881_v19 = vsel %vm1310_vm2, %v6371_v30, 0.0  ;;  %v6391_v10 = vpop.permute.xlu1 %2674 }
 0x524   :  { %v6375_v58 = vpop.eup %4813 }
 0x525   :  { %7193 = vst [vmem:[#allocation30_spill] sm:$0xff] %v6375_v58  ;;  %v1875_v17 = vsel %vm1310_vm2, %v6375_v58, 0.0 }
 0x526   :  { %v1760_v46 = vpop.xlane.xlu0 %1759  ;;  %1882 = vadd.xlane.f32.xlu0 %v1881_v19 }
 0x527   :  { %4821 = vrcp.f32 %v1760_v46 }
 0x528   :  { %v6377_v57 = vpop.eup %4815 }
 0x529   :  { %7194 = vst [vmem:[#allocation28_spill] sm:$0xff] %v6377_v57  ;;  %v1878_v36 = vsel %vm1310_vm2, %v6377_v57, 0.0  ;;  %v6383_v54 = vpop.eup %4817 }
 0x52a   :  { %1879 = vadd.xlane.f32.xlu1 %v1878_v36  ;;  %7195 = vst [vmem:[#allocation29_spill] sm:$0xff] %v6383_v54  ;;  %1876 = vadd.xlane.f32.xlu0 %v1875_v17  ;;  %v1775_v8 = vpop.xlane.xlu0 %1774  ;;  %v1884_v2 = vsel %vm1310_vm2, %v6383_v54, 0.0  ;;  %v4820_v54 = vpop.eup %4819 }
 0x52e   :  { %1885 = vadd.xlane.f32.xlu0 %v1884_v2  ;;  %v1769_v49 = vpop.xlane.xlu0 %1768 }
 0x532   :  { %v1787_v29 = vpop.xlane.xlu0 %1786 }
 0x534   :  { %v4822_v46 = vpop.eup %4821 }
 0x536   :  { %v1781_v45 = vpop.xlane.xlu0 %1780 }
 0x53a   :  { %v1799_v51 = vpop.xlane.xlu0 %1798 }
 0x53b   :  { %2670 = vrot.lane.b32.xlu1 %v7196_v32, %s4999_s16 }
 0x53e   :  { %v1793_v14 = vpop.xlane.xlu0 %1792 }
 0x542   :  { %v1796_v17 = vpop.xlane.xlu0 %1795 }
 0x544   :  { %2672 = vrot.lane.b32.xlu0 %v7197_v21, %s4999_s16 }
 0x546   :  { %v6393_v32 = vpop.xlane.xlu0 %1810 }
 0x54a   :  { %v1805_v27 = vpop.xlane.xlu0 %1804 }
 0x54b   :  { %v1745_v19 = vpop.xlane.xlu1 %1744 }
 0x54f   :  { %v1754_v36 = vpop.xlane.xlu1 %1753 }
 0x550   :  { %4823 = vrcp.f32 %v1754_v36 }
 0x551   :  { %4825 = vrcp.f32 %v1745_v19 }
 0x552   :  { %4827 = vrcp.f32 %v1757_v28 }
 0x553   :  { %v1748_v2 = vpop.xlane.xlu1 %1747 }
 0x554   :  { %4829 = vrcp.f32 %v1748_v2 }
 0x555   :  { %4831 = vrcp.f32 %v1763_v12 }
 0x556   :  { %4833 = vrcp.f32 %v1766_v40  ;;  %v1808_v40 = vpop.xlane.xlu0 %1807 }
 0x557   :  { %v1778_v30 = vpop.xlane.xlu1 %1777  ;;  %4835 = vrcp.f32 %v1775_v8 }
 0x558   :  { %4837 = vrcp.f32 %v1778_v30 }
 0x559   :  { %4839 = vrcp.f32 %v1769_v49  ;;  %v1972_v49 = vmul.f32 %v4822_v46, %v6108_v13  ;;  %v7200_v46 = vld [vmem:[#allocation6_spill] sm:$0xff] }
 0x55a   :  { %4841 = vrcp.f32 %v1796_v17 }
 0x55b   :  { %v1772_v21 = vpop.xlane.xlu1 %1771 }
 0x55c   :  { %4843 = vrcp.f32 %v1772_v21  ;;  %v7198_v21 = vld [vmem:[#allocation41_spill] sm:$0xff] }
 0x55d   :  { %4845 = vrcp.f32 %v1793_v14  ;;  %v4824_v36 = vpop.eup %4823  ;;  %v1969_v57 = vmul.f32 %v4820_v54, %v7198_v21 }
 0x55e   :  { %v4826_v19 = vpop.eup %4825  ;;  %v1970_v12 = vmul.f32 %v4824_v36, %v6190_v39 }
 0x55f   :  { %v1790_v28 = vpop.xlane.xlu1 %1789  ;;  %v4828_v58 = vpop.eup %4827  ;;  %v1967_v30 = vmul.f32 %v4826_v19, %v6172_v44  ;;  %v7201_v19 = vld [vmem:[#allocation43_spill] sm:$0xff] }
 0x560   :  { %4847 = vrcp.f32 %v1790_v28  ;;  %v1971_v11 = vmul.f32 %v4828_v58, %v6094_v47  ;;  %v1823_v58 = vpop.xlane.xlu0 %1822 }
 0x561   :  { %v4830_v2 = vpop.eup %4829  ;;  %4849 = vrcp.f32 %v1781_v45  ;;  %v2024_v45 = vpack.c.bf16 %v1970_v12, %v1969_v57  ;;  %v7202_v12 = vld [vmem:[#allocation42_spill] sm:$0xff] }
 0x562   :  { %v1968_v8 = vmul.f32 %v4830_v2, %v6201_v5  ;;  %v4832_v17 = vpop.eup %4831  ;;  %4851 = vrcp.f32 %v1787_v29  ;;  %v2025_v44 = vpack.c.bf16 %v1972_v49, %v1971_v11  ;;  %v7199_v29 = vld [vmem:[#allocation5_spill] sm:$0xff] }
 0x563   :  { %v1784_v14 = vpop.xlane.xlu1 %1783  ;;  %v4834_v34 = vpop.eup %4833  ;;  %v7203_v49 = vld [vmem:[#allocation9_spill] sm:$0xff] }
 0x564   :  { %4853 = vrcp.f32 %v1784_v14  ;;  %v2023_v22 = vpack.c.bf16 %v1968_v8, %v1967_v30  ;;  %v4836_v39 = vpop.eup %4835  ;;  %v1817_v21 = vpop.xlane.xlu0 %1816 }
 0x565   :  { %4855 = vrcp.f32 %v1808_v40  ;;  %v4838_v36 = vpop.eup %4837  ;;  %v1977_v28 = vmul.f32 %v4836_v39, %v7201_v19  ;;  %v1973_v40 = vmul.f32 %v4832_v17, %v7202_v12  ;;  %v7208_v19 = vld [vmem:[#allocation10_spill] sm:$0xff]  ;;  %v7210_v12 = vld [vmem:[#allocation20_spill] sm:$0xff] }
 0x566   :  { %4857 = vrcp.f32 %v1799_v51  ;;  %4311 = vmatprep.mubr.msk.bf16.mxu1 %vm1310_vm2, %v2023_v22  ;;  %v4840_v5 = vpop.eup %4839  ;;  %v1978_v57 = vmul.f32 %v4838_v36, %v6211_v48  ;;  %v1974_v22 = vmul.f32 %v4834_v34, %v6098_v3  ;;  %v7205_v36 = vld [vmem:[#allocation14_spill] sm:$0xff] }
 0x567   :  { %4859 = vrcp.f32 %v1805_v27  ;;  %v1802_v13 = vpop.xlane.xlu1 %1801  ;;  %4312 = vmatmul.mubr.msk.bf16.vlgmr.msra.gmra.mxu1 %vm1310_vm2, %v2024_v45  ;;  %v4842_v54 = vpop.eup %4841  ;;  %v1975_v51 = vmul.f32 %v4840_v5, %v6120_v42 }
 0x568   :  { %4861 = vrcp.f32 %v1802_v13  ;;  %4336 = vmatpush3.bf16.msra.mxu1 %v7199_v29  ;;  %4315 = vmatprep.mubr.msk.bf16.mxu1 %vm1310_vm2, %v2025_v44  ;;  %v1984_v30 = vmul.f32 %v4842_v54, %v6159_v6  ;;  %v2028_v8 = vpack.c.bf16 %v1978_v57, %v1977_v28  ;;  %v2026_v3 = vpack.c.bf16 %v1974_v22, %v1973_v40  ;;  %v7206_v57 = vld [vmem:[#allocation17_spill] sm:$0xff]  ;;  %v1835_v22 = vpop.xlane.xlu0 %1834 }
 0x569   :  { %v4844_v47 = vpop.eup %4843  ;;  %4337 = vmatprep.subr.bf16.mxu1 %v7200_v46 }
 0x56a   :  { %v4846_v11 = vpop.eup %4845  ;;  %v1976_v27 = vmul.f32 %v4844_v47, %v6213_v0 }
 0x56b   :  { %v1814_v2 = vpop.xlane.xlu1 %1813  ;;  %v1983_v34 = vmul.f32 %v4846_v11, %v6150_v33  ;;  %v7204_v33 = vld [vmem:[#allocation11_spill] sm:$0xff] }
 0x56c   :  { %4863 = vrcp.f32 %v1814_v2  ;;  %4338 = vmatpush3.bf16.msra.mxu1 %v7200_v46  ;;  %v2027_v48 = vpack.c.bf16 %v1976_v27, %v1975_v51  ;;  %v7207_v46 = vld [vmem:[#allocation15_spill] sm:$0xff]  ;;  %v7209_v2 = vld [vmem:[#allocation16_spill] sm:$0xff] }
 0x56d   :  { %4339 = vmatprep.subr.bf16.mxu1 %v7203_v49  ;;  %v4848_v42 = vpop.eup %4847  ;;  %4865 = vrcp.f32 %v6393_v32  ;;  %v2031_v6 = vpack.c.bf16 %v1984_v30, %v1983_v34 }
 0x56e   :  { %4327 = vmatprep.mubr.msk.bf16.mxu0 %vm1310_vm2, %v2027_v48  ;;  %v4850_v0 = vpop.eup %4849  ;;  %v1982_v32 = vmul.f32 %v4848_v42, %v6230_v38 }
 0x56f   :  { %v1826_v17 = vpop.xlane.xlu1 %1825  ;;  %4316 = vmatmul.mubr.msk.bf16.gmra.mxu1 %vm1310_vm2, %v2026_v3  ;;  %4328 = vmatmul.mubr.msk.bf16.vlgmr.msra.gmra.mxu0 %vm1310_vm2, %v2028_v8  ;;  %v4852_v14 = vpop.eup %4851  ;;  %v1979_v44 = vmul.f32 %v4850_v0, %v6138_v15  ;;  %v7211_v3 = vld [vmem:[#allocation18_spill] sm:$0xff] }
 0x570   :  { %4340 = vmatpush3.bf16.msra.mxu1 %v7203_v49  ;;  %4352 = vmatpush3.bf16.msra.mxu0 %v7184_v7  ;;  %4867 = vrcp.f32 %v1826_v17  ;;  %v1981_v7 = vmul.f32 %v4852_v14, %v6129_v24  ;;  %v7212_v17 = vld [vmem:[#allocation19_spill] sm:$0xff] }
 0x571   :  { %v4854_v39 = vpop.eup %4853  ;;  %4341 = vmatprep.subr.bf16.mxu1 %v7204_v33  ;;  %4343 = vmatprep.mubr.msk.bf16.mxu1 %vm1310_vm2, %v2031_v6  ;;  %4869 = vrcp.f32 %v1817_v21 }
 0x572   :  { %v4856_v45 = vpop.eup %4855  ;;  %4353 = vmatprep.subr.bf16.mxu0 %v7205_v36  ;;  %v1980_v5 = vmul.f32 %v4854_v39, %v6241_v31  ;;  %4871 = vrcp.f32 %v1823_v58  ;;  %v2030_v15 = vpack.c.bf16 %v1982_v32, %v1981_v7 }
 0x573   :  { %v4858_v13 = vpop.eup %4857  ;;  %v1820_v54 = vpop.xlane.xlu1 %1819  ;;  %v1988_v31 = vmul.f32 %v4856_v45, %v6186_v53 }
 0x574   :  { %v4860_v29 = vpop.eup %4859  ;;  %4873 = vrcp.f32 %v1820_v54  ;;  %4342 = vmatpush3.bf16.msra.mxu1 %v7204_v33  ;;  %4354 = vmatpush3.bf16.msra.mxu0 %v7205_v36  ;;  %v2029_v38 = vpack.c.bf16 %v1980_v5, %v1979_v44  ;;  %v1985_v58 = vmul.f32 %v4858_v13, %v6143_v1 }
 0x575   :  { %v4862_v47 = vpop.eup %4861  ;;  %4355 = vmatprep.subr.bf16.mxu0 %v7206_v57  ;;  %4367 = vmatprep.subr.bf16.mxu1 %v7207_v46  ;;  %v1987_v11 = vmul.f32 %v4860_v29, %v6176_v60 }
 0x576   :  { %v1986_v24 = vmul.f32 %v4862_v47, %v6249_v43  ;;  %4331 = vmatprep.mubr.msk.bf16.mxu0 %vm1310_vm2, %v2029_v38  ;;  %v1829_v43 = vpop.xlane.xlu0 %1828 }
 0x577   :  { %4332 = vmatmul.mubr.msk.bf16.gmra.mxu0 %vm1310_vm2, %v2030_v15  ;;  %v2033_v28 = vpack.c.bf16 %v1988_v31, %v1987_v11 }
 0x578   :  { %v2032_v51 = vpack.c.bf16 %v1986_v24, %v1985_v58  ;;  %4356 = vmatpush3.bf16.msra.mxu0 %v7206_v57  ;;  %v1838_v1 = vpop.xlane.xlu1 %1837 }
 0x579   :  { %v4864_v27 = vpop.eup %4863  ;;  %4357 = vmatprep.subr.bf16.mxu0 %v7208_v19  ;;  %4875 = vrcp.f32 %v1838_v1 }
 0x57a   :  { %4344 = vmatmul.mubr.msk.bf16.vlgmr.msra.gmra.mxu1 %vm1310_vm2, %v2032_v51  ;;  %v4866_v53 = vpop.eup %4865  ;;  %v1990_v60 = vmul.f32 %v4864_v27, %v6254_v18  ;;  %4877 = vrcp.f32 %v1829_v43 }
 0x57b   :  { %4368 = vmatpush3.bf16.msra.mxu1 %v7207_v46  ;;  %4347 = vmatprep.mubr.msk.bf16.mxu1 %vm1310_vm2, %v2033_v28  ;;  %v1989_v30 = vmul.f32 %v4866_v53, %v6169_v41  ;;  %4879 = vrcp.f32 %v1835_v22 }
 0x57c   :  { %4358 = vmatpush3.bf16.msra.mxu0 %v7208_v19  ;;  %4369 = vmatprep.subr.bf16.mxu1 %v7209_v2 }
 0x57d   :  { %4383 = vmatprep.subr.bf16.mxu0 %v7210_v12  ;;  %v4868_v40 = vpop.eup %4867  ;;  %v2034_v34 = vpack.c.bf16 %v1990_v60, %v1989_v30 }
 0x57e   :  { %v4870_v48 = vpop.eup %4869  ;;  %v1994_v0 = vmul.f32 %v4868_v40, %v6265_v59 }
 0x57f   :  { %4370 = vmatpush3.bf16.msra.mxu1 %v7209_v2  ;;  %v4872_v8 = vpop.eup %4871  ;;  %v1832_v49 = vpop.xlane.xlu1 %1831  ;;  %v1991_v18 = vmul.f32 %v4870_v48, %v6207_v26 }
 0x580   :  { %4371 = vmatprep.subr.bf16.mxu1 %v7211_v3  ;;  %4881 = vrcp.f32 %v1832_v49  ;;  %v1993_v21 = vmul.f32 %v4872_v8, %v6195_v4  ;;  %v1847_v26 = vpop.xlane.xlu0 %1846 }
 0x581   :  { %v4874_v42 = vpop.eup %4873 }
 0x582   :  { %4348 = vmatmul.mubr.msk.bf16.gmra.mxu1 %vm1310_vm2, %v2034_v34  ;;  %v1992_v41 = vmul.f32 %v4874_v42, %v6275_v56  ;;  %v2036_v14 = vpack.c.bf16 %v1994_v0, %v1993_v21  ;;  %v7214_v0 = vld [vmem:[#allocation26_spill] sm:$0xff]  ;;  %v7215_v21 = vld [vmem:[#allocation21_spill] sm:$0xff] }
 0x583   :  { %4372 = vmatpush3.bf16.msra.mxu1 %v7211_v3 }
 0x584   :  { %4373 = vmatprep.subr.bf16.mxu1 %v7212_v17  ;;  %v2035_v6 = vpack.c.bf16 %v1992_v41, %v1991_v18  ;;  %v1841_v44 = vpop.xlane.xlu0 %1840 }
 0x586   :  { %4359 = vmatprep.mubr.msk.bf16.mxu0 %vm1310_vm2, %v2035_v6  ;;  %v4876_v59 = vpop.eup %4875 }
 0x587   :  { %4374 = vmatpush3.bf16.msra.mxu1 %v7212_v17  ;;  %4360 = vmatmul.mubr.msk.bf16.vlgmr.msra.gmra.mxu0 %vm1310_vm2, %v2036_v14  ;;  %v4878_v56 = vpop.eup %4877  ;;  %v1998_v33 = vmul.f32 %v4876_v59, %v6283_v20  ;;  %v7217_v59 = vld [vmem:[#allocation30_spill] sm:$0xff] }
 0x588   :  { %4384 = vmatpush3.bf16.msra.mxu0 %v7210_v12  ;;  %v4880_v4 = vpop.eup %4879  ;;  %v1995_v45 = vmul.f32 %v4878_v56, %v6222_v50 }
 0x589   :  { %4385 = vmatprep.subr.bf16.mxu0 %v6391_v10  ;;  %v1997_v5 = vmul.f32 %v4880_v4, %v6217_v16 }
 0x58b   :  { %v1850_v32 = vpop.xlane.xlu1 %1849  ;;  %v2038_v54 = vpack.c.bf16 %v1998_v33, %v1997_v5 }
 0x58c   :  { %4386 = vmatpush3.bf16.msra.mxu0 %v6391_v10  ;;  %4883 = vrcp.f32 %v1850_v32  ;;  %v7218_v32 = vld [vmem:[#allocation29_spill] sm:$0xff] }
 0x58d   :  { %v4882_v39 = vpop.eup %4881  ;;  %4885 = vrcp.f32 %v1841_v44 }
 0x58e   :  { %v1996_v36 = vmul.f32 %v4882_v39, %v6294_v37  ;;  %4887 = vrcp.f32 %v1847_v26 }
 0x590   :  { %v2037_v13 = vpack.c.bf16 %v1996_v36, %v1995_v45  ;;  %v7219_v36 = vld [vmem:[#allocation25_spill] sm:$0xff] }
 0x592   :  { %4363 = vmatprep.mubr.msk.bf16.mxu0 %vm1310_vm2, %v2037_v13 }
 0x593   :  { %4364 = vmatmul.mubr.msk.bf16.gmra.mxu0 %vm1310_vm2, %v2038_v54  ;;  %v1844_v10 = vpop.xlane.xlu0 %1843 }
 0x594   :  { %4889 = vrcp.f32 %v1844_v10 }
 0x597   :  { %v1859_v20 = vpop.xlane.xlu0 %1858  ;;  %v1862_v7 = vpop.xlane.xlu1 %1861 }
 0x598   :  { %4891 = vrcp.f32 %v1862_v7  ;;  %v6494_v13 = vpop.f32.mrf.mxu0 }
 0x599   :  { %4893 = vrcp.f32 %v1859_v20  ;;  %v4884_v50 = vpop.eup %4883 }
 0x59a   :  { %v4886_v37 = vpop.eup %4885  ;;  %v2002_v57 = vmul.f32 %v4884_v50, %v6310_v52  ;;  %v6496_v54 = vpop.f32.mrf.mxu0 }
 0x59b   :  { %v1853_v29 = vpop.xlane.xlu0 %1852  ;;  %v4888_v38 = vpop.eup %4887  ;;  %v1999_v46 = vmul.f32 %v4886_v37, %v6289_v23 }
 0x59c   :  { %4895 = vrcp.f32 %v1853_v29  ;;  %v2001_v31 = vmul.f32 %v4888_v38, %v6281_v61  ;;  %v6498_v10 = vpop.f32.mrf.mxu0 }
 0x59e   :  { %v2040_v24 = vpack.c.bf16 %v2002_v57, %v2001_v31  ;;  %v6500_v20 = vpop.f32.mrf.mxu0 }
 0x59f   :  { %v1856_v16 = vpop.xlane.xlu0 %1855 }
 0x5a0   :  { %4897 = vrcp.f32 %v1856_v16 }
 0x5a1   :  { %v4890_v47 = vpop.eup %4889 }
 0x5a2   :  { %v2000_v15 = vmul.f32 %v4890_v47, %v6324_v35 }
 0x5a3   :  { %v1871_v58 = vpop.xlane.xlu0 %1870 }
 0x5a4   :  { %v2039_v22 = vpack.c.bf16 %v2000_v15, %v1999_v46 }
 0x5a5   :  { %v4892_v51 = vpop.eup %4891 }
 0x5a6   :  { %4375 = vmatprep.mubr.msk.bf16.mxu1 %vm1310_vm2, %v2039_v22  ;;  %v4894_v27 = vpop.eup %4893  ;;  %v2006_v61 = vmul.f32 %v4892_v51, %v6334_v62  ;;  %v6502_v7 = vpop.f32.mrf.mxu0 }
 0x5a7   :  { %4376 = vmatmul.mubr.msk.bf16.vlgmr.msra.gmra.mxu1 %vm1310_vm2, %v2040_v24  ;;  %v1865_v11 = vpop.xlane.xlu0 %1864  ;;  %v2005_v35 = vmul.f32 %v4894_v27, %v6330_v9 }
 0x5a8   :  { %4899 = vrcp.f32 %v1865_v11  ;;  %v6504_v29 = vpop.f32.mrf.mxu0 }
 0x5a9   :  { %v4896_v28 = vpop.eup %4895  ;;  %v2042_v60 = vpack.c.bf16 %v2006_v61, %v2005_v35 }
 0x5aa   :  { %v2003_v53 = vmul.f32 %v4896_v28, %v6342_v55  ;;  %v6506_v50 = vpop.f32.mrf.mxu0 }
 0x5ab   :  { %v1868_v19 = vpop.xlane.xlu1 %1867  ;;  %v1874_v52 = vpop.xlane.xlu0 %1873 }
 0x5ac   :  { %4901 = vrcp.f32 %v1868_v19  ;;  %v6508_v37 = vpop.f32.mrf.mxu0 }
 0x5ad   :  { %v4898_v23 = vpop.eup %4897  ;;  %4903 = vrcp.f32 %v1874_v52 }
 0x5ae   :  { %v2004_v1 = vmul.f32 %v4898_v23, %v6348_v25  ;;  %4905 = vrcp.f32 %v1871_v58  ;;  %v7213_v25 = vld [vmem:[#allocation4_spill] sm:$0xff] }
 0x5af   :  { %v1883_v43 = vpop.xlane.xlu0 %1882 }
 0x5b0   :  { %v2041_v2 = vpack.c.bf16 %v2004_v1, %v2003_v53 }
 0x5b2   :  { %4379 = vmatprep.mubr.msk.bf16.mxu1 %vm1310_vm2, %v2041_v2 }
 0x5b3   :  { %v1880_v12 = vpop.xlane.xlu1 %1879  ;;  %4380 = vmatmul.mubr.msk.bf16.gmra.mxu1 %vm1310_vm2, %v2042_v60  ;;  %v1877_v40 = vpop.xlane.xlu0 %1876 }
 0x5b4   :  { %4907 = vrcp.f32 %v1880_v12 }
 0x5b5   :  { %4909 = vrcp.f32 %v1877_v40  ;;  %v4900_v9 = vpop.eup %4899 }
 0x5b6   :  { %4911 = vrcp.f32 %v1883_v43  ;;  %v2007_v55 = vmul.f32 %v4900_v9, %v6359_v63  ;;  %v7216_v63 = vld [vmem:[#allocation28_spill] sm:$0xff] }
 0x5b7   :  { %v1886_v62 = vpop.xlane.xlu0 %1885  ;;  %v2671_v42 = vpop.permute.xlu1 %2670 }
 0x5b8   :  { %4913 = vrcp.f32 %v1886_v62 }
 0x5b9   :  { %v4902_v30 = vpop.eup %4901 }
 0x5ba   :  { %v2008_v48 = vmul.f32 %v4902_v30, %v7213_v25  ;;  %v4904_v8 = vpop.eup %4903 }
 0x5bb   :  { %v2673_v49 = vpop.permute.xlu0 %2672  ;;  %v4906_v34 = vpop.eup %4905  ;;  %v2010_v18 = vmul.f32 %v4904_v8, %v7214_v0 }
 0x5bc   :  { %v2043_v3 = vpack.c.bf16 %v2008_v48, %v2007_v55  ;;  %4387 = vmatprep.subr.bf16.mxu0 %v2673_v49  ;;  %v2009_v17 = vmul.f32 %v4906_v34, %v7215_v21 }
 0x5bd   :  { %4388 = vmatpush3.bf16.msra.mxu0 %v2673_v49 }
 0x5be   :  { %4391 = vmatprep.mubr.msk.bf16.mxu0 %vm1310_vm2, %v2043_v3  ;;  %4389 = vmatprep.subr.bf16.mxu0 %v2671_v42  ;;  %v2044_v26 = vpack.c.bf16 %v2010_v18, %v2009_v17  ;;  %v6510_v16 = vpop.f32.mrf.mxu0 }
 0x5c0   :  { %v6512_v38 = vpop.f32.mrf.mxu0 }
 0x5c1   :  { %v4908_v41 = vpop.eup %4907  ;;  %4390 = vmatpush3.bf16.msra.mxu0 %v2671_v42 }
 0x5c2   :  { %v4910_v6 = vpop.eup %4909  ;;  %v2012_v14 = vmul.f32 %v4908_v41, %v7216_v63  ;;  %v6514_v47 = vpop.f32.mrf.mxu0 }
 0x5c3   :  { %v2011_v56 = vmul.f32 %v4910_v6, %v7217_v59  ;;  %v4912_v4 = vpop.eup %4911  ;;  %v4621_v6 = vld [vmem:[%s7064_s5 + $0x8] sm:$0xff]  }
 0x5c4   :  { %4392 = vmatmul.mubr.msk.bf16.vlgmr.msra.gmra.mxu0 %vm1310_vm2, %v2044_v26  ;;  %v2013_v44 = vmul.f32 %v4912_v4, %v7219_v36  ;;  %v6516_v57 = vpop.f32.mrf.mxu0  ;;  %4399 = vmatprep.subr.bf16.mxu1 %v4621_v6 }
 0x5c5   :  { %v2045_v39 = vpack.c.bf16 %v2012_v14, %v2011_v56  ;;  %v4914_v33 = vpop.eup %4913  ;;  %4400 = vmatpush3.bf16.msra.mxu1 %v4621_v6  ;;  %v4622_v14 = vld [vmem:[%s7064_s5] sm:$0xff]  }
 0x5c6   :  { %v2014_v45 = vmul.f32 %v4914_v33, %v7218_v32  ;;  %4401 = vmatprep.subr.bf16.mxu1 %v4622_v14 }
 0x5c7   :  { %4395 = vmatprep.mubr.msk.bf16.mxu0 %vm1310_vm2, %v2045_v39  ;;  %v6518_v46 = vpop.f32.mrf.mxu0 }
 0x5c8   :  { %v2046_v5 = vpack.c.bf16 %v2014_v45, %v2013_v44 }
 0x5c9   :  { %v6520_v15 = vpop.f32.mrf.mxu0  ;;  %4402 = vmatpush3.bf16.msra.mxu1 %v4622_v14 }
 0x5cb   :  { %v6522_v58 = vpop.f32.mrf.mxu0 }
 0x5cc   :  { %4396 = vmatmul.mubr.msk.bf16.gmra.mxu0 %vm1310_vm2, %v2046_v5 }
 0x5cd   :  { %v6524_v51 = vpop.f32.mrf.mxu0 }
 0x627   :  { %v4313_v31 = vpop.f32.mrf.mxu1 }
 0x629   :  { %v2283_v22 = vpop.f32.mrf.mxu1 }
 0x62b   :  { %v4314_v24 = vpop.f32.mrf.mxu1 }
 0x62c   :  { %v4499_v11 = vpack.i.bf16 %v4314_v24, %v4313_v31 }
 0x62d   :  { %v2286_v27 = vpop.f32.mrf.mxu1 }
 0x62e   :  { %v4504_v19 = vpack.i.bf16 %v2286_v27, %v2283_v22  ;;  %4500 = vrot.lane.b32.xlu1 %v4499_v11, %s5000_s17 }
 0x62f   :  { %v4317_v28 = vpop.f32.mrf.mxu1  ;;  %v4329_v52 = vpop.f32.mrf.mxu0 }
 0x630   :  { %4505 = vrot.lane.b32.xlu0 %v4504_v19, %s5000_s17 }
 0x631   :  { %v2299_v23 = vpop.f32.mrf.mxu1  ;;  %v2372_v35 = vpop.f32.mrf.mxu0 }
 0x633   :  { %v4318_v61 = vpop.f32.mrf.mxu1  ;;  %v4330_v53 = vpop.f32.mrf.mxu0 }
 0x634   :  { %v4509_v1 = vpack.i.bf16 %v4318_v61, %v4317_v28  ;;  %v4519_v12 = vpack.i.bf16 %v4330_v53, %v4329_v52 }
 0x635   :  { %v2302_v43 = vpop.f32.mrf.mxu1  ;;  %v2375_v60 = vpop.f32.mrf.mxu0 }
 0x636   :  { %v4514_v2 = vpack.i.bf16 %v2302_v43, %v2299_v23  ;;  %4510 = vrot.lane.b32.xlu1 %v4509_v1, %s5000_s17  ;;  %v4524_v40 = vpack.i.bf16 %v2375_v60, %v2372_v35 }
 0x637   :  { %v4333_v18 = vpop.f32.mrf.mxu0 }
 0x638   :  { %4515 = vrot.lane.b32.xlu0 %v4514_v2, %s5000_s17 }
 0x639   :  { %v2388_v41 = vpop.f32.mrf.mxu0 }
 0x63a   :  { %4520 = vrot.lane.b32.xlu1 %v4519_v12, %s5000_s17  ;;  %v4345_v9 = vpop.f32.mrf.mxu1 }
 0x63b   :  { %v4334_v21 = vpop.f32.mrf.mxu0 }
 0x63c   :  { %4525 = vrot.lane.b32.xlu0 %v4524_v40, %s5000_s17  ;;  %v2461_v62 = vpop.f32.mrf.mxu1  ;;  %v4584_v23 = vpack.i.bf16 %v4334_v21, %v4333_v18 }
 0x63d   :  { %v2391_v17 = vpop.f32.mrf.mxu0 }
 0x63e   :  { %v4346_v30 = vpop.f32.mrf.mxu1  ;;  %v4579_v35 = vpack.i.bf16 %v2391_v17, %v2388_v41 }
 0x63f   :  { %v4529_v55 = vpack.i.bf16 %v4346_v30, %v4345_v9 }
 0x640   :  { %v2464_v25 = vpop.f32.mrf.mxu1 }
 0x641   :  { %v4534_v48 = vpack.i.bf16 %v2464_v25, %v2461_v62  ;;  %4530 = vrot.lane.b32.xlu1 %v4529_v55, %s5001_s18 }
 0x642   :  { %v4349_v8 = vpop.f32.mrf.mxu1 }
 0x643   :  { %4535 = vrot.lane.b32.xlu0 %v4534_v48, %s5001_s18 }
 0x644   :  { %v2477_v49 = vpop.f32.mrf.mxu1 }
 0x646   :  { %v4350_v3 = vpop.f32.mrf.mxu1 }
 0x647   :  { %v4539_v34 = vpack.i.bf16 %v4350_v3, %v4349_v8  ;;  %v4361_v63 = vpop.f32.mrf.mxu0 }
 0x648   :  { %v2480_v42 = vpop.f32.mrf.mxu1 }
 0x649   :  { %v4544_v0 = vpack.i.bf16 %v2480_v42, %v2477_v49  ;;  %4540 = vrot.lane.b32.xlu1 %v4539_v34, %s5001_s18  ;;  %v2550_v26 = vpop.f32.mrf.mxu0 }
 0x64b   :  { %4545 = vrot.lane.b32.xlu0 %v4544_v0, %s5001_s18  ;;  %v4362_v4 = vpop.f32.mrf.mxu0 }
 0x64c   :  { %v4564_v44 = vpack.i.bf16 %v4362_v4, %v4361_v63 }
 0x64d   :  { %v2553_v36 = vpop.f32.mrf.mxu0 }
 0x64e   :  { %v4559_v5 = vpack.i.bf16 %v2553_v36, %v2550_v26 }
 0x653   :  { %v4365_v24 = vpop.f32.mrf.mxu0 }
 0x655   :  { %v2566_v28 = vpop.f32.mrf.mxu0 }
 0x657   :  { %v4366_v61 = vpop.f32.mrf.mxu0 }
 0x658   :  { %v4604_v62 = vpack.i.bf16 %v4366_v61, %v4365_v24 }
 0x659   :  { %v2569_v53 = vpop.f32.mrf.mxu0 }
 0x65a   :  { %v4599_v55 = vpack.i.bf16 %v2569_v53, %v2566_v28 }
 0x667   :  { %v4377_v59 = vpop.f32.mrf.mxu1 }
 0x669   :  { %v2639_v56 = vpop.f32.mrf.mxu1 }
 0x66b   :  { %v4378_v39 = vpop.f32.mrf.mxu1 }
 0x66c   :  { %v4549_v33 = vpack.i.bf16 %v4378_v39, %v4377_v59 }
 0x66d   :  { %v2642_v32 = vpop.f32.mrf.mxu1 }
 0x66e   :  { %v4554_v45 = vpack.i.bf16 %v2642_v32, %v2639_v56  ;;  %4550 = vrot.lane.b32.xlu1 %v4549_v33, %s5002_s23 }
 0x670   :  { %4555 = vrot.lane.b32.xlu0 %v4554_v45, %s5002_s23 }
 0x672   :  { %4565 = vrot.lane.b32.xlu1 %v4564_v44, %s5001_s18 }
 0x673   :  { %v4381_v31 = vpop.f32.mrf.mxu1 }
 0x674   :  { %4560 = vrot.lane.b32.xlu0 %v4559_v5, %s5001_s18 }
 0x675   :  { %v2655_v22 = vpop.f32.mrf.mxu1 }
 0x677   :  { %v4382_v11 = vpop.f32.mrf.mxu1 }
 0x678   :  { %v4569_v27 = vpack.i.bf16 %v4382_v11, %v4381_v31 }
 0x679   :  { %v2658_v19 = vpop.f32.mrf.mxu1 }
 0x67a   :  { %v4574_v52 = vpack.i.bf16 %v2658_v19, %v2655_v22  ;;  %4570 = vrot.lane.b32.xlu1 %v4569_v27, %s5002_s23 }
 0x67c   :  { %4575 = vrot.lane.b32.xlu0 %v4574_v52, %s5002_s23 }
 0x67e   :  { %4585 = vrot.lane.b32.xlu1 %v4584_v23, %s5000_s17 }
 0x680   :  { %4580 = vrot.lane.b32.xlu0 %v4579_v35, %s5000_s17 }
 0x684   :  { %v4393_v1 = vpop.f32.mrf.mxu0 }
 0x686   :  { %v2728_v43 = vpop.f32.mrf.mxu0 }
 0x688   :  { %v4394_v2 = vpop.f32.mrf.mxu0 }
 0x689   :  { %v4589_v60 = vpack.i.bf16 %v4394_v2, %v4393_v1 }
 0x68a   :  { %v2731_v12 = vpop.f32.mrf.mxu0 }
 0x68b   :  { %v4594_v40 = vpack.i.bf16 %v2731_v12, %v2728_v43  ;;  %4590 = vrot.lane.b32.xlu1 %v4589_v60, %s5002_s23 }
 0x68c   :  { %v4397_v9 = vpop.f32.mrf.mxu0 }
 0x68d   :  { %4595 = vrot.lane.b32.xlu0 %v4594_v40, %s5002_s23 }
 0x68e   :  { %v2744_v30 = vpop.f32.mrf.mxu0 }
 0x68f   :  { %4605 = vrot.lane.b32.xlu1 %v4604_v62, %s5001_s18 }
 0x690   :  { %v4398_v25 = vpop.f32.mrf.mxu0 }
 0x691   :  { %v4614_v48 = vpack.i.bf16 %v4398_v25, %v4397_v9  ;;  %4600 = vrot.lane.b32.xlu0 %v4599_v55, %s5001_s18 }
 0x692   :  { %v2747_v8 = vpop.f32.mrf.mxu0 }
 0x693   :  { %v4609_v49 = vpack.i.bf16 %v2747_v8, %v2744_v30  ;;  %4615 = vrot.lane.b32.xlu1 %v4614_v48, %s5002_s23 }
 0x695   :  { %4610 = vrot.lane.b32.xlu0 %v4609_v49, %s5002_s23 }
 0x6a0   :  { %v4501_v3 = vpop.permute.xlu1 %4500 }
 0x6a1   :  { %v4503_v63 = vunpack.i.h.bf16 %v4501_v3  ;;  %v4502_v14 = vunpack.i.l.bf16 %v4501_v3 }
 0x6a2   :  { %v4506_v34 = vpop.permute.xlu0 %4505 }
 0x6a3   :  { %v4508_v26 = vunpack.i.h.bf16 %v4506_v34  ;;  %v4507_v59 = vunpack.i.l.bf16 %v4506_v34  ;;  %v2954_v5 = vsel %vm541_vm1, %v6498_v10, %v4503_v63  ;;  %v2953_v31 = vsel %vm541_vm1, %v6494_v13, %v4502_v14 }
 0x6a5   :  { %v2952_v22 = vsel %vm541_vm1, %v6500_v20, %v4508_v26  ;;  %v2951_v24 = vsel %vm541_vm1, %v6496_v54, %v4507_v59 }
 0x6a8   :  { %v4511_v42 = vpop.permute.xlu1 %4510 }
 0x6a9   :  { %v4513_v43 = vunpack.i.h.bf16 %v4511_v42  ;;  %v4512_v2 = vunpack.i.l.bf16 %v4511_v42 }
 0x6aa   :  { %v4516_v0 = vpop.permute.xlu0 %4515 }
 0x6ab   :  { %v4518_v60 = vunpack.i.h.bf16 %v4516_v0  ;;  %v4517_v12 = vunpack.i.l.bf16 %v4516_v0  ;;  %v2958_v49 = vsel %vm541_vm1, %v6506_v50, %v4513_v43  ;;  %v2957_v3 = vsel %vm541_vm1, %v6502_v7, %v4512_v2 }
 0x6ac   :  { %v6556_v18 = vpop.permute.xlu1 %4520 }
 0x6ad   :  { %v2956_v34 = vsel %vm541_vm1, %v6508_v37, %v4518_v60  ;;  %v2955_v42 = vsel %vm541_vm1, %v6504_v29, %v4517_v12 }
 0x6ae   :  { %v6558_v41 = vpop.permute.xlu0 %4525 }
 0x6b3   :  { %v4531_v21 = vpop.permute.xlu1 %4530 }
 0x6b4   :  { %v4533_v4 = vunpack.i.h.bf16 %v4531_v21  ;;  %v4532_v39 = vunpack.i.l.bf16 %v4531_v21 }
 0x6b5   :  { %v4536_v17 = vpop.permute.xlu0 %4535 }
 0x6b6   :  { %v4538_v33 = vunpack.i.h.bf16 %v4536_v17  ;;  %v4537_v32 = vunpack.i.l.bf16 %v4536_v17  ;;  %v2971_v27 = vsel %vm2967_vm3, %v2954_v5, %v4533_v4  ;;  %v2970_v19 = vsel %vm2967_vm3, %v2953_v31, %v4532_v39 }
 0x6b7   :  { %v4523_v39 = vunpack.i.h.bf16 %v6556_v18 }
 0x6b8   :  { %v2968_v23 = vsel %vm2967_vm3, %v2951_v24, %v4537_v32  ;;  %v2969_v10 = vsel %vm2967_vm3, %v2952_v22, %v4538_v33  ;;  %v4522_v33 = vunpack.i.l.bf16 %v6556_v18  ;;  %v4528_v32 = vunpack.i.h.bf16 %v6558_v41 }
 0x6ba   :  { %v2960_v18 = vsel %vm541_vm1, %v6516_v57, %v4528_v32 }
 0x6bb   :  { %v4541_v6 = vpop.permute.xlu1 %4540 }
 0x6bc   :  { %v4543_v9 = vunpack.i.h.bf16 %v4541_v6  ;;  %v4542_v62 = vunpack.i.l.bf16 %v4541_v6 }
 0x6bd   :  { %v4546_v56 = vpop.permute.xlu0 %4545 }
 0x6be   :  { %v4548_v30 = vunpack.i.h.bf16 %v4546_v56  ;;  %v4547_v55 = vunpack.i.l.bf16 %v4546_v56  ;;  %v2975_v21 = vsel %vm2967_vm3, %v2958_v49, %v4543_v9  ;;  %v2974_v17 = vsel %vm2967_vm3, %v2957_v3, %v4542_v62 }
 0x6c0   :  { %v2972_v14 = vsel %vm2967_vm3, %v2955_v42, %v4547_v55  ;;  %v2973_v50 = vsel %vm2967_vm3, %v2956_v34, %v4548_v30 }
 0x6e0   :  { %v4551_v45 = vpop.permute.xlu1 %4550 }
 0x6e1   :  { %v4553_v36 = vunpack.i.h.bf16 %v4551_v45  ;;  %v4552_v44 = vunpack.i.l.bf16 %v4551_v45  ;;  %v4527_v45 = vunpack.i.l.bf16 %v6558_v41 }
 0x6e2   :  { %v4556_v11 = vpop.permute.xlu0 %4555 }
 0x6e3   :  { %v4558_v28 = vunpack.i.h.bf16 %v4556_v11  ;;  %v4557_v52 = vunpack.i.l.bf16 %v4556_v11  ;;  %v2988_v35 = vsel %vm2984_vm4, %v2971_v27, %v4553_v36  ;;  %v2987_v13 = vsel %vm2984_vm4, %v2970_v19, %v4552_v44 }
 0x6e4   :  { %v3002_v53 = vpack.c.bf16 %v2988_v35, %v2987_v13  ;;  %v4566_v1 = vpop.permute.xlu1 %4565  ;;  %v2962_v19 = vsel %vm541_vm1, %v6514_v47, %v4523_v39  ;;  %v2959_v41 = vsel %vm541_vm1, %v6512_v38, %v4527_v45 }
 0x6e5   :  { %v2985_v20 = vsel %vm2984_vm4, %v2968_v23, %v4557_v52  ;;  %v2986_v61 = vsel %vm2984_vm4, %v2969_v10, %v4558_v28  ;;  %v4568_v44 = vunpack.i.h.bf16 %v4566_v1  ;;  %v4567_v5 = vunpack.i.l.bf16 %v4566_v1 }
 0x6e6   :  { %v3001_v54 = vpack.c.bf16 %v2986_v61, %v2985_v20  ;;  %v4561_v40 = vpop.permute.xlu0 %4560  ;;  %v2961_v28 = vsel %vm541_vm1, %v6510_v16, %v4522_v33  ;;  %v4979_v33 = vld [vmem:[%s7059_s0] sm:$0xff] }
 0x6e7   :  { %v4563_v31 = vunpack.i.h.bf16 %v4561_v40  ;;  %v4562_v22 = vunpack.i.l.bf16 %v4561_v40  ;;  %v2979_v23 = vsel %vm2967_vm3, %v2962_v19, %v4568_v44  ;;  %v2978_v10 = vsel %vm2967_vm3, %v2961_v28, %v4567_v5 }
 0x6e8   :  { %4403 = vmatprep.mubr.msk.bf16.mxu1 %vm63_vm0, %v3001_v54 }
 0x6e9   :  { %4404 = vmatmul.mubr.msk.bf16.vlgmr.msra.gmra.mxu1 %vm63_vm0, %v3002_v53  ;;  %v2976_v20 = vsel %vm2967_vm3, %v2959_v41, %v4562_v22  ;;  %v2977_v47 = vsel %vm2967_vm3, %v2960_v18, %v4563_v31 }
 0x6ec   :  { %v4571_v25 = vpop.permute.xlu1 %4570 }
 0x6ed   :  { %v4573_v48 = vunpack.i.h.bf16 %v4571_v25  ;;  %v4572_v8 = vunpack.i.l.bf16 %v4571_v25 }
 0x6ee   :  { %v4576_v0 = vpop.permute.xlu0 %4575 }
 0x6ef   :  { %v4578_v6 = vunpack.i.h.bf16 %v4576_v0  ;;  %v4577_v63 = vunpack.i.l.bf16 %v4576_v0  ;;  %v2992_v26 = vsel %vm2984_vm4, %v2975_v21, %v4573_v48  ;;  %v2991_v7 = vsel %vm2984_vm4, %v2974_v17, %v4572_v8 }
 0x6f0   :  { %v3004_v56 = vpack.c.bf16 %v2992_v26, %v2991_v7  ;;  %v4586_v4 = vpop.permute.xlu1 %4585 }
 0x6f1   :  { %v2989_v37 = vsel %vm2984_vm4, %v2972_v14, %v4577_v63  ;;  %v2990_v59 = vsel %vm2984_vm4, %v2973_v50, %v4578_v6  ;;  %v4588_v57 = vunpack.i.h.bf16 %v4586_v4  ;;  %v4587_v1 = vunpack.i.l.bf16 %v4586_v4 }
 0x6f2   :  { %v3003_v29 = vpack.c.bf16 %v2990_v59, %v2989_v37  ;;  %v4581_v36 = vpop.permute.xlu0 %4580  ;;  %v6639_v59 = vld [vmem:[%s7065_s6] ss:$0 sm:$0xff] }
 0x6f3   :  { %v4583_v43 = vunpack.i.h.bf16 %v4581_v36  ;;  %v4582_v2 = vunpack.i.l.bf16 %v4581_v36  ;;  %v2966_v49 = vsel %vm541_vm1, %v6522_v58, %v4588_v57  ;;  %v2965_v3 = vsel %vm541_vm1, %v6518_v46, %v4587_v1  ;;  %v4980_v36 = vld [vmem:[%s7059_s0 + $0x10] sm:$0xff]  ;;  %v4985_v1 = vld [vmem:[%s7059_s0 + $0x28] sm:$0xff] }
 0x6f4   :  { %4407 = vmatprep.mubr.msk.bf16.mxu1 %vm63_vm0, %v3003_v29 }
 0x6f5   :  { %4408 = vmatmul.mubr.msk.bf16.gmra.mxu1 %vm63_vm0, %v3004_v56  ;;  %v2964_v34 = vsel %vm541_vm1, %v6524_v51, %v4583_v43  ;;  %v2963_v42 = vsel %vm541_vm1, %v6520_v15, %v4582_v2  ;;  %v4986_v2 = vld [vmem:[%s7059_s0 + $0x38] sm:$0xff] }
 0x6fd   :  { %v4591_v24 = vpop.permute.xlu1 %4590 }
 0x6fe   :  { %v4593_v11 = vunpack.i.h.bf16 %v4591_v24  ;;  %v4592_v27 = vunpack.i.l.bf16 %v4591_v24  ;;  %v4981_v24 = vld [vmem:[%s7059_s0 + $0x8] sm:$0xff] }
 0x6ff   :  { %v4596_v52 = vpop.permute.xlu0 %4595 }
 0x700   :  { %v4598_v35 = vunpack.i.h.bf16 %v4596_v52  ;;  %v4597_v13 = vunpack.i.l.bf16 %v4596_v52  ;;  %v2996_v61 = vsel %vm2984_vm4, %v2979_v23, %v4593_v11  ;;  %v2995_v16 = vsel %vm2984_vm4, %v2978_v10, %v4592_v27  ;;  %v4982_v27 = vld [vmem:[%s7059_s0 + $0x18] sm:$0xff] }
 0x701   :  { %v4606_v54 = vpop.permute.xlu1 %4605  ;;  %v3006_v40 = vpack.c.bf16 %v2996_v61, %v2995_v16  ;;  %v4984_v16 = vld [vmem:[%s7059_s0 + $0x30] sm:$0xff] }
 0x702   :  { %v2993_v53 = vsel %vm2984_vm4, %v2976_v20, %v4597_v13  ;;  %v2994_v38 = vsel %vm2984_vm4, %v2977_v47, %v4598_v35  ;;  %v4608_v9 = vunpack.i.h.bf16 %v4606_v54  ;;  %v4607_v62 = vunpack.i.l.bf16 %v4606_v54  ;;  %v4983_v20 = vld [vmem:[%s7059_s0 + $0x20] sm:$0xff] }
 0x703   :  { %v3005_v60 = vpack.c.bf16 %v2994_v38, %v2993_v53  ;;  %v4601_v12 = vpop.permute.xlu0 %4600 }
 0x704   :  { %v4603_v30 = vunpack.i.h.bf16 %v4601_v12  ;;  %v4602_v55 = vunpack.i.l.bf16 %v4601_v12  ;;  %v2983_v21 = vsel %vm2967_vm3, %v2966_v49, %v4608_v9  ;;  %v2982_v17 = vsel %vm2967_vm3, %v2965_v3, %v4607_v62 }
 0x705   :  { %v4616_v25 = vpop.permute.xlu1 %4615  ;;  %4411 = vmatprep.mubr.msk.bf16.mxu1 %vm63_vm0, %v3005_v60 }
 0x706   :  { %v4618_v48 = vunpack.i.h.bf16 %v4616_v25  ;;  %v4617_v8 = vunpack.i.l.bf16 %v4616_v25  ;;  %4412 = vmatmul.mubr.msk.bf16.gmra.mxu1 %vm63_vm0, %v3006_v40  ;;  %v2980_v14 = vsel %vm2967_vm3, %v2963_v42, %v4602_v55  ;;  %v2981_v58 = vsel %vm2967_vm3, %v2964_v34, %v4603_v30  ;;  %v4988_v42 = vld [vmem:[%s7059_s0 + $0x50] sm:$0xff] }
 0x707   :  { %v4611_v0 = vpop.permute.xlu0 %4610 }
 0x708   :  { %v4613_v6 = vunpack.i.h.bf16 %v4611_v0  ;;  %v4612_v63 = vunpack.i.l.bf16 %v4611_v0  ;;  %v3000_v50 = vsel %vm2984_vm4, %v2983_v21, %v4618_v48  ;;  %v2999_v46 = vsel %vm2984_vm4, %v2982_v17, %v4617_v8  ;;  %v4987_v8 = vld [vmem:[%s7059_s0 + $0x40] sm:$0xff] }
 0x709   :  { %v3008_v7 = vpack.c.bf16 %v3000_v50, %v2999_v46 }
 0x70a   :  { %v2997_v51 = vsel %vm2984_vm4, %v2980_v14, %v4612_v63  ;;  %v2998_v26 = vsel %vm2984_vm4, %v2981_v58, %v4613_v6  ;;  %v4989_v63 = vld [vmem:[%s7059_s0 + $0x48] sm:$0xff]  ;;  %v4990_v58 = vld [vmem:[%s7059_s0 + $0x58] sm:$0xff] }
 0x70b   :  { %v3007_v15 = vpack.c.bf16 %v2998_v26, %v2997_v51 }
 0x70d   :  { %4415 = vmatprep.mubr.msk.bf16.mxu1 %vm63_vm0, %v3007_v15 }
 0x70e   :  { %4416 = vmatmul.mubr.msk.bf16.gmra.mxu1 %vm63_vm0, %v3008_v7 }
 0x7a9   :  { %v4405_v37 = vpop.f32.mrf.mxu1 }
 0x7aa   :  { %v3099_v56 = vadd.f32 %v4405_v37, %v6639_v59 }
 0x7ab   :  { %v3090_v29 = vpop.f32.mrf.mxu1 }
 0x7ac   :  { %v3091_v4 = vadd.f32 %v6639_v59, %v3090_v29  ;;  %v6651_v44 = vadd.f32 %v4980_v36, %v3099_v56  ;;  %v4991_v29 = vld [vmem:[%s7059_s0 + $0x60] sm:$0xff] }
 0x7ad   :  { %v4406_v39 = vpop.f32.mrf.mxu1 }
 0x7ae   :  { %v6646_v32 = vadd.f32 %v4979_v33, %v3091_v4  ;;  %v3102_v5 = vadd.f32 %v4406_v39, %v6639_v59  ;;  %v3177_v18 = vsel %vm63_vm0, %v6651_v44, 0.0  ;;  %v4992_v33 = vld [vmem:[%s7059_s0 + $0x70] sm:$0xff] }
 0x7af   :  { %v3093_v45 = vpop.f32.mrf.mxu1 }
 0x7b0   :  { %v3094_v31 = vadd.f32 %v6639_v59, %v3093_v45  ;;  %v3171_v22 = vsel %vm63_vm0, %v6646_v32, 0.0  ;;  %v6665_v19 = vadd.f32 %v4982_v27, %v3102_v5  ;;  %v4994_v27 = vld [vmem:[%s7059_s0 + $0x78] sm:$0xff] }
 0x7b1   :  { %3172 = vadd.xlane.f32.xlu0 %v3171_v22  ;;  %v4993_v22 = vld [vmem:[%s7059_s0 + $0x68] sm:$0xff] }
 0x7b2   :  { %v6660_v11 = vadd.f32 %v4981_v24, %v3094_v31  ;;  %v3180_v35 = vsel %vm63_vm0, %v6665_v19, 0.0 }
 0x7b4   :  { %v3174_v28 = vsel %vm63_vm0, %v6660_v11, 0.0 }
 0x7b5   :  { %v4409_v41 = vpop.f32.mrf.mxu1  ;;  %3175 = vadd.xlane.f32.xlu1 %v3174_v28  ;;  %3178 = vadd.xlane.f32.xlu0 %v3177_v18 }
 0x7b6   :  { %v3115_v23 = vadd.f32 %v4409_v41, %v6639_v59 }
 0x7b7   :  { %v3106_v52 = vpop.f32.mrf.mxu1 }
 0x7b8   :  { %v3107_v10 = vadd.f32 %v6639_v59, %v3106_v52  ;;  %v6683_v54 = vadd.f32 %v4984_v16, %v3115_v23 }
 0x7b9   :  { %v4410_v13 = vpop.f32.mrf.mxu1  ;;  %3181 = vadd.xlane.f32.xlu0 %v3180_v35 }
 0x7ba   :  { %v6678_v47 = vadd.f32 %v4983_v20, %v3107_v10  ;;  %v3118_v57 = vadd.f32 %v4410_v13, %v6639_v59  ;;  %v3189_v40 = vsel %vm63_vm0, %v6683_v54, 0.0 }
 0x7bb   :  { %v3109_v61 = vpop.f32.mrf.mxu1 }
 0x7bc   :  { %v3110_v53 = vadd.f32 %v6639_v59, %v3109_v61  ;;  %v3183_v38 = vsel %vm63_vm0, %v6678_v47, 0.0  ;;  %v6697_v60 = vadd.f32 %v4986_v2, %v3118_v57 }
 0x7bd   :  { %3184 = vadd.xlane.f32.xlu0 %v3183_v38 }
 0x7be   :  { %v6692_v43 = vadd.f32 %v4985_v1, %v3110_v53  ;;  %v3192_v9 = vsel %vm63_vm0, %v6697_v60, 0.0 }
 0x7c0   :  { %v3186_v12 = vsel %vm63_vm0, %v6692_v43, 0.0 }
 0x7c1   :  { %3187 = vadd.xlane.f32.xlu1 %v3186_v12  ;;  %3190 = vadd.xlane.f32.xlu0 %v3189_v40 }
 0x7c5   :  { %3193 = vadd.xlane.f32.xlu1 %v3192_v9 }
 0x7c6   :  { %v4413_v62 = vpop.f32.mrf.mxu1 }
 0x7c7   :  { %v3131_v55 = vadd.f32 %v4413_v62, %v6639_v59 }
 0x7c8   :  { %v3122_v30 = vpop.f32.mrf.mxu1 }
 0x7c9   :  { %v3123_v25 = vadd.f32 %v6639_v59, %v3122_v30  ;;  %v6716_v0 = vadd.f32 %v4988_v42, %v3131_v55 }
 0x7ca   :  { %v4414_v48 = vpop.f32.mrf.mxu1 }
 0x7cb   :  { %v6710_v49 = vadd.f32 %v4987_v8, %v3123_v25  ;;  %v3134_v3 = vadd.f32 %v4414_v48, %v6639_v59  ;;  %v3201_v7 = vsel %vm63_vm0, %v6716_v0, 0.0 }
 0x7cc   :  { %v3125_v34 = vpop.f32.mrf.mxu1 }
 0x7cd   :  { %v3126_v21 = vadd.f32 %v6639_v59, %v3125_v34  ;;  %v3195_v17 = vsel %vm63_vm0, %v6710_v49, 0.0  ;;  %v6729_v50 = vadd.f32 %v4990_v58, %v3134_v3 }
 0x7ce   :  { %v4417_v6 = vpop.f32.mrf.mxu1  ;;  %3196 = vadd.xlane.f32.xlu0 %v3195_v17 }
 0x7cf   :  { %v6724_v14 = vadd.f32 %v4989_v63, %v3126_v21  ;;  %v3147_v51 = vadd.f32 %v4417_v6, %v6639_v59  ;;  %v3204_v39 = vsel %vm63_vm0, %v6729_v50, 0.0 }
 0x7d0   :  { %v3138_v46 = vpop.f32.mrf.mxu1 }
 0x7d1   :  { %v3139_v26 = vadd.f32 %v6639_v59, %v3138_v46  ;;  %v3198_v15 = vsel %vm63_vm0, %v6724_v14, 0.0  ;;  %v6747_v45 = vadd.f32 %v4992_v33, %v3147_v51 }
 0x7d2   :  { %v4418_v37 = vpop.f32.mrf.mxu1  ;;  %3199 = vadd.xlane.f32.xlu1 %v3198_v15  ;;  %3202 = vadd.xlane.f32.xlu0 %v3201_v7 }
 0x7d3   :  { %v6740_v56 = vadd.f32 %v4991_v29, %v3139_v26  ;;  %v3150_v36 = vadd.f32 %v4418_v37, %v6639_v59  ;;  %v3213_v18 = vsel %vm63_vm0, %v6747_v45, 0.0 }
 0x7d4   :  { %v3141_v4 = vpop.f32.mrf.mxu1 }
 0x7d5   :  { %v3142_v5 = vadd.f32 %v6639_v59, %v3141_v4  ;;  %v3207_v31 = vsel %vm63_vm0, %v6740_v56, 0.0  ;;  %v6761_v28 = vadd.f32 %v4994_v27, %v3150_v36 }
 0x7d6   :  { %3205 = vadd.xlane.f32.xlu1 %v3204_v39  ;;  %3208 = vadd.xlane.f32.xlu0 %v3207_v31 }
 0x7d7   :  { %v6756_v24 = vadd.f32 %v4993_v22, %v3142_v5  ;;  %v3216_v41 = vsel %vm63_vm0, %v6761_v28, 0.0 }
 0x7d9   :  { %v3210_v59 = vsel %vm63_vm0, %v6756_v24, 0.0 }
 0x7da   :  { %3211 = vadd.xlane.f32.xlu1 %v3210_v59  ;;  %3214 = vadd.xlane.f32.xlu0 %v3213_v18 }
 0x7de   :  { %3217 = vadd.xlane.f32.xlu1 %v3216_v41 }
 0x83a   :  { %v3173_v52 = vpop.xlane.xlu0 %3172 }
 0x83b   :  { %v3219_v23 = vmul.f32 0.03125, %v3173_v52 }
 0x83d   :  { %v6770_v10 = vsub.f32 %v6646_v32, %v3219_v23 }
 0x83e   :  { %v3176_v35 = vpop.xlane.xlu1 %3175  ;;  %v3179_v13 = vpop.xlane.xlu0 %3178 }
 0x83f   :  { %v3220_v20 = vmul.f32 0.03125, %v3176_v35  ;;  %v3221_v61 = vmul.f32 0.03125, %v3179_v13  ;;  %v3251_v16 = vmul.f32 %v6770_v10, %v6770_v10 }
 0x841   :  { %v6775_v57 = vsub.f32 %v6660_v11, %v3220_v20  ;;  %v6778_v53 = vsub.f32 %v6651_v44, %v3221_v61  ;;  %v3267_v38 = vsel %vm63_vm0, %v3251_v16, 0.0 }
 0x842   :  { %3268 = vadd.xlane.f32.xlu0 %v3267_v38  ;;  %v3182_v1 = vpop.xlane.xlu0 %3181 }
 0x843   :  { %v3222_v2 = vmul.f32 0.03125, %v3182_v1  ;;  %v3252_v12 = vmul.f32 %v6775_v57, %v6775_v57  ;;  %v3253_v40 = vmul.f32 %v6778_v53, %v6778_v53 }
 0x845   :  { %v6786_v9 = vsub.f32 %v6665_v19, %v3222_v2  ;;  %v3270_v62 = vsel %vm63_vm0, %v3252_v12, 0.0  ;;  %v3273_v30 = vsel %vm63_vm0, %v3253_v40, 0.0 }
 0x846   :  { %3271 = vadd.xlane.f32.xlu1 %v3270_v62  ;;  %3274 = vadd.xlane.f32.xlu0 %v3273_v30  ;;  %v3185_v55 = vpop.xlane.xlu0 %3184 }
 0x847   :  { %v3223_v25 = vmul.f32 0.03125, %v3185_v55  ;;  %v3254_v48 = vmul.f32 %v6786_v9, %v6786_v9 }
 0x849   :  { %v6793_v8 = vsub.f32 %v6678_v47, %v3223_v25  ;;  %v3276_v3 = vsel %vm63_vm0, %v3254_v48, 0.0 }
 0x84a   :  { %v3188_v34 = vpop.xlane.xlu1 %3187  ;;  %3277 = vadd.xlane.f32.xlu1 %v3276_v3  ;;  %v3191_v42 = vpop.xlane.xlu0 %3190 }
 0x84b   :  { %v3224_v21 = vmul.f32 0.03125, %v3188_v34  ;;  %v3225_v17 = vmul.f32 0.03125, %v3191_v42  ;;  %v3255_v6 = vmul.f32 %v6793_v8, %v6793_v8 }
 0x84d   :  { %v6799_v63 = vsub.f32 %v6692_v43, %v3224_v21  ;;  %v6802_v58 = vsub.f32 %v6683_v54, %v3225_v17  ;;  %v3279_v46 = vsel %vm63_vm0, %v3255_v6, 0.0 }
 0x84e   :  { %v3194_v51 = vpop.xlane.xlu1 %3193  ;;  %3280 = vadd.xlane.f32.xlu0 %v3279_v46 }
 0x84f   :  { %v3226_v26 = vmul.f32 0.03125, %v3194_v51  ;;  %v3256_v15 = vmul.f32 %v6799_v63, %v6799_v63  ;;  %v3257_v7 = vmul.f32 %v6802_v58, %v6802_v58  ;;  %v4623_v51 = vld [vmem:[%s7066_s9 + $0x8] sm:$0xff]  }
 0x850   :  { %4419 = vmatprep.subr.bf16.mxu0 %v4623_v51 }
 0x851   :  { %v6810_v37 = vsub.f32 %v6697_v60, %v3226_v26  ;;  %v3282_v29 = vsel %vm63_vm0, %v3256_v15, 0.0  ;;  %v3285_v4 = vsel %vm63_vm0, %v3257_v7, 0.0  ;;  %4420 = vmatpush3.bf16.msra.mxu0 %v4623_v51  ;;  %v6875_v51 = vld [vmem:[%s7067_s7] ss:$0 sm:$0xff] }
 0x852   :  { %3283 = vadd.xlane.f32.xlu1 %v3282_v29  ;;  %3286 = vadd.xlane.f32.xlu0 %v3285_v4 }
 0x853   :  { %v3258_v39 = vmul.f32 %v6810_v37, %v6810_v37 }
 0x855   :  { %v3288_v33 = vsel %vm63_vm0, %v3258_v39, 0.0 }
 0x856   :  { %3289 = vadd.xlane.f32.xlu1 %v3288_v33  ;;  %v4624_v33 = vld [vmem:[%s7066_s9] sm:$0xff]  }
 0x857   :  { %v3197_v36 = vpop.xlane.xlu0 %3196  ;;  %4421 = vmatprep.subr.bf16.mxu0 %v4624_v33 }
 0x858   :  { %v3227_v5 = vmul.f32 0.03125, %v3197_v36  ;;  %4422 = vmatpush3.bf16.msra.mxu0 %v4624_v33 }
 0x85a   :  { %v6818_v31 = vsub.f32 %v6710_v49, %v3227_v5 }
 0x85b   :  { %v3200_v22 = vpop.xlane.xlu1 %3199  ;;  %v3203_v27 = vpop.xlane.xlu0 %3202 }
 0x85c   :  { %v3228_v59 = vmul.f32 0.03125, %v3200_v22  ;;  %v3229_v18 = vmul.f32 0.03125, %v3203_v27  ;;  %v3259_v41 = vmul.f32 %v6818_v31, %v6818_v31 }
 0x85e   :  { %v6823_v52 = vsub.f32 %v6724_v14, %v3228_v59  ;;  %v6826_v23 = vsub.f32 %v6716_v0, %v3229_v18  ;;  %v3291_v35 = vsel %vm63_vm0, %v3259_v41, 0.0 }
 0x85f   :  { %v3206_v13 = vpop.xlane.xlu1 %3205  ;;  %3292 = vadd.xlane.f32.xlu0 %v3291_v35  ;;  %v3209_v20 = vpop.xlane.xlu0 %3208 }
 0x860   :  { %v3230_v61 = vmul.f32 0.03125, %v3206_v13  ;;  %v3231_v16 = vmul.f32 0.03125, %v3209_v20  ;;  %v3260_v38 = vmul.f32 %v6823_v52, %v6823_v52  ;;  %v3261_v1 = vmul.f32 %v6826_v23, %v6826_v23 }
 0x862   :  { %v6834_v2 = vsub.f32 %v6729_v50, %v3230_v61  ;;  %v6837_v12 = vsub.f32 %v6740_v56, %v3231_v16  ;;  %v3294_v40 = vsel %vm63_vm0, %v3260_v38, 0.0  ;;  %v3297_v62 = vsel %vm63_vm0, %v3261_v1, 0.0 }
 0x863   :  { %v3212_v30 = vpop.xlane.xlu1 %3211  ;;  %3295 = vadd.xlane.f32.xlu1 %v3294_v40  ;;  %3298 = vadd.xlane.f32.xlu0 %v3297_v62  ;;  %v3215_v55 = vpop.xlane.xlu0 %3214 }
 0x864   :  { %v3232_v25 = vmul.f32 0.03125, %v3212_v30  ;;  %v3233_v48 = vmul.f32 0.03125, %v3215_v55  ;;  %v3262_v3 = vmul.f32 %v6834_v2, %v6834_v2  ;;  %v3263_v34 = vmul.f32 %v6837_v12, %v6837_v12 }
 0x866   :  { %v6846_v42 = vsub.f32 %v6756_v24, %v3232_v25  ;;  %v6849_v21 = vsub.f32 %v6747_v45, %v3233_v48  ;;  %v3300_v17 = vsel %vm63_vm0, %v3262_v3, 0.0  ;;  %v3303_v6 = vsel %vm63_vm0, %v3263_v34, 0.0 }
 0x867   :  { %v3218_v46 = vpop.xlane.xlu1 %3217  ;;  %3301 = vadd.xlane.f32.xlu1 %v3300_v17  ;;  %3304 = vadd.xlane.f32.xlu0 %v3303_v6 }
 0x868   :  { %v3234_v26 = vmul.f32 0.03125, %v3218_v46  ;;  %v3264_v15 = vmul.f32 %v6846_v42, %v6846_v42  ;;  %v3265_v7 = vmul.f32 %v6849_v21, %v6849_v21 }
 0x86a   :  { %v6861_v29 = vsub.f32 %v6761_v28, %v3234_v26  ;;  %v3306_v4 = vsel %vm63_vm0, %v3264_v15, 0.0  ;;  %v3309_v39 = vsel %vm63_vm0, %v3265_v7, 0.0 }
 0x86b   :  { %3307 = vadd.xlane.f32.xlu1 %v3306_v4  ;;  %3310 = vadd.xlane.f32.xlu0 %v3309_v39 }
 0x86c   :  { %v3266_v36 = vmul.f32 %v6861_v29, %v6861_v29 }
 0x86e   :  { %v3312_v5 = vsel %vm63_vm0, %v3266_v36, 0.0 }
 0x86f   :  { %3313 = vadd.xlane.f32.xlu1 %v3312_v5 }
 0x8cb   :  { %v3269_v22 = vpop.xlane.xlu0 %3268 }
 0x8cc   :  { %v3315_v27 = vmul.f32 0.03125, %v3269_v22 }
 0x8ce   :  { %v3331_v59 = vadd.f32 1e-05, %v3315_v27 }
 0x8cf   :  { %v3272_v18 = vpop.xlane.xlu1 %3271  ;;  %v3275_v41 = vpop.xlane.xlu0 %3274 }
 0x8d0   :  { %4915 = vrsqrt.f32 %v3331_v59  ;;  %v3316_v35 = vmul.f32 0.03125, %v3272_v18  ;;  %v3317_v13 = vmul.f32 0.03125, %v3275_v41 }
 0x8d2   :  { %v3332_v20 = vadd.f32 1e-05, %v3316_v35  ;;  %v3333_v61 = vadd.f32 1e-05, %v3317_v13 }
 0x8d3   :  { %v3278_v16 = vpop.xlane.xlu1 %3277 }
 0x8d4   :  { %4917 = vrsqrt.f32 %v3332_v20  ;;  %v3318_v38 = vmul.f32 0.03125, %v3278_v16 }
 0x8d5   :  { %4919 = vrsqrt.f32 %v3333_v61 }
 0x8d6   :  { %v3334_v1 = vadd.f32 1e-05, %v3318_v38 }
 0x8d7   :  { %v3281_v40 = vpop.xlane.xlu0 %3280 }
 0x8d8   :  { %4921 = vrsqrt.f32 %v3334_v1  ;;  %v3319_v62 = vmul.f32 0.03125, %v3281_v40 }
 0x8da   :  { %v3335_v30 = vadd.f32 1e-05, %v3319_v62 }
 0x8db   :  { %v3284_v55 = vpop.xlane.xlu1 %3283  ;;  %v3287_v25 = vpop.xlane.xlu0 %3286 }
 0x8dc   :  { %4923 = vrsqrt.f32 %v3335_v30  ;;  %v3320_v48 = vmul.f32 0.03125, %v3284_v55  ;;  %v3321_v3 = vmul.f32 0.03125, %v3287_v25 }
 0x8dd   :  { %v4916_v34 = vpop.eup %4915 }
 0x8de   :  { %v3336_v17 = vadd.f32 1e-05, %v3320_v48  ;;  %v3337_v6 = vadd.f32 1e-05, %v3321_v3  ;;  %v3363_v46 = vmul.f32 %v4916_v34, %v6770_v10  ;;  %v6883_v10 = vld [vmem:[%s7068_s8] ss:$0 sm:$0xff] }
 0x8df   :  { %v3290_v26 = vpop.xlane.xlu1 %3289 }
 0x8e0   :  { %4925 = vrsqrt.f32 %v3336_v17  ;;  %v3322_v15 = vmul.f32 0.03125, %v3290_v26  ;;  %v3385_v36 = vmul.f32 %v6875_v51, %v3363_v46 }
 0x8e1   :  { %v4918_v7 = vpop.eup %4917  ;;  %4927 = vrsqrt.f32 %v3337_v6 }
 0x8e2   :  { %v4920_v4 = vpop.eup %4919  ;;  %v3338_v39 = vadd.f32 1e-05, %v3322_v15  ;;  %v3364_v33 = vmul.f32 %v4918_v7, %v6775_v57  ;;  %v3407_v41 = vadd.f32 %v6883_v10, %v3385_v36 }
 0x8e3   :  { %v3365_v5 = vmul.f32 %v4920_v4, %v6778_v53 }
 0x8e4   :  { %4929 = vrsqrt.f32 %v3338_v39  ;;  %v3386_v22 = vmul.f32 %v6875_v51, %v3364_v33 }
 0x8e5   :  { %v4922_v27 = vpop.eup %4921  ;;  %v3387_v59 = vmul.f32 %v6875_v51, %v3365_v5 }
 0x8e6   :  { %v3366_v18 = vmul.f32 %v4922_v27, %v6786_v9  ;;  %v3408_v57 = vadd.f32 %v6883_v10, %v3386_v22 }
 0x8e7   :  { %v3409_v16 = vadd.f32 %v6883_v10, %v3387_v59 }
 0x8e8   :  { %v3388_v35 = vmul.f32 %v6875_v51, %v3366_v18  ;;  %v3293_v53 = vpop.xlane.xlu0 %3292  ;;  %v3423_v13 = vpack.c.bf16 %v3408_v57, %v3407_v41 }
 0x8e9   :  { %v4924_v20 = vpop.eup %4923  ;;  %v3323_v61 = vmul.f32 0.03125, %v3293_v53 }
 0x8ea   :  { %4423 = vmatprep.mubr.msk.bf16.mxu0 %vm63_vm0, %v3423_v13  ;;  %v3410_v38 = vadd.f32 %v6883_v10, %v3388_v35  ;;  %v3367_v1 = vmul.f32 %v4924_v20, %v6793_v8 }
 0x8eb   :  { %v3339_v40 = vadd.f32 1e-05, %v3323_v61 }
 0x8ec   :  { %v3296_v9 = vpop.xlane.xlu1 %3295  ;;  %v3299_v62 = vpop.xlane.xlu0 %3298  ;;  %v3424_v30 = vpack.c.bf16 %v3410_v38, %v3409_v16  ;;  %v3389_v3 = vmul.f32 %v6875_v51, %v3367_v1 }
 0x8ed   :  { %v4926_v55 = vpop.eup %4925  ;;  %4931 = vrsqrt.f32 %v3339_v40  ;;  %v3324_v25 = vmul.f32 0.03125, %v3296_v9  ;;  %v3325_v48 = vmul.f32 0.03125, %v3299_v62 }
 0x8ee   :  { %v4928_v34 = vpop.eup %4927  ;;  %4424 = vmatmul.mubr.msk.bf16.vlgmr.msra.gmra.mxu0 %vm63_vm0, %v3424_v30  ;;  %v3368_v17 = vmul.f32 %v4926_v55, %v6799_v63  ;;  %v3411_v36 = vadd.f32 %v6883_v10, %v3389_v3 }
 0x8ef   :  { %v3340_v6 = vadd.f32 1e-05, %v3324_v25  ;;  %v3341_v46 = vadd.f32 1e-05, %v3325_v48  ;;  %v3369_v26 = vmul.f32 %v4928_v34, %v6802_v58 }
 0x8f0   :  { %v3302_v8 = vpop.xlane.xlu1 %3301  ;;  %v3305_v15 = vpop.xlane.xlu0 %3304  ;;  %v3390_v7 = vmul.f32 %v6875_v51, %v3368_v17 }
 0x8f1   :  { %v4930_v4 = vpop.eup %4929  ;;  %4933 = vrsqrt.f32 %v3340_v6  ;;  %v3326_v39 = vmul.f32 0.03125, %v3302_v8  ;;  %v3327_v33 = vmul.f32 0.03125, %v3305_v15  ;;  %v3391_v63 = vmul.f32 %v6875_v51, %v3369_v26 }
 0x8f2   :  { %4935 = vrsqrt.f32 %v3341_v46  ;;  %v3412_v5 = vadd.f32 %v6883_v10, %v3390_v7  ;;  %v3370_v22 = vmul.f32 %v4930_v4, %v6810_v37 }
 0x8f3   :  { %v3342_v27 = vadd.f32 1e-05, %v3326_v39  ;;  %v3343_v59 = vadd.f32 1e-05, %v3327_v33  ;;  %v3413_v13 = vadd.f32 %v6883_v10, %v3391_v63 }
 0x8f4   :  { %v3308_v58 = vpop.xlane.xlu1 %3307  ;;  %v3311_v18 = vpop.xlane.xlu0 %3310  ;;  %v3425_v41 = vpack.c.bf16 %v3412_v5, %v3411_v36  ;;  %v3392_v57 = vmul.f32 %v6875_v51, %v3370_v22 }
 0x8f5   :  { %4937 = vrsqrt.f32 %v3342_v27  ;;  %v3328_v35 = vmul.f32 0.03125, %v3308_v58  ;;  %v3329_v53 = vmul.f32 0.03125, %v3311_v18 }
 0x8f6   :  { %4939 = vrsqrt.f32 %v3343_v59  ;;  %4427 = vmatprep.mubr.msk.bf16.mxu0 %vm63_vm0, %v3425_v41  ;;  %v3414_v20 = vadd.f32 %v6883_v10, %v3392_v57 }
 0x8f7   :  { %v3344_v37 = vadd.f32 1e-05, %v3328_v35  ;;  %v3345_v61 = vadd.f32 1e-05, %v3329_v53  ;;  %v4625_v53 = vld [vmem:[%s7069_s11 + $0x8] sm:$0xff]  }
 0x8f8   :  { %v3314_v16 = vpop.xlane.xlu1 %3313  ;;  %v3426_v38 = vpack.c.bf16 %v3414_v20, %v3413_v13  ;;  %4439 = vmatprep.subr.bf16.mxu1 %v4625_v53 }
 0x8f9   :  { %4941 = vrsqrt.f32 %v3344_v37  ;;  %v3330_v1 = vmul.f32 0.03125, %v3314_v16  ;;  %4440 = vmatpush3.bf16.msra.mxu1 %v4625_v53 }
 0x8fa   :  { %v4932_v40 = vpop.eup %4931  ;;  %4943 = vrsqrt.f32 %v3345_v61  ;;  %4428 = vmatmul.mubr.msk.bf16.gmra.mxu0 %vm63_vm0, %v3426_v38 }
 0x8fb   :  { %v3346_v9 = vadd.f32 1e-05, %v3330_v1  ;;  %v3371_v62 = vmul.f32 %v4932_v40, %v6818_v31 }
 0x8fd   :  { %4945 = vrsqrt.f32 %v3346_v9  ;;  %v3393_v48 = vmul.f32 %v6875_v51, %v3371_v62 }
 0x8fe   :  { %v4934_v30 = vpop.eup %4933 }
 0x8ff   :  { %v4936_v55 = vpop.eup %4935  ;;  %v3372_v25 = vmul.f32 %v4934_v30, %v6823_v52  ;;  %v3415_v46 = vadd.f32 %v6883_v10, %v3393_v48 }
 0x900   :  { %v3373_v3 = vmul.f32 %v4936_v55, %v6826_v23 }
 0x901   :  { %v3394_v34 = vmul.f32 %v6875_v51, %v3372_v25 }
 0x902   :  { %v4938_v17 = vpop.eup %4937  ;;  %v3395_v31 = vmul.f32 %v6875_v51, %v3373_v3 }
 0x903   :  { %v4940_v6 = vpop.eup %4939  ;;  %v3416_v26 = vadd.f32 %v6883_v10, %v3394_v34  ;;  %v3374_v8 = vmul.f32 %v4938_v17, %v6834_v2 }
 0x904   :  { %v3375_v15 = vmul.f32 %v4940_v6, %v6837_v12  ;;  %v3417_v23 = vadd.f32 %v6883_v10, %v3395_v31 }
 0x905   :  { %v3427_v7 = vpack.c.bf16 %v3416_v26, %v3415_v46  ;;  %v3396_v52 = vmul.f32 %v6875_v51, %v3374_v8 }
 0x906   :  { %v4942_v4 = vpop.eup %4941  ;;  %v3397_v5 = vmul.f32 %v6875_v51, %v3375_v15 }
 0x907   :  { %v4944_v39 = vpop.eup %4943  ;;  %4431 = vmatprep.mubr.msk.bf16.mxu0 %vm63_vm0, %v3427_v7  ;;  %v3418_v33 = vadd.f32 %v6883_v10, %v3396_v52  ;;  %v3376_v36 = vmul.f32 %v4942_v4, %v6846_v42 }
 0x908   :  { %v3377_v2 = vmul.f32 %v4944_v39, %v6849_v21  ;;  %v3419_v27 = vadd.f32 %v6883_v10, %v3397_v5 }
 0x909   :  { %v3428_v22 = vpack.c.bf16 %v3418_v33, %v3417_v23  ;;  %v3398_v12 = vmul.f32 %v6875_v51, %v3376_v36 }
 0x90a   :  { %v4946_v63 = vpop.eup %4945  ;;  %v3399_v18 = vmul.f32 %v6875_v51, %v3377_v2 }
 0x90b   :  { %4432 = vmatmul.mubr.msk.bf16.gmra.mxu0 %vm63_vm0, %v3428_v22  ;;  %v3420_v59 = vadd.f32 %v6883_v10, %v3398_v12  ;;  %v3378_v58 = vmul.f32 %v4946_v63, %v6861_v29  ;;  %v4626_v29 = vld [vmem:[%s7069_s11] sm:$0xff]  }
 0x90c   :  { %v3421_v21 = vadd.f32 %v6883_v10, %v3399_v18  ;;  %4441 = vmatprep.subr.bf16.mxu1 %v4626_v29 }
 0x90d   :  { %v3429_v41 = vpack.c.bf16 %v3420_v59, %v3419_v27  ;;  %v3400_v42 = vmul.f32 %v6875_v51, %v3378_v58  ;;  %4442 = vmatpush3.bf16.msra.mxu1 %v4626_v29  ;;  %v6946_v51 = vld [vmem:[%s7070_s10] ss:$0 sm:$0xff] }
 0x90f   :  { %4435 = vmatprep.mubr.msk.bf16.mxu0 %vm63_vm0, %v3429_v41  ;;  %v3422_v57 = vadd.f32 %v6883_v10, %v3400_v42 }
 0x911   :  { %v3430_v35 = vpack.c.bf16 %v3422_v57, %v3421_v21 }
 0x913   :  { %4436 = vmatmul.mubr.msk.bf16.gmra.mxu0 %vm63_vm0, %v3430_v35 }
 0x9ae   :  { %v4425_v10 = vpop.f32.mrf.mxu0 }
 0x9af   :  { %v3521_v13 = vadd.f32 %v4425_v10, %v6946_v51 }
 0x9b0   :  { %v3512_v20 = vpop.f32.mrf.mxu0 }
 0x9b1   :  { %v3513_v37 = vadd.f32 %v6946_v51, %v3512_v20  ;;  %v3593_v61 = vmul.f32 0.70710677, %v3521_v13  ;;  %v3577_v63 = vmul.f32 0.5, %v3521_v13 }
 0x9b2   :  { %v4426_v16 = vpop.f32.mrf.mxu0 }
 0x9b3   :  { %v3591_v38 = vmul.f32 0.70710677, %v3513_v37  ;;  %v3524_v1 = vadd.f32 %v4426_v16, %v6946_v51  ;;  %v3575_v2 = vmul.f32 0.5, %v3513_v37 }
 0x9b4   :  { %v3515_v40 = vpop.f32.mrf.mxu0 }
 0x9b5   :  { %4947 = verf.f32 %v3591_v38  ;;  %v3594_v9 = vmul.f32 0.70710677, %v3524_v1  ;;  %v3516_v62 = vadd.f32 %v6946_v51, %v3515_v40  ;;  %v3578_v5 = vmul.f32 0.5, %v3524_v1 }
 0x9b6   :  { %4949 = verf.f32 %v3593_v61 }
 0x9b7   :  { %4951 = verf.f32 %v3594_v9  ;;  %v3592_v30 = vmul.f32 0.70710677, %v3516_v62  ;;  %v3576_v22 = vmul.f32 0.5, %v3516_v62 }
 0x9b9   :  { %4953 = verf.f32 %v3592_v30 }
 0x9ba   :  { %v4429_v55 = vpop.f32.mrf.mxu0 }
 0x9bb   :  { %v3537_v25 = vadd.f32 %v4429_v55, %v6946_v51 }
 0x9bc   :  { %v3528_v48 = vpop.f32.mrf.mxu0 }
 0x9bd   :  { %v3597_v3 = vmul.f32 0.70710677, %v3537_v25  ;;  %v3529_v34 = vadd.f32 %v6946_v51, %v3528_v48 }
 0x9be   :  { %v4430_v17 = vpop.f32.mrf.mxu0 }
 0x9bf   :  { %v3595_v6 = vmul.f32 0.70710677, %v3529_v34  ;;  %v3540_v46 = vadd.f32 %v4430_v17, %v6946_v51  ;;  %4955 = verf.f32 %v3597_v3  ;;  %v3579_v48 = vmul.f32 0.5, %v3529_v34 }
 0x9c0   :  { %v3531_v26 = vpop.f32.mrf.mxu0 }
 0x9c1   :  { %v3598_v8 = vmul.f32 0.70710677, %v3540_v46  ;;  %4957 = verf.f32 %v3595_v6  ;;  %v3532_v15 = vadd.f32 %v6946_v51, %v3531_v26  ;;  %v3582_v3 = vmul.f32 0.5, %v3540_v46 }
 0x9c2   :  { %v4948_v31 = vpop.eup %4947 }
 0x9c3   :  { %v4950_v7 = vpop.eup %4949  ;;  %4959 = verf.f32 %v3598_v8  ;;  %v3596_v4 = vmul.f32 0.70710677, %v3532_v15  ;;  %v3623_v39 = vadd.f32 1.0, %v4948_v31  ;;  %v3580_v6 = vmul.f32 0.5, %v3532_v15 }
 0x9c4   :  { %v4952_v52 = vpop.eup %4951  ;;  %v3625_v36 = vadd.f32 1.0, %v4950_v7  ;;  %v3581_v31 = vmul.f32 0.5, %v3537_v25 }
 0x9c5   :  { %v3626_v23 = vadd.f32 1.0, %v4952_v52  ;;  %4961 = verf.f32 %v3596_v4  ;;  %v3639_v59 = vmul.f32 %v3623_v39, %v3575_v2 }
 0x9c6   :  { %v4954_v33 = vpop.eup %4953  ;;  %v3641_v18 = vmul.f32 %v3625_v36, %v3577_v63 }
 0x9c7   :  { %v3624_v12 = vadd.f32 1.0, %v4954_v33  ;;  %v3642_v27 = vmul.f32 %v3626_v23, %v3578_v5 }
 0x9c9   :  { %v3640_v58 = vmul.f32 %v3624_v12, %v3576_v22  ;;  %v3656_v21 = vpack.c.bf16 %v3642_v27, %v3641_v18 }
 0x9cb   :  { %v3655_v41 = vpack.c.bf16 %v3640_v58, %v3639_v59  ;;  %v4433_v42 = vpop.f32.mrf.mxu0 }
 0x9cc   :  { %v6957_v57 = vadd.f32 %v4433_v42, %v6946_v51  ;;  %v4956_v53 = vpop.eup %4955 }
 0x9cd   :  { %v3544_v35 = vpop.f32.mrf.mxu0  ;;  %4443 = vmatprep.mubr.msk.bf16.mxu1 %vm63_vm0, %v3655_v41  ;;  %v3629_v55 = vadd.f32 1.0, %v4956_v53 }
 0x9ce   :  { %v3545_v29 = vadd.f32 %v6946_v51, %v3544_v35  ;;  %4444 = vmatmul.mubr.msk.bf16.vlgmr.msra.gmra.mxu1 %vm63_vm0, %v3656_v21  ;;  %v4958_v10 = vpop.eup %4957  ;;  %v3601_v13 = vmul.f32 0.70710677, %v6957_v57 }
 0x9cf   :  { %v4434_v20 = vpop.f32.mrf.mxu0  ;;  %v3627_v40 = vadd.f32 1.0, %v4958_v10  ;;  %v3645_v36 = vmul.f32 %v3629_v55, %v3581_v31 }
 0x9d0   :  { %v4960_v37 = vpop.eup %4959  ;;  %v3599_v61 = vmul.f32 0.70710677, %v3545_v29  ;;  %v3556_v16 = vadd.f32 %v4434_v20, %v6946_v51  ;;  %v3583_v10 = vmul.f32 0.5, %v3545_v29 }
 0x9d1   :  { %v3630_v38 = vadd.f32 1.0, %v4960_v37  ;;  %v3547_v1 = vpop.f32.mrf.mxu0  ;;  %v3643_v39 = vmul.f32 %v3627_v40, %v3579_v48 }
 0x9d2   :  { %4963 = verf.f32 %v3599_v61  ;;  %v3602_v9 = vmul.f32 0.70710677, %v3556_v16  ;;  %v3548_v62 = vadd.f32 %v6946_v51, %v3547_v1  ;;  %v4962_v30 = vpop.eup %4961  ;;  %v3586_v53 = vmul.f32 0.5, %v3556_v16 }
 0x9d3   :  { %4965 = verf.f32 %v3601_v13  ;;  %v4437_v17 = vpop.f32.mrf.mxu0  ;;  %v3628_v26 = vadd.f32 1.0, %v4962_v30  ;;  %v3646_v7 = vmul.f32 %v3630_v38, %v3582_v3 }
 0x9d4   :  { %4967 = verf.f32 %v3602_v9  ;;  %v3600_v8 = vmul.f32 0.70710677, %v3548_v62  ;;  %v3569_v52 = vadd.f32 %v4437_v17, %v6946_v51  ;;  %v3584_v13 = vmul.f32 0.5, %v3548_v62 }
 0x9d5   :  { %v3560_v4 = vpop.f32.mrf.mxu0  ;;  %v3644_v23 = vmul.f32 %v3628_v26, %v3580_v6  ;;  %v3658_v22 = vpack.c.bf16 %v3646_v7, %v3645_v36 }
 0x9d6   :  { %4969 = verf.f32 %v3600_v8  ;;  %v3561_v33 = vadd.f32 %v6946_v51, %v3560_v4  ;;  %v3605_v5 = vmul.f32 0.70710677, %v3569_v52  ;;  %v3589_v8 = vmul.f32 0.5, %v3569_v52 }
 0x9d7   :  { %v4438_v34 = vpop.f32.mrf.mxu0  ;;  %v3657_v46 = vpack.c.bf16 %v3644_v23, %v3643_v39 }
 0x9d8   :  { %v3603_v2 = vmul.f32 0.70710677, %v3561_v33  ;;  %v3572_v15 = vadd.f32 %v4438_v34, %v6946_v51  ;;  %v3587_v62 = vmul.f32 0.5, %v3561_v33 }
 0x9d9   :  { %v3563_v12 = vpop.f32.mrf.mxu0  ;;  %4447 = vmatprep.mubr.msk.bf16.mxu1 %vm63_vm0, %v3657_v46 }
 0x9da   :  { %4971 = verf.f32 %v3603_v2  ;;  %v3606_v25 = vmul.f32 0.70710677, %v3572_v15  ;;  %v3564_v63 = vadd.f32 %v6946_v51, %v3563_v12  ;;  %4448 = vmatmul.mubr.msk.bf16.gmra.mxu1 %vm63_vm0, %v3658_v22  ;;  %v3585_v51 = vmul.f32 0.5, %v6957_v57 }
 0x9db   :  { %4973 = verf.f32 %v3605_v5  ;;  %v3590_v29 = vmul.f32 0.5, %v3572_v15  ;;  %v3944_v5 = vld [vmem:[%s7071_s12] ss:$0 sm:$0xff] }
 0x9dc   :  { %4975 = verf.f32 %v3606_v25  ;;  %v3604_v27 = vmul.f32 0.70710677, %v3564_v63  ;;  %v3588_v57 = vmul.f32 0.5, %v3564_v63 }
 0x9de   :  { %4977 = verf.f32 %v3604_v27 }
 0x9df   :  { %v4964_v59 = vpop.eup %4963 }
 0x9e0   :  { %v4966_v58 = vpop.eup %4965  ;;  %v3631_v41 = vadd.f32 1.0, %v4964_v59 }
 0x9e1   :  { %v4968_v18 = vpop.eup %4967  ;;  %v3633_v35 = vadd.f32 1.0, %v4966_v58 }
 0x9e2   :  { %v3634_v42 = vadd.f32 1.0, %v4968_v18  ;;  %v3647_v61 = vmul.f32 %v3631_v41, %v3583_v10 }
 0x9e3   :  { %v4970_v21 = vpop.eup %4969  ;;  %v3649_v40 = vmul.f32 %v3633_v35, %v3585_v51 }
 0x9e4   :  { %v3632_v20 = vadd.f32 1.0, %v4970_v21  ;;  %v3650_v37 = vmul.f32 %v3634_v42, %v3586_v53 }
 0x9e6   :  { %v3648_v38 = vmul.f32 %v3632_v20, %v3584_v13  ;;  %v3660_v48 = vpack.c.bf16 %v3650_v37, %v3649_v40 }
 0x9e7   :  { %v4972_v1 = vpop.eup %4971 }
 0x9e8   :  { %v4974_v9 = vpop.eup %4973  ;;  %v3659_v30 = vpack.c.bf16 %v3648_v38, %v3647_v61  ;;  %v3635_v3 = vadd.f32 1.0, %v4972_v1 }
 0x9e9   :  { %v4976_v55 = vpop.eup %4975  ;;  %v3637_v16 = vadd.f32 1.0, %v4974_v9 }
 0x9ea   :  { %v3638_v17 = vadd.f32 1.0, %v4976_v55  ;;  %4451 = vmatprep.mubr.msk.bf16.mxu1 %vm63_vm0, %v3659_v30  ;;  %v3651_v7 = vmul.f32 %v3635_v3, %v3587_v62 }
 0x9eb   :  { %v4978_v6 = vpop.eup %4977  ;;  %4452 = vmatmul.mubr.msk.bf16.gmra.mxu1 %vm63_vm0, %v3660_v48  ;;  %v3653_v39 = vmul.f32 %v3637_v16, %v3589_v8 }
 0x9ec   :  { %v3636_v26 = vadd.f32 1.0, %v4978_v6  ;;  %v3654_v31 = vmul.f32 %v3638_v17, %v3590_v29 }
 0x9ee   :  { %v3652_v4 = vmul.f32 %v3636_v26, %v3588_v57  ;;  %v3662_v36 = vpack.c.bf16 %v3654_v31, %v3653_v39 }
 0x9f0   :  { %v3661_v23 = vpack.c.bf16 %v3652_v4, %v3651_v7 }
 0x9f2   :  { %4455 = vmatprep.mubr.msk.bf16.mxu1 %vm63_vm0, %v3661_v23 }
 0x9f3   :  { %4456 = vmatmul.mubr.msk.bf16.gmra.mxu1 %vm63_vm0, %v3662_v36 }
 0xa8e   :  { %v4445_v34 = vpop.f32.mrf.mxu1 }
 0xa8f   :  { %v3753_v46 = vadd.f32 %v4445_v34, %v3944_v5 }
 0xa90   :  { %v3744_v33 = vpop.f32.mrf.mxu1 }
 0xa91   :  { %v3809_v2 = vadd.f32 %v3753_v46, %v6651_v44  ;;  %v3745_v52 = vadd.f32 %v3944_v5, %v3744_v33 }
 0xa92   :  { %v4446_v15 = vpop.f32.mrf.mxu1 }
 0xa93   :  { %3825 = vst.msk [vmem:[%s7072_s13 + $0x10] sm:$0xff] %vm63_vm0, %v3809_v2  ;;  %v3807_v22 = vadd.f32 %v3745_v52, %v6646_v32  ;;  %v3756_v12 = vadd.f32 %v4446_v15, %v3944_v5 }
 0xa94   :  { %v3747_v25 = vpop.f32.mrf.mxu1 }
 0xa95   :  { %3823 = vst.msk [vmem:[%s7072_s13] sm:$0xff] %vm63_vm0, %v3807_v22  ;;  %v3810_v63 = vadd.f32 %v3756_v12, %v6665_v19  ;;  %v3748_v27 = vadd.f32 %v3944_v5, %v3747_v25 }
 0xa97   :  { %3826 = vst.msk [vmem:[%s7072_s13 + $0x18] sm:$0xff] %vm63_vm0, %v3810_v63  ;;  %v3808_v44 = vadd.f32 %v3748_v27, %v6660_v11 }
 0xa99   :  { %3824 = vst.msk [vmem:[%s7072_s13 + $0x8] sm:$0xff] %vm63_vm0, %v3808_v44 }
 0xa9a   :  { %v4449_v32 = vpop.f32.mrf.mxu1 }
 0xa9b   :  { %v3769_v59 = vadd.f32 %v4449_v32, %v3944_v5 }
 0xa9c   :  { %v3760_v58 = vpop.f32.mrf.mxu1 }
 0xa9d   :  { %v3813_v18 = vadd.f32 %v3769_v59, %v6683_v54  ;;  %v3761_v41 = vadd.f32 %v3944_v5, %v3760_v58 }
 0xa9e   :  { %v4450_v19 = vpop.f32.mrf.mxu1 }
 0xa9f   :  { %3829 = vst.msk [vmem:[%s7072_s13 + $0x30] sm:$0xff] %vm63_vm0, %v3813_v18  ;;  %v3811_v42 = vadd.f32 %v3761_v41, %v6678_v47  ;;  %v3772_v11 = vadd.f32 %v4450_v19, %v3944_v5 }
 0xaa0   :  { %v3763_v21 = vpop.f32.mrf.mxu1 }
 0xaa1   :  { %3827 = vst.msk [vmem:[%s7072_s13 + $0x20] sm:$0xff] %vm63_vm0, %v3811_v42  ;;  %v3814_v35 = vadd.f32 %v3772_v11, %v6697_v60  ;;  %v3764_v53 = vadd.f32 %v3944_v5, %v3763_v21 }
 0xaa3   :  { %3830 = vst.msk [vmem:[%s7072_s13 + $0x38] sm:$0xff] %vm63_vm0, %v3814_v35  ;;  %v3812_v54 = vadd.f32 %v3764_v53, %v6692_v43 }
 0xaa5   :  { %3828 = vst.msk [vmem:[%s7072_s13 + $0x28] sm:$0xff] %vm63_vm0, %v3812_v54 }
 0xaab   :  { %v4453_v47 = vpop.f32.mrf.mxu1 }
 0xaac   :  { %v3785_v10 = vadd.f32 %v4453_v47, %v3944_v5 }
 0xaad   :  { %v3776_v13 = vpop.f32.mrf.mxu1 }
 0xaae   :  { %v3817_v20 = vadd.f32 %v3785_v10, %v6716_v0  ;;  %v3777_v51 = vadd.f32 %v3944_v5, %v3776_v13 }
 0xaaf   :  { %v4454_v60 = vpop.f32.mrf.mxu1 }
 0xab0   :  { %3833 = vst.msk [vmem:[%s7072_s13 + $0x50] sm:$0xff] %vm63_vm0, %v3817_v20  ;;  %v3815_v37 = vadd.f32 %v3777_v51, %v6710_v49  ;;  %v3788_v43 = vadd.f32 %v4454_v60, %v3944_v5 }
 0xab1   :  { %v3779_v61 = vpop.f32.mrf.mxu1 }
 0xab2   :  { %3831 = vst.msk [vmem:[%s7072_s13 + $0x40] sm:$0xff] %vm63_vm0, %v3815_v37  ;;  %v3818_v38 = vadd.f32 %v3788_v43, %v6729_v50  ;;  %v3780_v1 = vadd.f32 %v3944_v5, %v3779_v61 }
 0xab3   :  { %v4457_v0 = vpop.f32.mrf.mxu1 }
 0xab4   :  { %3834 = vst.msk [vmem:[%s7072_s13 + $0x58] sm:$0xff] %vm63_vm0, %v3818_v38  ;;  %v3816_v40 = vadd.f32 %v3780_v1, %v6724_v14  ;;  %v3801_v9 = vadd.f32 %v4457_v0, %v3944_v5 }
 0xab5   :  { %v3792_v49 = vpop.f32.mrf.mxu1 }
 0xab6   :  { %3832 = vst.msk [vmem:[%s7072_s13 + $0x48] sm:$0xff] %vm63_vm0, %v3816_v40  ;;  %v3821_v30 = vadd.f32 %v3801_v9, %v6747_v45  ;;  %v3793_v55 = vadd.f32 %v3944_v5, %v3792_v49 }
 0xab7   :  { %v4458_v50 = vpop.f32.mrf.mxu1 }
 0xab8   :  { %3837 = vst.msk [vmem:[%s7072_s13 + $0x70] sm:$0xff] %vm63_vm0, %v3821_v30  ;;  %v3819_v48 = vadd.f32 %v3793_v55, %v6740_v56  ;;  %v3804_v3 = vadd.f32 %v4458_v50, %v3944_v5 }
 0xab9   :  { %v3795_v14 = vpop.f32.mrf.mxu1 }
 0xaba   :  { %3835 = vst.msk [vmem:[%s7072_s13 + $0x60] sm:$0xff] %vm63_vm0, %v3819_v48  ;;  %v3822_v17 = vadd.f32 %v3804_v3, %v6761_v28  ;;  %v3796_v6 = vadd.f32 %v3944_v5, %v3795_v14 }
 0xabc   :  { %3838 = vst.msk [vmem:[%s7072_s13 + $0x78] sm:$0xff] %vm63_vm0, %v3822_v17  ;;  %v3820_v45 = vadd.f32 %v3796_v6, %v6756_v24 }
 0xabe   :  { %3836 = vst.msk [vmem:[%s7072_s13 + $0x68] sm:$0xff] %vm63_vm0, %v3820_v45 }

</bundles_post_ra>
